<compile_context>
chip_gen: v7x
topology: tpu7x:2x2x1
jax: 0.10.0
libtpu: 0.0.40
codegen_flags: <defaults>
</compile_context>

<pallas_src>
import functools
import math

import jax
import jax.numpy as jnp
from jax.experimental import pallas as pl
from jax.experimental.pallas import tpu as pltpu

LN_EPS = 1e-5
NEG_INF = -1e9
PAD_TOKEN_ID = 1          # RoBERTa / PhoBERT padding_idx

# ----------------------------- config (small) ------------------------------
BATCH = 2
SEQ = 8
HIDDEN = 64               # phobert hidden_size (scaled down)
NUM_HEADS = 4
INTERMEDIATE = 128
NUM_LAYERS = 2
VOCAB = 100
MAX_POS = 16
NUM_ASPECTS = 8
LOGITS_PAD = 128          # lane-dense padded logits width

LAYER_PARAM_ORDER = ['wqkv', 'bqkv', 'wo', 'bo',
                     'ln1_g', 'ln1_b', 'w1', 'b1', 'w2', 'b2', 'ln2_g', 'ln2_b']
HEAD_PARAM_ORDER = ['ln_g', 'ln_b', 'w1', 'b1', 'w2', 'b2', 'w3', 'b3']


# --------------------------- in-kernel helpers ------------------------------
def _layer_norm(x, gamma, beta):
    mu = jnp.mean(x, axis=-1, keepdims=True)
    var = jnp.mean((x - mu) ** 2, axis=-1, keepdims=True)
    return (x - mu) * jax.lax.rsqrt(var + LN_EPS) * gamma + beta


def _erf(x):
    # Abramowitz & Stegun 7.1.26 (|err| < 1.5e-7); elementary ops only, so the
    # exp goes to the EUP and the divide is an approx EUP reciprocal.
    a1, a2, a3, a4, a5 = 0.254829592, -0.284496736, 1.421413741, -1.453152027, 1.061405429
    p = 0.3275911
    sgn = jnp.where(x >= 0.0, 1.0, -1.0)
    ax = jnp.abs(x)
    t = pl.reciprocal(1.0 + p * ax, approx=True)
    poly = ((((a5 * t + a4) * t + a3) * t + a2) * t + a1) * t
    return sgn * (1.0 - poly * jnp.exp(-ax * ax))


def _gelu_exact(x):
    return 0.5 * x * (1.0 + _erf(x * (1.0 / math.sqrt(2.0))))


# --------------------------- fused forward kernel ---------------------------
def fused_forward_kernel(x_ref, mask_ref,
                         wqkv_ref, bqkv_ref, wo_ref, bo_ref,
                         ln1_g_ref, ln1_b_ref,
                         w1_ref, b1_ref, w2_ref, b2_ref,
                         ln2_g_ref, ln2_b_ref,
                         hln_g_ref, hln_b_ref,
                         hw1_ref, hb1_ref, hw2_ref, hb2_ref, hw3_ref, hb3_ref,
                         o_ref, *, num_heads, num_layers):
    _, S, H = x_ref.shape                                       # block: (1, S, H)
    nh = num_heads
    dh = H // nh
    scale = 1.0 / math.sqrt(dh)

    x = x_ref[...].astype(jnp.float32).reshape(S, H)            # (S, H) this batch
    mask = mask_ref[...].astype(jnp.float32).reshape(1, 1, S)   # (1, 1, S)
    bias = (1.0 - mask) * NEG_INF                               # additive key mask

    def dense(act, w, b):
        # bf16 operands on the MXU, f32 accumulation; bias add in f32.
        return jnp.dot(act.astype(w.dtype), w,
                       preferred_element_type=jnp.float32) + b

    for l in range(num_layers):                                 # static layer loop
        # ---- self attention (all heads batched) -----------------------------
        qkv = dense(x, wqkv_ref[l], bqkv_ref[l])                # (S, 3H) f32
        qkvT = qkv.T                                            # (3H, S) 2D transpose
        q_hds = qkvT[0:H].reshape(nh, dh, S)                    # (nh, dh, S)
        k_hds = qkvT[H:2 * H].reshape(nh, dh, S).astype(jnp.bfloat16)
        v_hds = qkvT[2 * H:3 * H].reshape(nh, dh, S).astype(jnp.bfloat16)
        q_hsd = jnp.transpose(q_hds, (0, 2, 1)).astype(jnp.bfloat16)  # (nh, S, dh)

        # scores[h, q, k] = sum_d q[h,q,d] * k[h,d,k]   (canonical batched matmul)
        scores = jnp.einsum('hsd,hdk->hsk', q_hsd, k_hds,
                            preferred_element_type=jnp.float32) * scale
        scores = scores + bias                                  # (nh, S, S)

        # one sublane-dense softmax over the whole slab
        s2 = scores.reshape(nh * S, S)
        s2 = s2 - jnp.max(s2, axis=-1, keepdims=True)
        p = jnp.exp(s2)
        p = p * pl.reciprocal(jnp.sum(p, axis=-1, keepdims=True), approx=True)
        p_h = p.reshape(nh, S, S).astype(jnp.bfloat16)          # (nh, Sq, Sk)

        # ctxT[h, d, q] = sum_k v[h,d,k] * p[h,q,k]
        ctxT = jnp.einsum('hdk,hsk->hds', v_hds, p_h,
                          preferred_element_type=jnp.float32)   # (nh, dh, S)
        ctx = ctxT.reshape(H, S).T                              # (S, H) concat heads

        attn = dense(ctx, wo_ref[l], bo_ref[l])                 # single K=H out-proj
        x = _layer_norm(x + attn, ln1_g_ref[l], ln1_b_ref[l])

        # ---- feed-forward ----------------------------------------------------
        h1 = dense(x, w1_ref[l], b1_ref[l])
        h1 = _gelu_exact(h1)
        ffn = dense(h1, w2_ref[l], b2_ref[l])
        x = _layer_norm(x + ffn, ln2_g_ref[l], ln2_b_ref[l])

    # ---- CLS pooling + LayerNorm + MLP head (dropout = identity) ------------
    cls = x[0:1, :]                                             # (1, H)
    pooled = _layer_norm(cls, hln_g_ref[...], hln_b_ref[...])
    hh = jnp.maximum(dense(pooled, hw1_ref[...], hb1_ref[...]), 0.0)
    hh = jnp.maximum(dense(hh, hw2_ref[...], hb2_ref[...]), 0.0)
    logits = dense(hh, hw3_ref[...], hb3_ref[...])              # (1, LOGITS_PAD)
    o_ref[...] = logits.reshape(1, 1, LOGITS_PAD).astype(o_ref.dtype)


# ------------------------------ glue (JAX) ----------------------------------
def embed(input_ids, params):
    # Embedding gathers + embedding LayerNorm stay in plain JAX (glue).
    not_pad = (input_ids != PAD_TOKEN_ID).astype(jnp.int32)
    # RoBERTa/PhoBERT position ids: offset by padding_idx, skip pad tokens.
    position_ids = jnp.cumsum(not_pad, axis=1) * not_pad + PAD_TOKEN_ID
    x = (params['word_emb'][input_ids]
         + params['pos_emb'][position_ids]
         + params['type_emb'][0][None, None, :])
    mu = x.mean(-1, keepdims=True)
    var = ((x - mu) ** 2).mean(-1, keepdims=True)
    return (x - mu) / jnp.sqrt(var + LN_EPS) * params['emb_ln_g'] + params['emb_ln_b']


def forward(input_ids, attention_mask, params):
    B, S = input_ids.shape
    x = embed(input_ids, params).astype(jnp.float32)             # (B, S, H)
    mask3 = attention_mask.astype(jnp.float32).reshape(B, 1, S)  # (B, 1, S)

    layer_w = [params['layers_stacked'][k] for k in LAYER_PARAM_ORDER]
    head_w = [params['head'][k] for k in HEAD_PARAM_ORDER]
    operands = [x, mask3] + layer_w + head_w

    def const_spec(a):
        # Weights: whole array, same block for every grid step (DMA'd once).
        return pl.BlockSpec(a.shape, lambda b, _nd=a.ndim: (0,) * _nd)

    in_specs = ([pl.BlockSpec((1, S, HIDDEN), lambda b: (b, 0, 0)),
                 pl.BlockSpec((1, 1, S), lambda b: (b, 0, 0))]
                + [const_spec(a) for a in layer_w + head_w])

    logits_pad = pl.pallas_call(
        functools.partial(fused_forward_kernel,
                          num_heads=NUM_HEADS, num_layers=NUM_LAYERS),
        out_shape=jax.ShapeDtypeStruct((B, 1, LOGITS_PAD), jnp.float32),
        grid=(B,),                                               # batch-parallel (2 TCs on v7x)
        in_specs=in_specs,
        out_specs=pl.BlockSpec((1, 1, LOGITS_PAD), lambda b: (b, 0, 0)),
        compiler_params=pltpu.CompilerParams(
            dimension_semantics=("parallel",)),
    )(*operands)
    return logits_pad.reshape(B, LOGITS_PAD)[:, :NUM_ASPECTS]


# ------------------------------ init ----------------------------------------
def init_params(key):
    keys = iter(jax.random.split(key, 128))

    def w_bf16(shape, scale=0.02):
        return (jax.random.normal(next(keys), shape, jnp.float32) * scale
                ).astype(jnp.bfloat16)

    def w_f32(shape, scale=0.02):
        return jax.random.normal(next(keys), shape, jnp.float32) * scale

    H, I, A = HIDDEN, INTERMEDIATE, NUM_ASPECTS
    params = {
        'word_emb': w_f32((VOCAB, H)),
        'pos_emb': w_f32((MAX_POS, H)),
        'type_emb': w_f32((2, H)),
        'emb_ln_g': jnp.ones((H,), jnp.float32),
        'emb_ln_b': jnp.zeros((H,), jnp.float32),
    }

    layers = []
    for _ in range(NUM_LAYERS):
        wq, wk, wv = w_bf16((H, H)), w_bf16((H, H)), w_bf16((H, H))
        layers.append({
            # Q/K/V fused into one (H, 3H) lane-dense weight + (1, 3H) bias.
            'wqkv': jnp.concatenate([wq, wk, wv], axis=1),
            'bqkv': jnp.zeros((1, 3 * H), jnp.float32),
            'wo': w_bf16((H, H)), 'bo': jnp.zeros((1, H), jnp.float32),
            'ln1_g': jnp.ones((1, H), jnp.float32), 'ln1_b': jnp.zeros((1, H), jnp.float32),
            'w1': w_bf16((H, I)), 'b1': jnp.zeros((1, I), jnp.float32),
            'w2': w_bf16((I, H)), 'b2': jnp.zeros((1, H), jnp.float32),
            'ln2_g': jnp.ones((1, H), jnp.float32), 'ln2_b': jnp.zeros((1, H), jnp.float32),
        })
    # Stack per-layer weights so the fused kernel can index them with a
    # static layer loop while they stay VMEM-resident.
    params['layers_stacked'] = {
        k: jnp.stack([lp[k] for lp in layers]) for k in LAYER_PARAM_ORDER
    }

    # Classifier head; logits weight/bias padded to a 128-lane tile.
    w3 = w_f32((256, A))
    w3_pad = jnp.zeros((256, LOGITS_PAD), jnp.float32).at[:, :A].set(w3)
    params['head'] = {
        'ln_g': jnp.ones((1, H), jnp.float32), 'ln_b': jnp.zeros((1, H), jnp.float32),
        'w1': w_bf16((H, 512)), 'b1': jnp.zeros((1, 512), jnp.float32),
        'w2': w_bf16((512, 256)), 'b2': jnp.zeros((1, 256), jnp.float32),
        'w3': w3_pad.astype(jnp.bfloat16), 'b3': jnp.zeros((1, LOGITS_PAD), jnp.float32),
    }
    return params


# ------------------------------ main ----------------------------------------
if __name__ == "__main__":
    key = jax.random.PRNGKey(0)
    params = init_params(key)

    ids_key, _ = jax.random.split(key)
    input_ids = jax.random.randint(ids_key, (BATCH, SEQ), 5, VOCAB, dtype=jnp.int32)
    attention_mask = jnp.ones((BATCH, SEQ), dtype=jnp.int32)
    # Give the second sequence two padded positions to exercise masking /
    # RoBERTa position-id handling.
    attention_mask = attention_mask.at[1, SEQ - 2:].set(0)
    input_ids = jnp.where(attention_mask == 1, input_ids, PAD_TOKEN_ID)

    logits = forward(input_ids, attention_mask, params)
    jax.block_until_ready(logits)
    assert logits.shape == (BATCH, NUM_ASPECTS)
    assert bool(jnp.all(jnp.isfinite(logits)))
    print("KERNEL_OK")
</pallas_src>

<mosaic_0001>
module attributes {stable_mosaic.version = 11 : i64} {
  func.func @fused_forward_kernel(%arg0: i32, %arg1: memref<1x8x64xf32, #tpu.memory_space<vmem>>, %arg2: memref<1x1x8xf32, #tpu.memory_space<vmem>>, %arg3: memref<2x64x192xbf16, #tpu.memory_space<vmem>>, %arg4: memref<2x1x192xf32, #tpu.memory_space<vmem>>, %arg5: memref<2x64x64xbf16, #tpu.memory_space<vmem>>, %arg6: memref<2x1x64xf32, #tpu.memory_space<vmem>>, %arg7: memref<2x1x64xf32, #tpu.memory_space<vmem>>, %arg8: memref<2x1x64xf32, #tpu.memory_space<vmem>>, %arg9: memref<2x64x128xbf16, #tpu.memory_space<vmem>>, %arg10: memref<2x1x128xf32, #tpu.memory_space<vmem>>, %arg11: memref<2x128x64xbf16, #tpu.memory_space<vmem>>, %arg12: memref<2x1x64xf32, #tpu.memory_space<vmem>>, %arg13: memref<2x1x64xf32, #tpu.memory_space<vmem>>, %arg14: memref<2x1x64xf32, #tpu.memory_space<vmem>>, %arg15: memref<1x64xf32, #tpu.memory_space<vmem>>, %arg16: memref<1x64xf32, #tpu.memory_space<vmem>>, %arg17: memref<64x512xbf16, #tpu.memory_space<vmem>>, %arg18: memref<1x512xf32, #tpu.memory_space<vmem>>, %arg19: memref<512x256xbf16, #tpu.memory_space<vmem>>, %arg20: memref<1x256xf32, #tpu.memory_space<vmem>>, %arg21: memref<256x128xbf16, #tpu.memory_space<vmem>>, %arg22: memref<1x128xf32, #tpu.memory_space<vmem>>, %arg23: memref<1x1x128xf32, #tpu.memory_space<vmem>>) attributes {dimension_semantics = [#tpu.dimension_semantics<parallel>], iteration_bounds = array<i64: 2>, scalar_prefetch = 0 : i64, scratch_operands = 0 : i64, tpu.core_type = #tpu.core_type<tc>, window_params = [{transform_indices = @transform_0, window_bounds = array<i64: 1, 8, 64>}, {transform_indices = @transform_1, window_bounds = array<i64: 1, 1, 8>}, {pipeline_mode = #tpu.pipeline_mode<synchronous>, transform_indices = @transform_2, window_bounds = array<i64: 2, 64, 192>}, {pipeline_mode = #tpu.pipeline_mode<synchronous>, transform_indices = @transform_3, window_bounds = array<i64: 2, 1, 192>}, {pipeline_mode = #tpu.pipeline_mode<synchronous>, transform_indices = @transform_4, window_bounds = array<i64: 2, 64, 64>}, {pipeline_mode = #tpu.pipeline_mode<synchronous>, transform_indices = @transform_5, window_bounds = array<i64: 2, 1, 64>}, {pipeline_mode = #tpu.pipeline_mode<synchronous>, transform_indices = @transform_6, window_bounds = array<i64: 2, 1, 64>}, {pipeline_mode = #tpu.pipeline_mode<synchronous>, transform_indices = @transform_7, window_bounds = array<i64: 2, 1, 64>}, {pipeline_mode = #tpu.pipeline_mode<synchronous>, transform_indices = @transform_8, window_bounds = array<i64: 2, 64, 128>}, {pipeline_mode = #tpu.pipeline_mode<synchronous>, transform_indices = @transform_9, window_bounds = array<i64: 2, 1, 128>}, {pipeline_mode = #tpu.pipeline_mode<synchronous>, transform_indices = @transform_10, window_bounds = array<i64: 2, 128, 64>}, {pipeline_mode = #tpu.pipeline_mode<synchronous>, transform_indices = @transform_11, window_bounds = array<i64: 2, 1, 64>}, {pipeline_mode = #tpu.pipeline_mode<synchronous>, transform_indices = @transform_12, window_bounds = array<i64: 2, 1, 64>}, {pipeline_mode = #tpu.pipeline_mode<synchronous>, transform_indices = @transform_13, window_bounds = array<i64: 2, 1, 64>}, {pipeline_mode = #tpu.pipeline_mode<synchronous>, transform_indices = @transform_14, window_bounds = array<i64: 1, 64>}, {pipeline_mode = #tpu.pipeline_mode<synchronous>, transform_indices = @transform_15, window_bounds = array<i64: 1, 64>}, {pipeline_mode = #tpu.pipeline_mode<synchronous>, transform_indices = @transform_16, window_bounds = array<i64: 64, 512>}, {pipeline_mode = #tpu.pipeline_mode<synchronous>, transform_indices = @transform_17, window_bounds = array<i64: 1, 512>}, {pipeline_mode = #tpu.pipeline_mode<synchronous>, transform_indices = @transform_18, window_bounds = array<i64: 512, 256>}, {pipeline_mode = #tpu.pipeline_mode<synchronous>, transform_indices = @transform_19, window_bounds = array<i64: 1, 256>}, {pipeline_mode = #tpu.pipeline_mode<synchronous>, transform_indices = @transform_20, window_bounds = array<i64: 256, 128>}, {pipeline_mode = #tpu.pipeline_mode<synchronous>, transform_indices = @transform_21, window_bounds = array<i64: 1, 128>}, {transform_indices = @transform_22, window_bounds = array<i64: 1, 1, 128>}]} {
    %c0 = arith.constant 0 : index
    %c0_0 = arith.constant 0 : index
    %c0_1 = arith.constant 0 : index
    %0 = vector.load %arg1[%c0, %c0_0, %c0_1] : memref<1x8x64xf32, #tpu.memory_space<vmem>>, vector<1x8x64xf32>
    %1 = vector.shape_cast %0 : vector<1x8x64xf32> to vector<8x64xf32>
    %c0_2 = arith.constant 0 : index
    %c0_3 = arith.constant 0 : index
    %c0_4 = arith.constant 0 : index
    %2 = vector.load %arg2[%c0_2, %c0_3, %c0_4] : memref<1x1x8xf32, #tpu.memory_space<vmem>>, vector<1x1x8xf32>
    %cst = arith.constant 1.000000e+00 : f32
    %3 = vector.broadcast %cst : f32 to vector<1x1x8xf32>
    %4 = arith.subf %3, %2 : vector<1x1x8xf32>
    %cst_5 = arith.constant -1.000000e+09 : f32
    %5 = vector.broadcast %cst_5 : f32 to vector<1x1x8xf32>
    %6 = arith.mulf %4, %5 : vector<1x1x8xf32>
    %c0_6 = arith.constant 0 : index
    %c0_7 = arith.constant 0 : index
    %c0_8 = arith.constant 0 : index
    %7 = vector.load %arg3[%c0_6, %c0_7, %c0_8] : memref<2x64x192xbf16, #tpu.memory_space<vmem>>, vector<1x64x192xbf16>
    %8 = vector.shape_cast %7 : vector<1x64x192xbf16> to vector<64x192xbf16>
    %c0_9 = arith.constant 0 : index
    %c0_10 = arith.constant 0 : index
    %c0_11 = arith.constant 0 : index
    %9 = vector.load %arg4[%c0_9, %c0_10, %c0_11] : memref<2x1x192xf32, #tpu.memory_space<vmem>>, vector<1x1x192xf32>
    %10 = vector.shape_cast %9 : vector<1x1x192xf32> to vector<1x192xf32>
    %11 = arith.truncf %1 : vector<8x64xf32> to vector<8x64xbf16>
    %cst_12 = arith.constant dense<0.000000e+00> : vector<8x192xf32>
    %12 = tpu.matmul %11, %8, %cst_12 {dimension_numbers = #tpu.dot_dimension_numbers<[1], [0], [0], [1], [0, 0, 1, 1], [], []>} : vector<8x64xbf16>, vector<64x192xbf16>, vector<8x192xf32> -> vector<8x192xf32>
    %13 = vector.broadcast %10 : vector<1x192xf32> to vector<8x192xf32>
    %14 = arith.addf %12, %13 : vector<8x192xf32>
    %15 = tpu.transpose %14, [1, 0] : vector<8x192xf32> -> vector<192x8xf32>
    %16 = vector.extract_strided_slice %15 {offsets = [0, 0], sizes = [64, 8], strides = [1, 1]} : vector<192x8xf32> to vector<64x8xf32>
    %17 = vector.shape_cast %16 : vector<64x8xf32> to vector<4x16x8xf32>
    %18 = vector.extract_strided_slice %15 {offsets = [64, 0], sizes = [64, 8], strides = [1, 1]} : vector<192x8xf32> to vector<64x8xf32>
    %19 = vector.shape_cast %18 : vector<64x8xf32> to vector<4x16x8xf32>
    %20 = arith.truncf %19 : vector<4x16x8xf32> to vector<4x16x8xbf16>
    %21 = vector.extract_strided_slice %15 {offsets = [128, 0], sizes = [64, 8], strides = [1, 1]} : vector<192x8xf32> to vector<64x8xf32>
    %22 = vector.shape_cast %21 : vector<64x8xf32> to vector<4x16x8xf32>
    %23 = arith.truncf %22 : vector<4x16x8xf32> to vector<4x16x8xbf16>
    %24 = tpu.transpose %17, [0, 2, 1] : vector<4x16x8xf32> -> vector<4x8x16xf32>
    %25 = arith.truncf %24 : vector<4x8x16xf32> to vector<4x8x16xbf16>
    "tpu.trace_start"() <{level = 10 : i32, message = "hsd,hdk->hsk"}> : () -> ()
    %cst_13 = arith.constant dense<0.000000e+00> : vector<4x8x8xf32>
    %26 = tpu.matmul %25, %20, %cst_13 {dimension_numbers = #tpu.dot_dimension_numbers<[2], [1], [1], [2], [0, 0, 0, 1, 1, 2], [0], [0]>} : vector<4x8x16xbf16>, vector<4x16x8xbf16>, vector<4x8x8xf32> -> vector<4x8x8xf32>
    "tpu.trace_stop"() : () -> ()
    %cst_14 = arith.constant 2.500000e-01 : f32
    %27 = vector.broadcast %cst_14 : f32 to vector<4x8x8xf32>
    %28 = arith.mulf %26, %27 : vector<4x8x8xf32>
    %29 = vector.broadcast %6 : vector<1x1x8xf32> to vector<4x8x8xf32>
    %30 = arith.addf %28, %29 : vector<4x8x8xf32>
    %31 = vector.shape_cast %30 : vector<4x8x8xf32> to vector<32x8xf32>
    %cst_15 = arith.constant dense<0xFF800000> : vector<32xf32>
    %32 = vector.multi_reduction <maximumf>, %31, %cst_15 [1] : vector<32x8xf32> to vector<32xf32>
    %33 = vector.shape_cast %32 : vector<32xf32> to vector<32x1xf32>
    %34 = vector.broadcast %33 : vector<32x1xf32> to vector<32x8xf32>
    %35 = arith.subf %31, %34 : vector<32x8xf32>
    %36 = math.exp %35 : vector<32x8xf32>
    %cst_16 = arith.constant dense<0.000000e+00> : vector<32xf32>
    %37 = vector.multi_reduction <add>, %36, %cst_16 [1] : vector<32x8xf32> to vector<32xf32>
    %38 = vector.shape_cast %37 : vector<32xf32> to vector<32x1xf32>
    %39 = tpu.reciprocal %38 {approx = true} : vector<32x1xf32> -> vector<32x1xf32>
    %40 = vector.broadcast %39 : vector<32x1xf32> to vector<32x8xf32>
    %41 = arith.mulf %36, %40 : vector<32x8xf32>
    %42 = vector.shape_cast %41 : vector<32x8xf32> to vector<4x8x8xf32>
    %43 = arith.truncf %42 : vector<4x8x8xf32> to vector<4x8x8xbf16>
    "tpu.trace_start"() <{level = 10 : i32, message = "hdk,hsk->hds"}> : () -> ()
    %cst_17 = arith.constant dense<0.000000e+00> : vector<4x16x8xf32>
    %44 = tpu.matmul %23, %43, %cst_17 {dimension_numbers = #tpu.dot_dimension_numbers<[2], [2], [1], [1], [0, 0, 0, 1, 1, 1], [0], [0]>} : vector<4x16x8xbf16>, vector<4x8x8xbf16>, vector<4x16x8xf32> -> vector<4x16x8xf32>
    "tpu.trace_stop"() : () -> ()
    %45 = vector.shape_cast %44 : vector<4x16x8xf32> to vector<64x8xf32>
    %46 = tpu.transpose %45, [1, 0] : vector<64x8xf32> -> vector<8x64xf32>
    %c0_18 = arith.constant 0 : index
    %c0_19 = arith.constant 0 : index
    %c0_20 = arith.constant 0 : index
    %47 = vector.load %arg5[%c0_18, %c0_19, %c0_20] : memref<2x64x64xbf16, #tpu.memory_space<vmem>>, vector<1x64x64xbf16>
    %48 = vector.shape_cast %47 : vector<1x64x64xbf16> to vector<64x64xbf16>
    %c0_21 = arith.constant 0 : index
    %c0_22 = arith.constant 0 : index
    %c0_23 = arith.constant 0 : index
    %49 = vector.load %arg6[%c0_21, %c0_22, %c0_23] : memref<2x1x64xf32, #tpu.memory_space<vmem>>, vector<1x1x64xf32>
    %50 = vector.shape_cast %49 : vector<1x1x64xf32> to vector<1x64xf32>
    %51 = arith.truncf %46 : vector<8x64xf32> to vector<8x64xbf16>
    %cst_24 = arith.constant dense<0.000000e+00> : vector<8x64xf32>
    %52 = tpu.matmul %51, %48, %cst_24 {dimension_numbers = #tpu.dot_dimension_numbers<[1], [0], [0], [1], [0, 0, 1, 1], [], []>} : vector<8x64xbf16>, vector<64x64xbf16>, vector<8x64xf32> -> vector<8x64xf32>
    %53 = vector.broadcast %50 : vector<1x64xf32> to vector<8x64xf32>
    %54 = arith.addf %52, %53 : vector<8x64xf32>
    %55 = arith.addf %1, %54 : vector<8x64xf32>
    %c0_25 = arith.constant 0 : index
    %c0_26 = arith.constant 0 : index
    %c0_27 = arith.constant 0 : index
    %56 = vector.load %arg7[%c0_25, %c0_26, %c0_27] : memref<2x1x64xf32, #tpu.memory_space<vmem>>, vector<1x1x64xf32>
    %57 = vector.shape_cast %56 : vector<1x1x64xf32> to vector<1x64xf32>
    %c0_28 = arith.constant 0 : index
    %c0_29 = arith.constant 0 : index
    %c0_30 = arith.constant 0 : index
    %58 = vector.load %arg8[%c0_28, %c0_29, %c0_30] : memref<2x1x64xf32, #tpu.memory_space<vmem>>, vector<1x1x64xf32>
    %59 = vector.shape_cast %58 : vector<1x1x64xf32> to vector<1x64xf32>
    %cst_31 = arith.constant dense<0.000000e+00> : vector<8xf32>
    %60 = vector.multi_reduction <add>, %55, %cst_31 [1] : vector<8x64xf32> to vector<8xf32>
    %61 = vector.shape_cast %60 : vector<8xf32> to vector<8x1xf32>
    %cst_32 = arith.constant 6.400000e+01 : f32
    %62 = vector.broadcast %cst_32 : f32 to vector<8x1xf32>
    %63 = arith.divf %61, %62 : vector<8x1xf32>
    %64 = vector.broadcast %63 : vector<8x1xf32> to vector<8x64xf32>
    %65 = arith.subf %55, %64 : vector<8x64xf32>
    %66 = arith.mulf %65, %65 : vector<8x64xf32>
    %cst_33 = arith.constant dense<0.000000e+00> : vector<8xf32>
    %67 = vector.multi_reduction <add>, %66, %cst_33 [1] : vector<8x64xf32> to vector<8xf32>
    %68 = vector.shape_cast %67 : vector<8xf32> to vector<8x1xf32>
    %cst_34 = arith.constant 6.400000e+01 : f32
    %69 = vector.broadcast %cst_34 : f32 to vector<8x1xf32>
    %70 = arith.divf %68, %69 : vector<8x1xf32>
    %71 = vector.broadcast %63 : vector<8x1xf32> to vector<8x64xf32>
    %72 = arith.subf %55, %71 : vector<8x64xf32>
    %cst_35 = arith.constant 9.99999974E-6 : f32
    %73 = vector.broadcast %cst_35 : f32 to vector<8x1xf32>
    %74 = arith.addf %70, %73 : vector<8x1xf32>
    %75 = math.rsqrt %74 : vector<8x1xf32>
    %76 = vector.broadcast %75 : vector<8x1xf32> to vector<8x64xf32>
    %77 = arith.mulf %72, %76 : vector<8x64xf32>
    %78 = vector.broadcast %57 : vector<1x64xf32> to vector<8x64xf32>
    %79 = arith.mulf %77, %78 : vector<8x64xf32>
    %80 = vector.broadcast %59 : vector<1x64xf32> to vector<8x64xf32>
    %81 = arith.addf %79, %80 : vector<8x64xf32>
    %c0_36 = arith.constant 0 : index
    %c0_37 = arith.constant 0 : index
    %c0_38 = arith.constant 0 : index
    %82 = vector.load %arg9[%c0_36, %c0_37, %c0_38] : memref<2x64x128xbf16, #tpu.memory_space<vmem>>, vector<1x64x128xbf16>
    %83 = vector.shape_cast %82 : vector<1x64x128xbf16> to vector<64x128xbf16>
    %c0_39 = arith.constant 0 : index
    %c0_40 = arith.constant 0 : index
    %c0_41 = arith.constant 0 : index
    %84 = vector.load %arg10[%c0_39, %c0_40, %c0_41] : memref<2x1x128xf32, #tpu.memory_space<vmem>>, vector<1x1x128xf32>
    %85 = vector.shape_cast %84 : vector<1x1x128xf32> to vector<1x128xf32>
    %86 = arith.truncf %81 : vector<8x64xf32> to vector<8x64xbf16>
    %cst_42 = arith.constant dense<0.000000e+00> : vector<8x128xf32>
    %87 = tpu.matmul %86, %83, %cst_42 {dimension_numbers = #tpu.dot_dimension_numbers<[1], [0], [0], [1], [0, 0, 1, 1], [], []>} : vector<8x64xbf16>, vector<64x128xbf16>, vector<8x128xf32> -> vector<8x128xf32>
    %88 = vector.broadcast %85 : vector<1x128xf32> to vector<8x128xf32>
    %89 = arith.addf %87, %88 : vector<8x128xf32>
    %cst_43 = arith.constant 5.000000e-01 : f32
    %90 = vector.broadcast %cst_43 : f32 to vector<8x128xf32>
    %91 = arith.mulf %90, %89 : vector<8x128xf32>
    %cst_44 = arith.constant 0.707106769 : f32
    %92 = vector.broadcast %cst_44 : f32 to vector<8x128xf32>
    %93 = arith.mulf %89, %92 : vector<8x128xf32>
    %cst_45 = arith.constant 0.000000e+00 : f32
    %94 = vector.broadcast %cst_45 : f32 to vector<8x128xf32>
    %95 = arith.cmpf oge, %93, %94 : vector<8x128xf32>
    %cst_46 = arith.constant 1.000000e+00 : f32
    %cst_47 = arith.constant -1.000000e+00 : f32
    %96 = vector.broadcast %cst_46 : f32 to vector<8x128xf32>
    %97 = vector.broadcast %cst_47 : f32 to vector<8x128xf32>
    %98 = arith.select %95, %96, %97 : vector<8x128xi1>, vector<8x128xf32>
    %99 = math.absf %93 : vector<8x128xf32>
    %cst_48 = arith.constant 0.327591091 : f32
    %100 = vector.broadcast %cst_48 : f32 to vector<8x128xf32>
    %101 = arith.mulf %100, %99 : vector<8x128xf32>
    %cst_49 = arith.constant 1.000000e+00 : f32
    %102 = vector.broadcast %cst_49 : f32 to vector<8x128xf32>
    %103 = arith.addf %102, %101 : vector<8x128xf32>
    %104 = tpu.reciprocal %103 {approx = true} : vector<8x128xf32> -> vector<8x128xf32>
    %cst_50 = arith.constant 1.06140542 : f32
    %105 = vector.broadcast %cst_50 : f32 to vector<8x128xf32>
    %106 = arith.mulf %105, %104 : vector<8x128xf32>
    %cst_51 = arith.constant -1.45315206 : f32
    %107 = vector.broadcast %cst_51 : f32 to vector<8x128xf32>
    %108 = arith.addf %106, %107 : vector<8x128xf32>
    %109 = arith.mulf %108, %104 : vector<8x128xf32>
    %cst_52 = arith.constant 1.42141378 : f32
    %110 = vector.broadcast %cst_52 : f32 to vector<8x128xf32>
    %111 = arith.addf %109, %110 : vector<8x128xf32>
    %112 = arith.mulf %111, %104 : vector<8x128xf32>
    %cst_53 = arith.constant -0.284496725 : f32
    %113 = vector.broadcast %cst_53 : f32 to vector<8x128xf32>
    %114 = arith.addf %112, %113 : vector<8x128xf32>
    %115 = arith.mulf %114, %104 : vector<8x128xf32>
    %cst_54 = arith.constant 0.254829586 : f32
    %116 = vector.broadcast %cst_54 : f32 to vector<8x128xf32>
    %117 = arith.addf %115, %116 : vector<8x128xf32>
    %118 = arith.mulf %117, %104 : vector<8x128xf32>
    %cst_55 = arith.constant 0.000000e+00 : f32
    %119 = vector.broadcast %cst_55 : f32 to vector<8x128xf32>
    %120 = arith.subf %119, %99 : vector<8x128xf32>
    %121 = arith.mulf %120, %99 : vector<8x128xf32>
    %122 = math.exp %121 : vector<8x128xf32>
    %123 = arith.mulf %118, %122 : vector<8x128xf32>
    %cst_56 = arith.constant 1.000000e+00 : f32
    %124 = vector.broadcast %cst_56 : f32 to vector<8x128xf32>
    %125 = arith.subf %124, %123 : vector<8x128xf32>
    %126 = arith.mulf %98, %125 : vector<8x128xf32>
    %cst_57 = arith.constant 1.000000e+00 : f32
    %127 = vector.broadcast %cst_57 : f32 to vector<8x128xf32>
    %128 = arith.addf %127, %126 : vector<8x128xf32>
    %129 = arith.mulf %91, %128 : vector<8x128xf32>
    %c0_58 = arith.constant 0 : index
    %c0_59 = arith.constant 0 : index
    %c0_60 = arith.constant 0 : index
    %130 = vector.load %arg11[%c0_58, %c0_59, %c0_60] : memref<2x128x64xbf16, #tpu.memory_space<vmem>>, vector<1x128x64xbf16>
    %131 = vector.shape_cast %130 : vector<1x128x64xbf16> to vector<128x64xbf16>
    %c0_61 = arith.constant 0 : index
    %c0_62 = arith.constant 0 : index
    %c0_63 = arith.constant 0 : index
    %132 = vector.load %arg12[%c0_61, %c0_62, %c0_63] : memref<2x1x64xf32, #tpu.memory_space<vmem>>, vector<1x1x64xf32>
    %133 = vector.shape_cast %132 : vector<1x1x64xf32> to vector<1x64xf32>
    %134 = arith.truncf %129 : vector<8x128xf32> to vector<8x128xbf16>
    %cst_64 = arith.constant dense<0.000000e+00> : vector<8x64xf32>
    %135 = tpu.matmul %134, %131, %cst_64 {dimension_numbers = #tpu.dot_dimension_numbers<[1], [0], [0], [1], [0, 0, 1, 1], [], []>} : vector<8x128xbf16>, vector<128x64xbf16>, vector<8x64xf32> -> vector<8x64xf32>
    %136 = vector.broadcast %133 : vector<1x64xf32> to vector<8x64xf32>
    %137 = arith.addf %135, %136 : vector<8x64xf32>
    %138 = arith.addf %81, %137 : vector<8x64xf32>
    %c0_65 = arith.constant 0 : index
    %c0_66 = arith.constant 0 : index
    %c0_67 = arith.constant 0 : index
    %139 = vector.load %arg13[%c0_65, %c0_66, %c0_67] : memref<2x1x64xf32, #tpu.memory_space<vmem>>, vector<1x1x64xf32>
    %140 = vector.shape_cast %139 : vector<1x1x64xf32> to vector<1x64xf32>
    %c0_68 = arith.constant 0 : index
    %c0_69 = arith.constant 0 : index
    %c0_70 = arith.constant 0 : index
    %141 = vector.load %arg14[%c0_68, %c0_69, %c0_70] : memref<2x1x64xf32, #tpu.memory_space<vmem>>, vector<1x1x64xf32>
    %142 = vector.shape_cast %141 : vector<1x1x64xf32> to vector<1x64xf32>
    %cst_71 = arith.constant dense<0.000000e+00> : vector<8xf32>
    %143 = vector.multi_reduction <add>, %138, %cst_71 [1] : vector<8x64xf32> to vector<8xf32>
    %144 = vector.shape_cast %143 : vector<8xf32> to vector<8x1xf32>
    %cst_72 = arith.constant 6.400000e+01 : f32
    %145 = vector.broadcast %cst_72 : f32 to vector<8x1xf32>
    %146 = arith.divf %144, %145 : vector<8x1xf32>
    %147 = vector.broadcast %146 : vector<8x1xf32> to vector<8x64xf32>
    %148 = arith.subf %138, %147 : vector<8x64xf32>
    %149 = arith.mulf %148, %148 : vector<8x64xf32>
    %cst_73 = arith.constant dense<0.000000e+00> : vector<8xf32>
    %150 = vector.multi_reduction <add>, %149, %cst_73 [1] : vector<8x64xf32> to vector<8xf32>
    %151 = vector.shape_cast %150 : vector<8xf32> to vector<8x1xf32>
    %cst_74 = arith.constant 6.400000e+01 : f32
    %152 = vector.broadcast %cst_74 : f32 to vector<8x1xf32>
    %153 = arith.divf %151, %152 : vector<8x1xf32>
    %154 = vector.broadcast %146 : vector<8x1xf32> to vector<8x64xf32>
    %155 = arith.subf %138, %154 : vector<8x64xf32>
    %cst_75 = arith.constant 9.99999974E-6 : f32
    %156 = vector.broadcast %cst_75 : f32 to vector<8x1xf32>
    %157 = arith.addf %153, %156 : vector<8x1xf32>
    %158 = math.rsqrt %157 : vector<8x1xf32>
    %159 = vector.broadcast %158 : vector<8x1xf32> to vector<8x64xf32>
    %160 = arith.mulf %155, %159 : vector<8x64xf32>
    %161 = vector.broadcast %140 : vector<1x64xf32> to vector<8x64xf32>
    %162 = arith.mulf %160, %161 : vector<8x64xf32>
    %163 = vector.broadcast %142 : vector<1x64xf32> to vector<8x64xf32>
    %164 = arith.addf %162, %163 : vector<8x64xf32>
    %c1 = arith.constant 1 : index
    %c0_76 = arith.constant 0 : index
    %c0_77 = arith.constant 0 : index
    %165 = vector.load %arg3[%c1, %c0_76, %c0_77] : memref<2x64x192xbf16, #tpu.memory_space<vmem>>, vector<1x64x192xbf16>
    %166 = vector.shape_cast %165 : vector<1x64x192xbf16> to vector<64x192xbf16>
    %c1_78 = arith.constant 1 : index
    %c0_79 = arith.constant 0 : index
    %c0_80 = arith.constant 0 : index
    %167 = vector.load %arg4[%c1_78, %c0_79, %c0_80] : memref<2x1x192xf32, #tpu.memory_space<vmem>>, vector<1x1x192xf32>
    %168 = vector.shape_cast %167 : vector<1x1x192xf32> to vector<1x192xf32>
    %169 = arith.truncf %164 : vector<8x64xf32> to vector<8x64xbf16>
    %cst_81 = arith.constant dense<0.000000e+00> : vector<8x192xf32>
    %170 = tpu.matmul %169, %166, %cst_81 {dimension_numbers = #tpu.dot_dimension_numbers<[1], [0], [0], [1], [0, 0, 1, 1], [], []>} : vector<8x64xbf16>, vector<64x192xbf16>, vector<8x192xf32> -> vector<8x192xf32>
    %171 = vector.broadcast %168 : vector<1x192xf32> to vector<8x192xf32>
    %172 = arith.addf %170, %171 : vector<8x192xf32>
    %173 = tpu.transpose %172, [1, 0] : vector<8x192xf32> -> vector<192x8xf32>
    %174 = vector.extract_strided_slice %173 {offsets = [0, 0], sizes = [64, 8], strides = [1, 1]} : vector<192x8xf32> to vector<64x8xf32>
    %175 = vector.shape_cast %174 : vector<64x8xf32> to vector<4x16x8xf32>
    %176 = vector.extract_strided_slice %173 {offsets = [64, 0], sizes = [64, 8], strides = [1, 1]} : vector<192x8xf32> to vector<64x8xf32>
    %177 = vector.shape_cast %176 : vector<64x8xf32> to vector<4x16x8xf32>
    %178 = arith.truncf %177 : vector<4x16x8xf32> to vector<4x16x8xbf16>
    %179 = vector.extract_strided_slice %173 {offsets = [128, 0], sizes = [64, 8], strides = [1, 1]} : vector<192x8xf32> to vector<64x8xf32>
    %180 = vector.shape_cast %179 : vector<64x8xf32> to vector<4x16x8xf32>
    %181 = arith.truncf %180 : vector<4x16x8xf32> to vector<4x16x8xbf16>
    %182 = tpu.transpose %175, [0, 2, 1] : vector<4x16x8xf32> -> vector<4x8x16xf32>
    %183 = arith.truncf %182 : vector<4x8x16xf32> to vector<4x8x16xbf16>
    "tpu.trace_start"() <{level = 10 : i32, message = "hsd,hdk->hsk"}> : () -> ()
    %cst_82 = arith.constant dense<0.000000e+00> : vector<4x8x8xf32>
    %184 = tpu.matmul %183, %178, %cst_82 {dimension_numbers = #tpu.dot_dimension_numbers<[2], [1], [1], [2], [0, 0, 0, 1, 1, 2], [0], [0]>} : vector<4x8x16xbf16>, vector<4x16x8xbf16>, vector<4x8x8xf32> -> vector<4x8x8xf32>
    "tpu.trace_stop"() : () -> ()
    %cst_83 = arith.constant 2.500000e-01 : f32
    %185 = vector.broadcast %cst_83 : f32 to vector<4x8x8xf32>
    %186 = arith.mulf %184, %185 : vector<4x8x8xf32>
    %187 = vector.broadcast %6 : vector<1x1x8xf32> to vector<4x8x8xf32>
    %188 = arith.addf %186, %187 : vector<4x8x8xf32>
    %189 = vector.shape_cast %188 : vector<4x8x8xf32> to vector<32x8xf32>
    %cst_84 = arith.constant dense<0xFF800000> : vector<32xf32>
    %190 = vector.multi_reduction <maximumf>, %189, %cst_84 [1] : vector<32x8xf32> to vector<32xf32>
    %191 = vector.shape_cast %190 : vector<32xf32> to vector<32x1xf32>
    %192 = vector.broadcast %191 : vector<32x1xf32> to vector<32x8xf32>
    %193 = arith.subf %189, %192 : vector<32x8xf32>
    %194 = math.exp %193 : vector<32x8xf32>
    %cst_85 = arith.constant dense<0.000000e+00> : vector<32xf32>
    %195 = vector.multi_reduction <add>, %194, %cst_85 [1] : vector<32x8xf32> to vector<32xf32>
    %196 = vector.shape_cast %195 : vector<32xf32> to vector<32x1xf32>
    %197 = tpu.reciprocal %196 {approx = true} : vector<32x1xf32> -> vector<32x1xf32>
    %198 = vector.broadcast %197 : vector<32x1xf32> to vector<32x8xf32>
    %199 = arith.mulf %194, %198 : vector<32x8xf32>
    %200 = vector.shape_cast %199 : vector<32x8xf32> to vector<4x8x8xf32>
    %201 = arith.truncf %200 : vector<4x8x8xf32> to vector<4x8x8xbf16>
    "tpu.trace_start"() <{level = 10 : i32, message = "hdk,hsk->hds"}> : () -> ()
    %cst_86 = arith.constant dense<0.000000e+00> : vector<4x16x8xf32>
    %202 = tpu.matmul %181, %201, %cst_86 {dimension_numbers = #tpu.dot_dimension_numbers<[2], [2], [1], [1], [0, 0, 0, 1, 1, 1], [0], [0]>} : vector<4x16x8xbf16>, vector<4x8x8xbf16>, vector<4x16x8xf32> -> vector<4x16x8xf32>
    "tpu.trace_stop"() : () -> ()
    %203 = vector.shape_cast %202 : vector<4x16x8xf32> to vector<64x8xf32>
    %204 = tpu.transpose %203, [1, 0] : vector<64x8xf32> -> vector<8x64xf32>
    %c1_87 = arith.constant 1 : index
    %c0_88 = arith.constant 0 : index
    %c0_89 = arith.constant 0 : index
    %205 = vector.load %arg5[%c1_87, %c0_88, %c0_89] : memref<2x64x64xbf16, #tpu.memory_space<vmem>>, vector<1x64x64xbf16>
    %206 = vector.shape_cast %205 : vector<1x64x64xbf16> to vector<64x64xbf16>
    %c1_90 = arith.constant 1 : index
    %c0_91 = arith.constant 0 : index
    %c0_92 = arith.constant 0 : index
    %207 = vector.load %arg6[%c1_90, %c0_91, %c0_92] : memref<2x1x64xf32, #tpu.memory_space<vmem>>, vector<1x1x64xf32>
    %208 = vector.shape_cast %207 : vector<1x1x64xf32> to vector<1x64xf32>
    %209 = arith.truncf %204 : vector<8x64xf32> to vector<8x64xbf16>
    %cst_93 = arith.constant dense<0.000000e+00> : vector<8x64xf32>
    %210 = tpu.matmul %209, %206, %cst_93 {dimension_numbers = #tpu.dot_dimension_numbers<[1], [0], [0], [1], [0, 0, 1, 1], [], []>} : vector<8x64xbf16>, vector<64x64xbf16>, vector<8x64xf32> -> vector<8x64xf32>
    %211 = vector.broadcast %208 : vector<1x64xf32> to vector<8x64xf32>
    %212 = arith.addf %210, %211 : vector<8x64xf32>
    %213 = arith.addf %164, %212 : vector<8x64xf32>
    %c1_94 = arith.constant 1 : index
    %c0_95 = arith.constant 0 : index
    %c0_96 = arith.constant 0 : index
    %214 = vector.load %arg7[%c1_94, %c0_95, %c0_96] : memref<2x1x64xf32, #tpu.memory_space<vmem>>, vector<1x1x64xf32>
    %215 = vector.shape_cast %214 : vector<1x1x64xf32> to vector<1x64xf32>
    %c1_97 = arith.constant 1 : index
    %c0_98 = arith.constant 0 : index
    %c0_99 = arith.constant 0 : index
    %216 = vector.load %arg8[%c1_97, %c0_98, %c0_99] : memref<2x1x64xf32, #tpu.memory_space<vmem>>, vector<1x1x64xf32>
    %217 = vector.shape_cast %216 : vector<1x1x64xf32> to vector<1x64xf32>
    %cst_100 = arith.constant dense<0.000000e+00> : vector<8xf32>
    %218 = vector.multi_reduction <add>, %213, %cst_100 [1] : vector<8x64xf32> to vector<8xf32>
    %219 = vector.shape_cast %218 : vector<8xf32> to vector<8x1xf32>
    %cst_101 = arith.constant 6.400000e+01 : f32
    %220 = vector.broadcast %cst_101 : f32 to vector<8x1xf32>
    %221 = arith.divf %219, %220 : vector<8x1xf32>
    %222 = vector.broadcast %221 : vector<8x1xf32> to vector<8x64xf32>
    %223 = arith.subf %213, %222 : vector<8x64xf32>
    %224 = arith.mulf %223, %223 : vector<8x64xf32>
    %cst_102 = arith.constant dense<0.000000e+00> : vector<8xf32>
    %225 = vector.multi_reduction <add>, %224, %cst_102 [1] : vector<8x64xf32> to vector<8xf32>
    %226 = vector.shape_cast %225 : vector<8xf32> to vector<8x1xf32>
    %cst_103 = arith.constant 6.400000e+01 : f32
    %227 = vector.broadcast %cst_103 : f32 to vector<8x1xf32>
    %228 = arith.divf %226, %227 : vector<8x1xf32>
    %229 = vector.broadcast %221 : vector<8x1xf32> to vector<8x64xf32>
    %230 = arith.subf %213, %229 : vector<8x64xf32>
    %cst_104 = arith.constant 9.99999974E-6 : f32
    %231 = vector.broadcast %cst_104 : f32 to vector<8x1xf32>
    %232 = arith.addf %228, %231 : vector<8x1xf32>
    %233 = math.rsqrt %232 : vector<8x1xf32>
    %234 = vector.broadcast %233 : vector<8x1xf32> to vector<8x64xf32>
    %235 = arith.mulf %230, %234 : vector<8x64xf32>
    %236 = vector.broadcast %215 : vector<1x64xf32> to vector<8x64xf32>
    %237 = arith.mulf %235, %236 : vector<8x64xf32>
    %238 = vector.broadcast %217 : vector<1x64xf32> to vector<8x64xf32>
    %239 = arith.addf %237, %238 : vector<8x64xf32>
    %c1_105 = arith.constant 1 : index
    %c0_106 = arith.constant 0 : index
    %c0_107 = arith.constant 0 : index
    %240 = vector.load %arg9[%c1_105, %c0_106, %c0_107] : memref<2x64x128xbf16, #tpu.memory_space<vmem>>, vector<1x64x128xbf16>
    %241 = vector.shape_cast %240 : vector<1x64x128xbf16> to vector<64x128xbf16>
    %c1_108 = arith.constant 1 : index
    %c0_109 = arith.constant 0 : index
    %c0_110 = arith.constant 0 : index
    %242 = vector.load %arg10[%c1_108, %c0_109, %c0_110] : memref<2x1x128xf32, #tpu.memory_space<vmem>>, vector<1x1x128xf32>
    %243 = vector.shape_cast %242 : vector<1x1x128xf32> to vector<1x128xf32>
    %244 = arith.truncf %239 : vector<8x64xf32> to vector<8x64xbf16>
    %cst_111 = arith.constant dense<0.000000e+00> : vector<8x128xf32>
    %245 = tpu.matmul %244, %241, %cst_111 {dimension_numbers = #tpu.dot_dimension_numbers<[1], [0], [0], [1], [0, 0, 1, 1], [], []>} : vector<8x64xbf16>, vector<64x128xbf16>, vector<8x128xf32> -> vector<8x128xf32>
    %246 = vector.broadcast %243 : vector<1x128xf32> to vector<8x128xf32>
    %247 = arith.addf %245, %246 : vector<8x128xf32>
    %cst_112 = arith.constant 5.000000e-01 : f32
    %248 = vector.broadcast %cst_112 : f32 to vector<8x128xf32>
    %249 = arith.mulf %248, %247 : vector<8x128xf32>
    %cst_113 = arith.constant 0.707106769 : f32
    %250 = vector.broadcast %cst_113 : f32 to vector<8x128xf32>
    %251 = arith.mulf %247, %250 : vector<8x128xf32>
    %cst_114 = arith.constant 0.000000e+00 : f32
    %252 = vector.broadcast %cst_114 : f32 to vector<8x128xf32>
    %253 = arith.cmpf oge, %251, %252 : vector<8x128xf32>
    %cst_115 = arith.constant 1.000000e+00 : f32
    %cst_116 = arith.constant -1.000000e+00 : f32
    %254 = vector.broadcast %cst_115 : f32 to vector<8x128xf32>
    %255 = vector.broadcast %cst_116 : f32 to vector<8x128xf32>
    %256 = arith.select %253, %254, %255 : vector<8x128xi1>, vector<8x128xf32>
    %257 = math.absf %251 : vector<8x128xf32>
    %cst_117 = arith.constant 0.327591091 : f32
    %258 = vector.broadcast %cst_117 : f32 to vector<8x128xf32>
    %259 = arith.mulf %258, %257 : vector<8x128xf32>
    %cst_118 = arith.constant 1.000000e+00 : f32
    %260 = vector.broadcast %cst_118 : f32 to vector<8x128xf32>
    %261 = arith.addf %260, %259 : vector<8x128xf32>
    %262 = tpu.reciprocal %261 {approx = true} : vector<8x128xf32> -> vector<8x128xf32>
    %cst_119 = arith.constant 1.06140542 : f32
    %263 = vector.broadcast %cst_119 : f32 to vector<8x128xf32>
    %264 = arith.mulf %263, %262 : vector<8x128xf32>
    %cst_120 = arith.constant -1.45315206 : f32
    %265 = vector.broadcast %cst_120 : f32 to vector<8x128xf32>
    %266 = arith.addf %264, %265 : vector<8x128xf32>
    %267 = arith.mulf %266, %262 : vector<8x128xf32>
    %cst_121 = arith.constant 1.42141378 : f32
    %268 = vector.broadcast %cst_121 : f32 to vector<8x128xf32>
    %269 = arith.addf %267, %268 : vector<8x128xf32>
    %270 = arith.mulf %269, %262 : vector<8x128xf32>
    %cst_122 = arith.constant -0.284496725 : f32
    %271 = vector.broadcast %cst_122 : f32 to vector<8x128xf32>
    %272 = arith.addf %270, %271 : vector<8x128xf32>
    %273 = arith.mulf %272, %262 : vector<8x128xf32>
    %cst_123 = arith.constant 0.254829586 : f32
    %274 = vector.broadcast %cst_123 : f32 to vector<8x128xf32>
    %275 = arith.addf %273, %274 : vector<8x128xf32>
    %276 = arith.mulf %275, %262 : vector<8x128xf32>
    %cst_124 = arith.constant 0.000000e+00 : f32
    %277 = vector.broadcast %cst_124 : f32 to vector<8x128xf32>
    %278 = arith.subf %277, %257 : vector<8x128xf32>
    %279 = arith.mulf %278, %257 : vector<8x128xf32>
    %280 = math.exp %279 : vector<8x128xf32>
    %281 = arith.mulf %276, %280 : vector<8x128xf32>
    %cst_125 = arith.constant 1.000000e+00 : f32
    %282 = vector.broadcast %cst_125 : f32 to vector<8x128xf32>
    %283 = arith.subf %282, %281 : vector<8x128xf32>
    %284 = arith.mulf %256, %283 : vector<8x128xf32>
    %cst_126 = arith.constant 1.000000e+00 : f32
    %285 = vector.broadcast %cst_126 : f32 to vector<8x128xf32>
    %286 = arith.addf %285, %284 : vector<8x128xf32>
    %287 = arith.mulf %249, %286 : vector<8x128xf32>
    %c1_127 = arith.constant 1 : index
    %c0_128 = arith.constant 0 : index
    %c0_129 = arith.constant 0 : index
    %288 = vector.load %arg11[%c1_127, %c0_128, %c0_129] : memref<2x128x64xbf16, #tpu.memory_space<vmem>>, vector<1x128x64xbf16>
    %289 = vector.shape_cast %288 : vector<1x128x64xbf16> to vector<128x64xbf16>
    %c1_130 = arith.constant 1 : index
    %c0_131 = arith.constant 0 : index
    %c0_132 = arith.constant 0 : index
    %290 = vector.load %arg12[%c1_130, %c0_131, %c0_132] : memref<2x1x64xf32, #tpu.memory_space<vmem>>, vector<1x1x64xf32>
    %291 = vector.shape_cast %290 : vector<1x1x64xf32> to vector<1x64xf32>
    %292 = arith.truncf %287 : vector<8x128xf32> to vector<8x128xbf16>
    %cst_133 = arith.constant dense<0.000000e+00> : vector<8x64xf32>
    %293 = tpu.matmul %292, %289, %cst_133 {dimension_numbers = #tpu.dot_dimension_numbers<[1], [0], [0], [1], [0, 0, 1, 1], [], []>} : vector<8x128xbf16>, vector<128x64xbf16>, vector<8x64xf32> -> vector<8x64xf32>
    %294 = vector.broadcast %291 : vector<1x64xf32> to vector<8x64xf32>
    %295 = arith.addf %293, %294 : vector<8x64xf32>
    %296 = arith.addf %239, %295 : vector<8x64xf32>
    %c1_134 = arith.constant 1 : index
    %c0_135 = arith.constant 0 : index
    %c0_136 = arith.constant 0 : index
    %297 = vector.load %arg13[%c1_134, %c0_135, %c0_136] : memref<2x1x64xf32, #tpu.memory_space<vmem>>, vector<1x1x64xf32>
    %298 = vector.shape_cast %297 : vector<1x1x64xf32> to vector<1x64xf32>
    %c1_137 = arith.constant 1 : index
    %c0_138 = arith.constant 0 : index
    %c0_139 = arith.constant 0 : index
    %299 = vector.load %arg14[%c1_137, %c0_138, %c0_139] : memref<2x1x64xf32, #tpu.memory_space<vmem>>, vector<1x1x64xf32>
    %300 = vector.shape_cast %299 : vector<1x1x64xf32> to vector<1x64xf32>
    %cst_140 = arith.constant dense<0.000000e+00> : vector<8xf32>
    %301 = vector.multi_reduction <add>, %296, %cst_140 [1] : vector<8x64xf32> to vector<8xf32>
    %302 = vector.shape_cast %301 : vector<8xf32> to vector<8x1xf32>
    %cst_141 = arith.constant 6.400000e+01 : f32
    %303 = vector.broadcast %cst_141 : f32 to vector<8x1xf32>
    %304 = arith.divf %302, %303 : vector<8x1xf32>
    %305 = vector.broadcast %304 : vector<8x1xf32> to vector<8x64xf32>
    %306 = arith.subf %296, %305 : vector<8x64xf32>
    %307 = arith.mulf %306, %306 : vector<8x64xf32>
    %cst_142 = arith.constant dense<0.000000e+00> : vector<8xf32>
    %308 = vector.multi_reduction <add>, %307, %cst_142 [1] : vector<8x64xf32> to vector<8xf32>
    %309 = vector.shape_cast %308 : vector<8xf32> to vector<8x1xf32>
    %cst_143 = arith.constant 6.400000e+01 : f32
    %310 = vector.broadcast %cst_143 : f32 to vector<8x1xf32>
    %311 = arith.divf %309, %310 : vector<8x1xf32>
    %312 = vector.broadcast %304 : vector<8x1xf32> to vector<8x64xf32>
    %313 = arith.subf %296, %312 : vector<8x64xf32>
    %cst_144 = arith.constant 9.99999974E-6 : f32
    %314 = vector.broadcast %cst_144 : f32 to vector<8x1xf32>
    %315 = arith.addf %311, %314 : vector<8x1xf32>
    %316 = math.rsqrt %315 : vector<8x1xf32>
    %317 = vector.broadcast %316 : vector<8x1xf32> to vector<8x64xf32>
    %318 = arith.mulf %313, %317 : vector<8x64xf32>
    %319 = vector.broadcast %298 : vector<1x64xf32> to vector<8x64xf32>
    %320 = arith.mulf %318, %319 : vector<8x64xf32>
    %321 = vector.broadcast %300 : vector<1x64xf32> to vector<8x64xf32>
    %322 = arith.addf %320, %321 : vector<8x64xf32>
    %323 = vector.extract_strided_slice %322 {offsets = [0, 0], sizes = [1, 64], strides = [1, 1]} : vector<8x64xf32> to vector<1x64xf32>
    %c0_145 = arith.constant 0 : index
    %c0_146 = arith.constant 0 : index
    %324 = vector.load %arg15[%c0_145, %c0_146] : memref<1x64xf32, #tpu.memory_space<vmem>>, vector<1x64xf32>
    %c0_147 = arith.constant 0 : index
    %c0_148 = arith.constant 0 : index
    %325 = vector.load %arg16[%c0_147, %c0_148] : memref<1x64xf32, #tpu.memory_space<vmem>>, vector<1x64xf32>
    %cst_149 = arith.constant dense<0.000000e+00> : vector<1xf32>
    %326 = vector.multi_reduction <add>, %323, %cst_149 [1] : vector<1x64xf32> to vector<1xf32>
    %327 = vector.shape_cast %326 : vector<1xf32> to vector<1x1xf32>
    %cst_150 = arith.constant 6.400000e+01 : f32
    %328 = vector.broadcast %cst_150 : f32 to vector<1x1xf32>
    %329 = arith.divf %327, %328 : vector<1x1xf32>
    %330 = vector.broadcast %329 : vector<1x1xf32> to vector<1x64xf32>
    %331 = arith.subf %323, %330 : vector<1x64xf32>
    %332 = arith.mulf %331, %331 : vector<1x64xf32>
    %cst_151 = arith.constant dense<0.000000e+00> : vector<1xf32>
    %333 = vector.multi_reduction <add>, %332, %cst_151 [1] : vector<1x64xf32> to vector<1xf32>
    %334 = vector.shape_cast %333 : vector<1xf32> to vector<1x1xf32>
    %cst_152 = arith.constant 6.400000e+01 : f32
    %335 = vector.broadcast %cst_152 : f32 to vector<1x1xf32>
    %336 = arith.divf %334, %335 : vector<1x1xf32>
    %337 = vector.broadcast %329 : vector<1x1xf32> to vector<1x64xf32>
    %338 = arith.subf %323, %337 : vector<1x64xf32>
    %cst_153 = arith.constant 9.99999974E-6 : f32
    %339 = vector.broadcast %cst_153 : f32 to vector<1x1xf32>
    %340 = arith.addf %336, %339 : vector<1x1xf32>
    %341 = math.rsqrt %340 : vector<1x1xf32>
    %342 = vector.broadcast %341 : vector<1x1xf32> to vector<1x64xf32>
    %343 = arith.mulf %338, %342 : vector<1x64xf32>
    %344 = arith.mulf %343, %324 : vector<1x64xf32>
    %345 = arith.addf %344, %325 : vector<1x64xf32>
    %c0_154 = arith.constant 0 : index
    %c0_155 = arith.constant 0 : index
    %346 = vector.load %arg17[%c0_154, %c0_155] : memref<64x512xbf16, #tpu.memory_space<vmem>>, vector<64x512xbf16>
    %c0_156 = arith.constant 0 : index
    %c0_157 = arith.constant 0 : index
    %347 = vector.load %arg18[%c0_156, %c0_157] : memref<1x512xf32, #tpu.memory_space<vmem>>, vector<1x512xf32>
    %348 = arith.truncf %345 : vector<1x64xf32> to vector<1x64xbf16>
    %cst_158 = arith.constant dense<0.000000e+00> : vector<1x512xf32>
    %349 = tpu.matmul %348, %346, %cst_158 {dimension_numbers = #tpu.dot_dimension_numbers<[1], [0], [0], [1], [0, 0, 1, 1], [], []>} : vector<1x64xbf16>, vector<64x512xbf16>, vector<1x512xf32> -> vector<1x512xf32>
    %350 = arith.addf %349, %347 : vector<1x512xf32>
    %cst_159 = arith.constant 0.000000e+00 : f32
    %351 = vector.broadcast %cst_159 : f32 to vector<1x512xf32>
    %352 = arith.maximumf %350, %351 : vector<1x512xf32>
    %c0_160 = arith.constant 0 : index
    %c0_161 = arith.constant 0 : index
    %353 = vector.load %arg19[%c0_160, %c0_161] : memref<512x256xbf16, #tpu.memory_space<vmem>>, vector<512x256xbf16>
    %c0_162 = arith.constant 0 : index
    %c0_163 = arith.constant 0 : index
    %354 = vector.load %arg20[%c0_162, %c0_163] : memref<1x256xf32, #tpu.memory_space<vmem>>, vector<1x256xf32>
    %355 = arith.truncf %352 : vector<1x512xf32> to vector<1x512xbf16>
    %cst_164 = arith.constant dense<0.000000e+00> : vector<1x256xf32>
    %356 = tpu.matmul %355, %353, %cst_164 {dimension_numbers = #tpu.dot_dimension_numbers<[1], [0], [0], [1], [0, 0, 1, 1], [], []>} : vector<1x512xbf16>, vector<512x256xbf16>, vector<1x256xf32> -> vector<1x256xf32>
    %357 = arith.addf %356, %354 : vector<1x256xf32>
    %cst_165 = arith.constant 0.000000e+00 : f32
    %358 = vector.broadcast %cst_165 : f32 to vector<1x256xf32>
    %359 = arith.maximumf %357, %358 : vector<1x256xf32>
    %c0_166 = arith.constant 0 : index
    %c0_167 = arith.constant 0 : index
    %360 = vector.load %arg21[%c0_166, %c0_167] : memref<256x128xbf16, #tpu.memory_space<vmem>>, vector<256x128xbf16>
    %c0_168 = arith.constant 0 : index
    %c0_169 = arith.constant 0 : index
    %361 = vector.load %arg22[%c0_168, %c0_169] : memref<1x128xf32, #tpu.memory_space<vmem>>, vector<1x128xf32>
    %362 = arith.truncf %359 : vector<1x256xf32> to vector<1x256xbf16>
    %cst_170 = arith.constant dense<0.000000e+00> : vector<1x128xf32>
    %363 = tpu.matmul %362, %360, %cst_170 {dimension_numbers = #tpu.dot_dimension_numbers<[1], [0], [0], [1], [0, 0, 1, 1], [], []>} : vector<1x256xbf16>, vector<256x128xbf16>, vector<1x128xf32> -> vector<1x128xf32>
    %364 = arith.addf %363, %361 : vector<1x128xf32>
    %365 = vector.shape_cast %364 : vector<1x128xf32> to vector<1x1x128xf32>
    %c0_171 = arith.constant 0 : index
    %c0_172 = arith.constant 0 : index
    %c0_173 = arith.constant 0 : index
    %366 = vector.load %arg23[%c0_171, %c0_172, %c0_173] : memref<1x1x128xf32, #tpu.memory_space<vmem>>, vector<1x1x128xf32>
    tpu.vector_store %arg23[%c0_171, %c0_172, %c0_173], %365 {strides = array<i32>} : memref<1x1x128xf32, #tpu.memory_space<vmem>>, vector<1x1x128xf32>,
    return
  }
  func.func @transform_0(%arg0: i32) -> (i32, i32, i32) {
    %c0_i32 = arith.constant 0 : i32
    %c0_i32_0 = arith.constant 0 : i32
    %c0_i32_1 = arith.constant 0 : i32
    return %arg0, %c0_i32, %c0_i32_0 : i32, i32, i32
  }
  func.func @transform_1(%arg0: i32) -> (i32, i32, i32) {
    %c0_i32 = arith.constant 0 : i32
    %c0_i32_0 = arith.constant 0 : i32
    %c0_i32_1 = arith.constant 0 : i32
    return %arg0, %c0_i32, %c0_i32_0 : i32, i32, i32
  }
  func.func @transform_2(%arg0: i32) -> (i32, i32, i32) {
    %c0_i32 = arith.constant 0 : i32
    %c0_i32_0 = arith.constant 0 : i32
    %c0_i32_1 = arith.constant 0 : i32
    %c0_i32_2 = arith.constant 0 : i32
    return %c0_i32, %c0_i32_0, %c0_i32_1 : i32, i32, i32
  }
  func.func @transform_3(%arg0: i32) -> (i32, i32, i32) {
    %c0_i32 = arith.constant 0 : i32
    %c0_i32_0 = arith.constant 0 : i32
    %c0_i32_1 = arith.constant 0 : i32
    %c0_i32_2 = arith.constant 0 : i32
    return %c0_i32, %c0_i32_0, %c0_i32_1 : i32, i32, i32
  }
  func.func @transform_4(%arg0: i32) -> (i32, i32, i32) {
    %c0_i32 = arith.constant 0 : i32
    %c0_i32_0 = arith.constant 0 : i32
    %c0_i32_1 = arith.constant 0 : i32
    %c0_i32_2 = arith.constant 0 : i32
    return %c0_i32, %c0_i32_0, %c0_i32_1 : i32, i32, i32
  }
  func.func @transform_5(%arg0: i32) -> (i32, i32, i32) {
    %c0_i32 = arith.constant 0 : i32
    %c0_i32_0 = arith.constant 0 : i32
    %c0_i32_1 = arith.constant 0 : i32
    %c0_i32_2 = arith.constant 0 : i32
    return %c0_i32, %c0_i32_0, %c0_i32_1 : i32, i32, i32
  }
  func.func @transform_6(%arg0: i32) -> (i32, i32, i32) {
    %c0_i32 = arith.constant 0 : i32
    %c0_i32_0 = arith.constant 0 : i32
    %c0_i32_1 = arith.constant 0 : i32
    %c0_i32_2 = arith.constant 0 : i32
    return %c0_i32, %c0_i32_0, %c0_i32_1 : i32, i32, i32
  }
  func.func @transform_7(%arg0: i32) -> (i32, i32, i32) {
    %c0_i32 = arith.constant 0 : i32
    %c0_i32_0 = arith.constant 0 : i32
    %c0_i32_1 = arith.constant 0 : i32
    %c0_i32_2 = arith.constant 0 : i32
    return %c0_i32, %c0_i32_0, %c0_i32_1 : i32, i32, i32
  }
  func.func @transform_8(%arg0: i32) -> (i32, i32, i32) {
    %c0_i32 = arith.constant 0 : i32
    %c0_i32_0 = arith.constant 0 : i32
    %c0_i32_1 = arith.constant 0 : i32
    %c0_i32_2 = arith.constant 0 : i32
    return %c0_i32, %c0_i32_0, %c0_i32_1 : i32, i32, i32
  }
  func.func @transform_9(%arg0: i32) -> (i32, i32, i32) {
    %c0_i32 = arith.constant 0 : i32
    %c0_i32_0 = arith.constant 0 : i32
    %c0_i32_1 = arith.constant 0 : i32
    %c0_i32_2 = arith.constant 0 : i32
    return %c0_i32, %c0_i32_0, %c0_i32_1 : i32, i32, i32
  }
  func.func @transform_10(%arg0: i32) -> (i32, i32, i32) {
    %c0_i32 = arith.constant 0 : i32
    %c0_i32_0 = arith.constant 0 : i32
    %c0_i32_1 = arith.constant 0 : i32
    %c0_i32_2 = arith.constant 0 : i32
    return %c0_i32, %c0_i32_0, %c0_i32_1 : i32, i32, i32
  }
  func.func @transform_11(%arg0: i32) -> (i32, i32, i32) {
    %c0_i32 = arith.constant 0 : i32
    %c0_i32_0 = arith.constant 0 : i32
    %c0_i32_1 = arith.constant 0 : i32
    %c0_i32_2 = arith.constant 0 : i32
    return %c0_i32, %c0_i32_0, %c0_i32_1 : i32, i32, i32
  }
  func.func @transform_12(%arg0: i32) -> (i32, i32, i32) {
    %c0_i32 = arith.constant 0 : i32
    %c0_i32_0 = arith.constant 0 : i32
    %c0_i32_1 = arith.constant 0 : i32
    %c0_i32_2 = arith.constant 0 : i32
    return %c0_i32, %c0_i32_0, %c0_i32_1 : i32, i32, i32
  }
  func.func @transform_13(%arg0: i32) -> (i32, i32, i32) {
    %c0_i32 = arith.constant 0 : i32
    %c0_i32_0 = arith.constant 0 : i32
    %c0_i32_1 = arith.constant 0 : i32
    %c0_i32_2 = arith.constant 0 : i32
    return %c0_i32, %c0_i32_0, %c0_i32_1 : i32, i32, i32
  }
  func.func @transform_14(%arg0: i32) -> (i32, i32) {
    %c0_i32 = arith.constant 0 : i32
    %c0_i32_0 = arith.constant 0 : i32
    %c0_i32_1 = arith.constant 0 : i32
    return %c0_i32, %c0_i32_0 : i32, i32
  }
  func.func @transform_15(%arg0: i32) -> (i32, i32) {
    %c0_i32 = arith.constant 0 : i32
    %c0_i32_0 = arith.constant 0 : i32
    %c0_i32_1 = arith.constant 0 : i32
    return %c0_i32, %c0_i32_0 : i32, i32
  }
  func.func @transform_16(%arg0: i32) -> (i32, i32) {
    %c0_i32 = arith.constant 0 : i32
    %c0_i32_0 = arith.constant 0 : i32
    %c0_i32_1 = arith.constant 0 : i32
    return %c0_i32, %c0_i32_0 : i32, i32
  }
  func.func @transform_17(%arg0: i32) -> (i32, i32) {
    %c0_i32 = arith.constant 0 : i32
    %c0_i32_0 = arith.constant 0 : i32
    %c0_i32_1 = arith.constant 0 : i32
    return %c0_i32, %c0_i32_0 : i32, i32
  }
  func.func @transform_18(%arg0: i32) -> (i32, i32) {
    %c0_i32 = arith.constant 0 : i32
    %c0_i32_0 = arith.constant 0 : i32
    %c0_i32_1 = arith.constant 0 : i32
    return %c0_i32, %c0_i32_0 : i32, i32
  }
  func.func @transform_19(%arg0: i32) -> (i32, i32) {
    %c0_i32 = arith.constant 0 : i32
    %c0_i32_0 = arith.constant 0 : i32
    %c0_i32_1 = arith.constant 0 : i32
    return %c0_i32, %c0_i32_0 : i32, i32
  }
  func.func @transform_20(%arg0: i32) -> (i32, i32) {
    %c0_i32 = arith.constant 0 : i32
    %c0_i32_0 = arith.constant 0 : i32
    %c0_i32_1 = arith.constant 0 : i32
    return %c0_i32, %c0_i32_0 : i32, i32
  }
  func.func @transform_21(%arg0: i32) -> (i32, i32) {
    %c0_i32 = arith.constant 0 : i32
    %c0_i32_0 = arith.constant 0 : i32
    %c0_i32_1 = arith.constant 0 : i32
    return %c0_i32, %c0_i32_0 : i32, i32
  }
  func.func @transform_22(%arg0: i32) -> (i32, i32, i32) {
    %c0_i32 = arith.constant 0 : i32
    %c0_i32_0 = arith.constant 0 : i32
    %c0_i32_1 = arith.constant 0 : i32
    return %arg0, %c0_i32, %c0_i32_0 : i32, i32, i32
  }
}

</mosaic_0001>

<bundles_post_ra>
// kernel: tpu_custom_call.1
= control target key start
LH: loop header
LB: loop body
LE: loop exit
PB: predicated region body
PF: predicated region fallthrough
CT: control target
= control target key end

     0   :  { %s7035_s0 = inlined_call_operand.hbm [shape: f32[2,8,64], index: 0, kind: input, shape index: {}]   ;;  %s7036_s1 = inlined_call_operand.hbm [shape: f32[2,1,8], index: 1, kind: input, shape index: {}]   ;;  %s7037_s2 = inlined_call_operand.vmem [shape: bf16[2,64,192], index: 2, kind: input, shape index: {}]   ;;  %s7038_s3 = inlined_call_operand.hbm [shape: f32[2,1,192], index: 3, kind: input, shape index: {}]   ;;  %s7039_s4 = inlined_call_operand.hbm [shape: bf16[2,64,64], index: 4, kind: input, shape index: {}]   ;;  %s7040_s5 = inlined_call_operand.hbm [shape: f32[2,1,64], index: 5, kind: input, shape index: {}]   ;;  %s7041_s6 = inlined_call_operand.hbm [shape: f32[2,1,64], index: 6, kind: input, shape index: {}]   ;;  %s7042_s7 = inlined_call_operand.hbm [shape: f32[2,1,64], index: 7, kind: input, shape index: {}]   ;;  %s7043_s8 = inlined_call_operand.hbm [shape: bf16[2,64,128], index: 8, kind: input, shape index: {}]   ;;  %s7044_s9 = inlined_call_operand.hbm [shape: f32[2,1,128], index: 9, kind: input, shape index: {}]   ;;  %s7045_s10 = inlined_call_operand.vmem [shape: bf16[2,128,64], index: 10, kind: input, shape index: {}]   ;;  %s7046_s11 = inlined_call_operand.hbm [shape: f32[2,1,64], index: 11, kind: input, shape index: {}]   ;;  %s7047_s12 = inlined_call_operand.hbm [shape: f32[2,1,64], index: 12, kind: input, shape index: {}]   ;;  %s7048_s13 = inlined_call_operand.hbm [shape: f32[2,1,64], index: 13, kind: input, shape index: {}]   ;;  %s7049_s14 = inlined_call_operand.hbm [shape: f32[1,64], index: 14, kind: input, shape index: {}]   ;;  %s7050_s15 = inlined_call_operand.hbm [shape: f32[1,64], index: 15, kind: input, shape index: {}]   ;;  %s7051_s16 = inlined_call_operand.hbm [shape: bf16[64,512], index: 16, kind: input, shape index: {}]   ;;  %s7052_s17 = inlined_call_operand.hbm [shape: f32[1,512], index: 17, kind: input, shape index: {}]   ;;  %s7053_s18 = inlined_call_operand.hbm [shape: bf16[512,256], index: 18, kind: input, shape index: {}]   ;;  %s7054_s19 = inlined_call_operand.vmem [shape: f32[1,256], index: 19, kind: input, shape index: {}]   ;;  %s7055_s20 = inlined_call_operand.vmem [shape: bf16[256,128], index: 20, kind: input, shape index: {}]   ;;  %s7056_s21 = inlined_call_operand.vmem [shape: f32[1,128], index: 21, kind: input, shape index: {}]   ;;  %s7057_s22 = inlined_call_operand.hbm [shape: f32[2,1,128], index: 22, kind: output, shape index: {}]  }
   0x1   :  { %7085 = sst [smem:[#allocation45_spill]] %s7035_s0 }
   0x2   :  { %7086 = sst [smem:[#allocation46_spill]] %s7036_s1 }
   0x3   :  { %7087 = sst [smem:[#allocation47_spill]] %s7037_s2 }
   0x4   :  { %7088 = sst [smem:[#allocation48_spill]] %s7038_s3 }
   0x5   :  { %7089 = sst [smem:[#allocation49_spill]] %s7039_s4 }
   0x6   :  { %7090 = sst [smem:[#allocation50_spill]] %s7040_s5 }
   0x7   :  { %7091 = sst [smem:[#allocation51_spill]] %s7041_s6 }
   0x8   :  { %7092 = sst [smem:[#allocation52_spill]] %s7042_s7 }
   0x9   :  { %7093 = sst [smem:[#allocation53_spill]] %s7043_s8 }
   0xa   :  { %7094 = sst [smem:[#allocation54_spill]] %s7044_s9 }
   0xb   :  { %7095 = sst [smem:[#allocation55_spill]] %s7045_s10 }
   0xc   :  { %7096 = sst [smem:[#allocation56_spill]] %s7046_s11 }
   0xd   :  { %7097 = sst [smem:[#allocation57_spill]] %s7047_s12 }
   0xe   :  { %7098 = sst [smem:[#allocation58_spill]] %s7054_s19 }
   0xf   :  { %7099 = sst [smem:[#allocation59_spill]] %s7055_s20 }
  0x10   :  { %7100 = sst [smem:[#allocation60_spill]] %s7056_s21 }
  0x11   :  { %7101 = sst [smem:[#allocation61_spill]] %s7057_s22 }
  0x12   :  { %27 = vsyncpa [#allocation3], 0 }
  0x13   :  { %29 = vsyncpa [#allocation3 + $0x1], 0 }
  0x14   :  { %30 = vsyncpa [#allocation6], 0 }
  0x15   :  { %32 = vsyncpa [#allocation6 + $0x1], 0 }
  0x16   :  { %33 = vsyncpa [#allocation9], 0 }
  0x17   :  { %34 = vsyncpa [#allocation12], 0 }
  0x18   :  { %35 = vsyncpa [#allocation15], 0 }
  0x19   :  { %36 = vsyncpa [#allocation18], 0 }
  0x1a   :  { %37 = vsyncpa [#allocation21], 0 }
  0x1b   :  { %38 = vsyncpa [#allocation24], 0 }
  0x1c   :  { %39 = vsyncpa [#allocation27], 0 }
  0x1d   :  { %40 = vsyncpa [#allocation4], 0 }
  0x1e   :  { %42 = vsyncpa [#allocation4 + $0x1], 0  ;;  %s6051_s3 = smov 0   ;;  %s6053_s28 = smov 0  }
  0x1f   :  { %s6055_s29 = smov 0   ;;  %s6057_s30 = smov 0  }
  0x20 LB: > { %7102 = sst [smem:[#allocation41_spill]] %s5891_s3  ;;  %s5905_s4 = smov [#allocation7]   ;;  %s5903_s30 = sphi %s6057_s30, %s7169_s30   ;;  %s5899_s29 = sphi %s6055_s29, %s7168_s29   ;;  %s5895_s28 = sphi %s6053_s28, %s7167_s28   ;;  %s5891_s3 = sphi %s6051_s3, %s7166_s3  }
  0x21   : > { %7103 = sst [smem:[#allocation42_spill]] %s5895_s28  ;;  %s566_s0 = sshll.u32 %s5905_s4, 4  ;;  %s6077_s0 = int_to_ptr.vmem [resolvable:$true] %s566_s0 }
  0x22   : > { %s6072_s23 = sadd.s32 4294967295, %s5903_s30   ;;  %p4336_p0 = scmp.ge.s32.totalorder %s5903_s30, 1 }
  0x23   : > { %7104 = sst [smem:[#allocation43_spill]] %s6072_s23  ;;  %p7074_p1 = scmp.eq.s32.totalorder %s6072_s23, 0 }
  0x24   : > { %p551_p2 = scmp.lt.s32.totalorder %s5903_s30, 3  ;;  %s5906_s5 = smov [#allocation8]  }
  0x25   : > { %s579_s24 = sshll.u32 %s5906_s5, 4  ;;  %s7108_s2 = sld [smem:[#allocation48_spill]]  ;;  %s6092_s24 = int_to_ptr.vmem [resolvable:$true] %s579_s24 }
  0x26   : > { %p6079_p3 = pnand %p4336_p0, %p551_p2 }
  0x28   : > { %s7105_s1 = scalar_select %p6079_p3, 1, 0 }
  0x29   : > { %p4930_p5 = pneg %p6079_p3 }
  0x2a   : > { %7106 = sst [smem:[#allocation44_spill]] %s7105_s1 }
  0x2b   : > { %p6088_p6 = pnand %p4930_p5, %p7074_p1  ;;  %s5321_s27 = scalar_lea.hbm %s7108_s2, 64 }
  0x2c   : > { %p5322_p7 = scmp.ne.s32.totalorder %s7108_s2, %s5321_s27  ;;  %p5328_p11 = scmp.lt.u32.totalorder %s5321_s27, %s7108_s2 }
  0x2d   : > { %p6102_p8 = pneg %p6088_p6 }
  0x2f   : > { %p5324_p9 = pnand %p6102_p8, %p5322_p7 }
  0x31   : > { %p5325_p10 = pneg %p5324_p9 }
  0x33   : > { %p5330_p12 = pnand %p5328_p11, %p5325_p10 }
  0x35   : > { %5333 = shalt.err (!%p5330_p12)
}
  0x36   : > { %s5334_s22 = scalar_lea.vmem %s6077_s0, 64  ;;  %p5342_p5 = scmp.lt.s32.totalorder %s6077_s0, %s6077_s0 }
  0x37   : > { %p5335_p13 = scmp.ne.s32.totalorder %s6077_s0, %s5334_s22  ;;  %p5343_p4 = scmp.lt.s32.totalorder %s5334_s22, %s5334_s22 }
  0x39   : > { %p5337_p0 = pnand %p5335_p13, %p6102_p8  ;;  %p5344_p7 = por %p5343_p4, %p5342_p5 }
  0x3b   : > { %p5338_p2 = pneg %p5337_p0 }
  0x3d   : > { %p5345_p9 = pnand %p5344_p7, %p5338_p2 }
  0x3f   : > { %5348 = shalt.err (!%p5345_p9)
}
  0x40   : > { %s5907_s25 = smov 32   ;;  %s5908_s19 = smov 2  }
  0x41   : > { %4933 = dma.hbm_to_vmem [thread:$0]  (!%p6088_p6), %s7108_s2, 64, %s6077_s0, [#allocation6], %s5907_s25, %s5907_s25, %s5908_s19  }
  0x42   : > { %s7110_s20 = sld [smem:[#allocation49_spill]] }
  0x48   : > { %s5349_s10 = scalar_lea.hbm %s7110_s20, 1024 }
  0x49   : > { %p5350_p4 = scmp.ne.s32.totalorder %s7110_s20, %s5349_s10  ;;  %p5356_p12 = scmp.lt.u32.totalorder %s5349_s10, %s7110_s20 }
  0x4b   : > { %p5352_p10 = pnand %p5350_p4, %p6102_p8 }
  0x4d   : > { %p5353_p11 = pneg %p5352_p10 }
  0x4f   : > { %p5358_p13 = pnand %p5356_p12, %p5353_p11 }
  0x51   : > { %5361 = shalt.err (!%p5358_p13)
}
  0x52   : > { %s5362_s0 = scalar_lea.vmem %s6092_s24, 1024  ;;  %p5370_p7 = scmp.lt.s32.totalorder %s6092_s24, %s6092_s24 }
  0x53   : > { %p5363_p0 = scmp.ne.s32.totalorder %s6092_s24, %s5362_s0  ;;  %p5371_p9 = scmp.lt.s32.totalorder %s5362_s0, %s5362_s0 }
  0x55   : > { %p5365_p2 = pnand %p5363_p0, %p6102_p8  ;;  %p5372_p4 = por %p5371_p9, %p5370_p7 }
  0x57   : > { %p5366_p5 = pneg %p5365_p2 }
  0x59   : > { %p5373_p10 = pnand %p5372_p4, %p5366_p5 }
  0x5b   : > { %5376 = shalt.err (!%p5373_p10)
}
  0x5c   : > { %s7076_s23 = smov 64   ;;  %s5910_s10 = smov 4  }
  0x5d   : > { %4936 = dma.hbm_to_vmem [thread:$0]  (!%p6088_p6), %s7110_s20, 1024, %s6092_s24, [#allocation9], %s7076_s23, %s7076_s23, %s5910_s10  }
  0x5e   : > { %s5911_s25 = smov [#allocation11]   ;;  %s5912_s26 = smov [#allocation14]  }
  0x5f   : > { %s605_s19 = sshll.u32 %s5911_s25, 4  ;;  %s631_s27 = sshll.u32 %s5912_s26, 4  ;;  %s606_s19 = int_to_ptr.vmem [resolvable:$true] %s605_s19  ;;  %s6149_s27 = int_to_ptr.vmem [resolvable:$true] %s631_s27 }
  0x60   : > { %s7111_s22 = sld [smem:[#allocation51_spill]] }
  0x66   : > { %s5377_s0 = scalar_lea.hbm %s7111_s22, 32 }
  0x67   : > { %p5378_p11 = scmp.ne.s32.totalorder %s7111_s22, %s5377_s0  ;;  %p5384_p0 = scmp.lt.u32.totalorder %s5377_s0, %s7111_s22 }
  0x69   : > { %p5380_p12 = pnand %p5378_p11, %p6102_p8 }
  0x6b   : > { %p5381_p13 = pneg %p5380_p12 }
  0x6d   : > { %p5386_p2 = pnand %p5384_p0, %p5381_p13 }
  0x6f   : > { %5389 = shalt.err (!%p5386_p2)
}
  0x70   : > { %s5390_s1 = scalar_lea.vmem %s606_s19, 32  ;;  %p5398_p4 = scmp.lt.s32.totalorder %s606_s19, %s606_s19 }
  0x71   : > { %p5391_p5 = scmp.ne.s32.totalorder %s606_s19, %s5390_s1  ;;  %p5399_p10 = scmp.lt.s32.totalorder %s5390_s1, %s5390_s1 }
  0x73   : > { %p5393_p7 = pnand %p5391_p5, %p6102_p8  ;;  %p5400_p1 = por %p5399_p10, %p5398_p4 }
  0x75   : > { %p5394_p9 = pneg %p5393_p7 }
  0x77   : > { %p5401_p3 = pnand %p5400_p1, %p5394_p9 }
  0x79   : > { %5404 = shalt.err (!%p5401_p3)
}
  0x7a   : > { %s7077_s28 = smov 16   ;;  %s7079_s2 = smov 1  }
  0x7b   : > { %4942 = dma.hbm_to_vmem [thread:$0]  (!%p6088_p6), %s7111_s22, 32, %s606_s19, [#allocation12], %s7077_s28, %s7077_s28, %s7079_s2  }
  0x7c   : > { %s7112_s8 = sld [smem:[#allocation53_spill]] }
  0x82   : > { %s5405_s0 = scalar_lea.hbm %s7112_s8, 1024 }
  0x83   : > { %p5406_p1 = scmp.ne.s32.totalorder %s7112_s8, %s5405_s0  ;;  %p5412_p12 = scmp.lt.u32.totalorder %s5405_s0, %s7112_s8 }
  0x85   : > { %p5408_p3 = pnand %p5406_p1, %p6102_p8 }
  0x87   : > { %p5409_p11 = pneg %p5408_p3 }
  0x89   : > { %p5414_p13 = pnand %p5412_p12, %p5409_p11 }
  0x8b   : > { %5417 = shalt.err (!%p5414_p13)
}
  0x8c   : > { %s5418_s19 = scalar_lea.vmem %s6149_s27, 1024  ;;  %p5426_p7 = scmp.lt.s32.totalorder %s6149_s27, %s6149_s27 }
  0x8d   : > { %p5419_p0 = scmp.ne.s32.totalorder %s6149_s27, %s5418_s19  ;;  %p5427_p9 = scmp.lt.s32.totalorder %s5418_s19, %s5418_s19 }
  0x8f   : > { %p5421_p2 = pnand %p5419_p0, %p6102_p8  ;;  %p5428_p4 = por %p5427_p9, %p5426_p7 }
  0x91   : > { %p5422_p5 = pneg %p5421_p2 }
  0x93   : > { %p5429_p10 = pnand %p5428_p4, %p5422_p5 }
  0x95   : > { %5432 = shalt.err (!%p5429_p10)
}
  0x96   : > { %s7113_s23 = smov 64   ;;  %s5915_s4 = smov [#allocation17]  }
  0x97   : > { %4948 = dma.hbm_to_vmem [thread:$0]  (!%p6088_p6), %s7112_s8, 1024, %s6149_s27, [#allocation15], %s7113_s23, %s7113_s23, %s5910_s10  }
  0x98   : > { %s660_s5 = sshll.u32 %s5915_s4, 4  ;;  %s5916_s0 = smov [#allocation20]   ;;  %s661_s5 = int_to_ptr.vmem [resolvable:$true] %s660_s5 }
  0x99   : > { %s686_s3 = sshll.u32 %s5916_s0, 4  ;;  %s7114_s11 = sld [smem:[#allocation56_spill]]  ;;  %s6198_s3 = int_to_ptr.vmem [resolvable:$true] %s686_s3 }
  0x9f   : > { %s5433_s19 = scalar_lea.hbm %s7114_s11, 32 }
  0xa0   : > { %p5434_p1 = scmp.ne.s32.totalorder %s7114_s11, %s5433_s19  ;;  %p5440_p12 = scmp.lt.u32.totalorder %s5433_s19, %s7114_s11 }
  0xa2   : > { %p5436_p3 = pnand %p5434_p1, %p6102_p8 }
  0xa4   : > { %p5437_p11 = pneg %p5436_p3 }
  0xa6   : > { %p5442_p13 = pnand %p5440_p12, %p5437_p11 }
  0xa8   : > { %5445 = shalt.err (!%p5442_p13)
}
  0xa9   : > { %s5446_s27 = scalar_lea.vmem %s661_s5, 32  ;;  %p5454_p7 = scmp.lt.s32.totalorder %s661_s5, %s661_s5 }
  0xaa   : > { %p5447_p0 = scmp.ne.s32.totalorder %s661_s5, %s5446_s27  ;;  %p5455_p9 = scmp.lt.s32.totalorder %s5446_s27, %s5446_s27 }
  0xac   : > { %p5449_p2 = pnand %p5447_p0, %p6102_p8  ;;  %p5456_p4 = por %p5455_p9, %p5454_p7 }
  0xae   : > { %p5450_p5 = pneg %p5449_p2 }
  0xb0   : > { %p5457_p10 = pnand %p5456_p4, %p5450_p5 }
  0xb2   : > { %5460 = shalt.err (!%p5457_p10)
}
  0xb3   : > { %s7115_s28 = smov 1   ;;  %s7116_s2 = smov 16  }
  0xb4   : > { %4954 = dma.hbm_to_vmem [thread:$0]  (!%p6088_p6), %s7114_s11, 32, %s661_s5, [#allocation18], %s7116_s2, %s7116_s2, %s7115_s28  }
  0xb5   : > { %s5461_s24 = scalar_lea.hbm %s7048_s13, 32 }
  0xb6   : > { %p5462_p1 = scmp.ne.s32.totalorder %s7048_s13, %s5461_s24  ;;  %p5468_p12 = scmp.lt.u32.totalorder %s5461_s24, %s7048_s13 }
  0xb8   : > { %p5464_p3 = pnand %p5462_p1, %p6102_p8 }
  0xba   : > { %p5465_p11 = pneg %p5464_p3 }
  0xbc   : > { %p5470_p13 = pnand %p5468_p12, %p5465_p11 }
  0xbe   : > { %5473 = shalt.err (!%p5470_p13)
}
  0xbf   : > { %s5474_s5 = scalar_lea.vmem %s6198_s3, 32  ;;  %p5482_p7 = scmp.lt.s32.totalorder %s6198_s3, %s6198_s3 }
  0xc0   : > { %p5475_p0 = scmp.ne.s32.totalorder %s6198_s3, %s5474_s5  ;;  %p5483_p9 = scmp.lt.s32.totalorder %s5474_s5, %s5474_s5 }
  0xc2   : > { %p5477_p2 = pnand %p5475_p0, %p6102_p8  ;;  %p5484_p4 = por %p5483_p9, %p5482_p7 }
  0xc4   : > { %p5478_p5 = pneg %p5477_p2 }
  0xc6   : > { %p5485_p10 = pnand %p5484_p4, %p5478_p5 }
  0xc8   : > { %5488 = shalt.err (!%p5485_p10)
}
  0xc9   : > { %4960 = dma.hbm_to_vmem [thread:$0]  (!%p6088_p6), %s7048_s13, 32, %s6198_s3, [#allocation21], %s7116_s2, %s7116_s2, %s7115_s28  }
  0xca   : > { %s5917_s26 = smov [#allocation23]   ;;  %s5918_s0 = smov [#allocation26]  }
  0xcb   : > { %s711_s4 = sshll.u32 %s5917_s26, 4  ;;  %s735_s24 = sshll.u32 %s5918_s0, 4  ;;  %s712_s4 = int_to_ptr.vmem [resolvable:$true] %s711_s4  ;;  %s6247_s24 = int_to_ptr.vmem [resolvable:$true] %s735_s24 }
  0xcc   : > { %s5489_s25 = scalar_lea.hbm %s7050_s15, 16 }
  0xcd   : > { %p5490_p1 = scmp.ne.s32.totalorder %s7050_s15, %s5489_s25  ;;  %p5496_p12 = scmp.lt.u32.totalorder %s5489_s25, %s7050_s15 }
  0xcf   : > { %p5492_p3 = pnand %p5490_p1, %p6102_p8 }
  0xd1   : > { %p5493_p11 = pneg %p5492_p3 }
  0xd3   : > { %p5498_p13 = pnand %p5496_p12, %p5493_p11 }
  0xd5   : > { %5501 = shalt.err (!%p5498_p13)
}
  0xd6   : > { %s5502_s23 = scalar_lea.vmem %s712_s4, 16  ;;  %s5509_s26 = scalar_lea.vmem %s712_s4, 32 }
  0xd7   : > { %p5503_p0 = scmp.ne.s32.totalorder %s712_s4, %s5502_s23  ;;  %p5510_p7 = scmp.lt.s32.totalorder %s712_s4, %s712_s4 }
  0xd8   : > { %p5511_p9 = scmp.lt.s32.totalorder %s5509_s26, %s5502_s23 }
  0xd9   : > { %p5505_p2 = pnand %p5503_p0, %p6102_p8 }
  0xda   : > { %p5512_p4 = por %p5511_p9, %p5510_p7 }
  0xdb   : > { %p5506_p5 = pneg %p5505_p2 }
  0xdd   : > { %p5513_p10 = pnand %p5512_p4, %p5506_p5 }
  0xdf   : > { %5516 = shalt.err (!%p5513_p10)
}
  0xe0   : > { %4966 = dma.hbm_to_vmem [thread:$0]  (!%p6088_p6), %s7050_s15, 16, %s712_s4, [#allocation24]  }
  0xe1   : > { %s5517_s10 = scalar_lea.hbm %s7052_s17, 64 }
  0xe2   : > { %p5518_p1 = scmp.ne.s32.totalorder %s7052_s17, %s5517_s10  ;;  %p5524_p12 = scmp.lt.u32.totalorder %s5517_s10, %s7052_s17 }
  0xe4   : > { %p5520_p3 = pnand %p5518_p1, %p6102_p8 }
  0xe6   : > { %p5521_p11 = pneg %p5520_p3 }
  0xe8   : > { %p5526_p13 = pnand %p5524_p12, %p5521_p11 }
  0xea   : > { %5529 = shalt.err (!%p5526_p13)
}
  0xeb   : > { %s5530_s4 = scalar_lea.vmem %s6247_s24, 64  ;;  %p5538_p7 = scmp.lt.s32.totalorder %s6247_s24, %s6247_s24 }
  0xec   : > { %p5531_p0 = scmp.ne.s32.totalorder %s6247_s24, %s5530_s4  ;;  %p5539_p9 = scmp.lt.s32.totalorder %s5530_s4, %s5530_s4 }
  0xee   : > { %p5533_p2 = pnand %p5531_p0, %p6102_p8  ;;  %p5540_p4 = por %p5539_p9, %p5538_p7 }
  0xf0   : > { %p5534_p5 = pneg %p5533_p2 }
  0xf2   : > { %p5541_p10 = pnand %p5540_p4, %p5534_p5 }
  0xf4   : > { %5544 = shalt.err (!%p5541_p10)
}
  0xf5   : > { %4972 = dma.hbm_to_vmem [thread:$0]  (!%p6088_p6), %s7052_s17, 64, %s6247_s24, [#allocation27]  }
  0xf6   : > { %s5919_s1 = smov [#allocation10]   ;;  %s5920_s25 = smov [#allocation13]  }
  0xf7   : > { %s592_s19 = sshll.u32 %s5919_s1, 4  ;;  %s618_s10 = sshll.u32 %s5920_s25, 4  ;;  %s593_s19 = int_to_ptr.vmem [resolvable:$true] %s592_s19  ;;  %s6290_s10 = int_to_ptr.vmem [resolvable:$true] %s618_s10 }
  0xf8   : > { %s7117_s3 = sld [smem:[#allocation50_spill]] }
  0xfe   : > { %s7118_s23 = smov %s7117_s3  ;;  %s5545_s4 = scalar_lea.hbm %s7117_s3, 32 }
  0xff   : > { %p5546_p1 = scmp.ne.s32.totalorder %s7118_s23, %s5545_s4  ;;  %p5552_p12 = scmp.lt.u32.totalorder %s5545_s4, %s7118_s23 }
 0x101   : > { %p5548_p3 = pnand %p5546_p1, %p6102_p8 }
 0x103   : > { %p5549_p11 = pneg %p5548_p3 }
 0x105   : > { %p5554_p13 = pnand %p5552_p12, %p5549_p11 }
 0x107   : > { %5557 = shalt.err (!%p5554_p13)
}
 0x108   : > { %s5558_s0 = scalar_lea.vmem %s593_s19, 32  ;;  %p5566_p7 = scmp.lt.s32.totalorder %s593_s19, %s593_s19 }
 0x109   : > { %p5559_p0 = scmp.ne.s32.totalorder %s593_s19, %s5558_s0  ;;  %p5567_p9 = scmp.lt.s32.totalorder %s5558_s0, %s5558_s0 }
 0x10b   : > { %p5561_p2 = pnand %p5559_p0, %p6102_p8  ;;  %p5568_p4 = por %p5567_p9, %p5566_p7 }
 0x10d   : > { %p5562_p5 = pneg %p5561_p2 }
 0x10f   : > { %p5569_p10 = pnand %p5568_p4, %p5562_p5 }
 0x111   : > { %5572 = shalt.err (!%p5569_p10)
}
 0x112   : > { %4939 = dma.hbm_to_vmem [thread:$0]  (!%p6088_p6), %s7118_s23, 32, %s593_s19, [#allocation9], %s7116_s2, %s7116_s2, %s7115_s28  }
 0x113   : > { %s7119_s7 = sld [smem:[#allocation52_spill]] }
 0x119   : > { %s5573_s5 = scalar_lea.hbm %s7119_s7, 32 }
 0x11a   : > { %p5574_p1 = scmp.ne.s32.totalorder %s7119_s7, %s5573_s5  ;;  %p5580_p12 = scmp.lt.u32.totalorder %s5573_s5, %s7119_s7 }
 0x11c   : > { %p5576_p3 = pnand %p5574_p1, %p6102_p8 }
 0x11e   : > { %p5577_p11 = pneg %p5576_p3 }
 0x120   : > { %p5582_p13 = pnand %p5580_p12, %p5577_p11 }
 0x122   : > { %5585 = shalt.err (!%p5582_p13)
}
 0x123   : > { %s5586_s19 = scalar_lea.vmem %s6290_s10, 32  ;;  %p5594_p7 = scmp.lt.s32.totalorder %s6290_s10, %s6290_s10 }
 0x124   : > { %p5587_p0 = scmp.ne.s32.totalorder %s6290_s10, %s5586_s19  ;;  %p5595_p9 = scmp.lt.s32.totalorder %s5586_s19, %s5586_s19 }
 0x126   : > { %p5589_p2 = pnand %p5587_p0, %p6102_p8  ;;  %p5596_p4 = por %p5595_p9, %p5594_p7 }
 0x128   : > { %p5590_p5 = pneg %p5589_p2 }
 0x12a   : > { %p5597_p10 = pnand %p5596_p4, %p5590_p5 }
 0x12c   : > { %5600 = shalt.err (!%p5597_p10)
}
 0x12d   : > { %4945 = dma.hbm_to_vmem [thread:$0]  (!%p6088_p6), %s7119_s7, 32, %s6290_s10, [#allocation12], %s7116_s2, %s7116_s2, %s7115_s28  }
 0x12e   : > { %s5921_s8 = smov [#allocation16]   ;;  %s5922_s1 = smov [#allocation19]  }
 0x12f   : > { %s644_s11 = sshll.u32 %s5921_s8, 4  ;;  %s673_s25 = sshll.u32 %s5922_s1, 4  ;;  %s645_s11 = int_to_ptr.vmem [resolvable:$true] %s644_s11  ;;  %s6339_s25 = int_to_ptr.vmem [resolvable:$true] %s673_s25 }
 0x130   : > { %s7120_s9 = sld [smem:[#allocation54_spill]] }
 0x136   : > { %s5601_s3 = scalar_lea.hbm %s7120_s9, 32 }
 0x137   : > { %p5602_p1 = scmp.ne.s32.totalorder %s7120_s9, %s5601_s3  ;;  %p5608_p12 = scmp.lt.u32.totalorder %s5601_s3, %s7120_s9 }
 0x139   : > { %p5604_p3 = pnand %p5602_p1, %p6102_p8 }
 0x13b   : > { %p5605_p11 = pneg %p5604_p3 }
 0x13d   : > { %p5610_p13 = pnand %p5608_p12, %p5605_p11 }
 0x13f   : > { %5613 = shalt.err (!%p5610_p13)
}
 0x140   : > { %s5614_s24 = scalar_lea.vmem %s645_s11, 32  ;;  %p5622_p7 = scmp.lt.s32.totalorder %s645_s11, %s645_s11 }
 0x141   : > { %p5615_p0 = scmp.ne.s32.totalorder %s645_s11, %s5614_s24  ;;  %p5623_p9 = scmp.lt.s32.totalorder %s5614_s24, %s5614_s24 }
 0x143   : > { %p5617_p2 = pnand %p5615_p0, %p6102_p8  ;;  %p5624_p4 = por %p5623_p9, %p5622_p7 }
 0x145   : > { %p5618_p5 = pneg %p5617_p2 }
 0x147   : > { %p5625_p10 = pnand %p5624_p4, %p5618_p5 }
 0x149   : > { %5628 = shalt.err (!%p5625_p10)
}
 0x14a   : > { %4951 = dma.hbm_to_vmem [thread:$0]  (!%p6088_p6), %s7120_s9, 32, %s645_s11, [#allocation15], %s7116_s2, %s7116_s2, %s7115_s28  }
 0x14b   : > { %s7121_s12 = sld [smem:[#allocation57_spill]] }
 0x151   : > { %s5629_s27 = scalar_lea.hbm %s7121_s12, 32 }
 0x152   : > { %p5630_p1 = scmp.ne.s32.totalorder %s7121_s12, %s5629_s27  ;;  %p5636_p12 = scmp.lt.u32.totalorder %s5629_s27, %s7121_s12 }
 0x154   : > { %p5632_p3 = pnand %p5630_p1, %p6102_p8 }
 0x156   : > { %p5633_p11 = pneg %p5632_p3 }
 0x158   : > { %p5638_p13 = pnand %p5636_p12, %p5633_p11 }
 0x15a   : > { %5641 = shalt.err (!%p5638_p13)
}
 0x15b   : > { %s5642_s11 = scalar_lea.vmem %s6339_s25, 32  ;;  %p5650_p7 = scmp.lt.s32.totalorder %s6339_s25, %s6339_s25 }
 0x15c   : > { %p5643_p0 = scmp.ne.s32.totalorder %s6339_s25, %s5642_s11  ;;  %p5651_p9 = scmp.lt.s32.totalorder %s5642_s11, %s5642_s11 }
 0x15e   : > { %p5645_p2 = pnand %p5643_p0, %p6102_p8  ;;  %p5652_p4 = por %p5651_p9, %p5650_p7 }
 0x160   : > { %p5646_p5 = pneg %p5645_p2 }
 0x162   : > { %p5653_p10 = pnand %p5652_p4, %p5646_p5 }
 0x164   : > { %5656 = shalt.err (!%p5653_p10)
}
 0x165   : > { %4957 = dma.hbm_to_vmem [thread:$0]  (!%p6088_p6), %s7121_s12, 32, %s6339_s25, [#allocation18], %s7116_s2, %s7116_s2, %s7115_s28  }
 0x166   : > { %s5923_s0 = smov [#allocation22]   ;;  %s5924_s1 = smov [#allocation25]  }
 0x167   : > { %s700_s8 = sshll.u32 %s5923_s0, 4  ;;  %s721_s5 = sshll.u32 %s5924_s1, 4  ;;  %s701_s8 = int_to_ptr.vmem [resolvable:$true] %s700_s8  ;;  %s6388_s5 = int_to_ptr.vmem [resolvable:$true] %s721_s5 }
 0x168   : > { %s5657_s4 = scalar_lea.hbm %s7049_s14, 16 }
 0x169   : > { %p5658_p1 = scmp.ne.s32.totalorder %s7049_s14, %s5657_s4  ;;  %p5664_p12 = scmp.lt.u32.totalorder %s5657_s4, %s7049_s14 }
 0x16b   : > { %p5660_p3 = pnand %p5658_p1, %p6102_p8 }
 0x16d   : > { %p5661_p11 = pneg %p5660_p3 }
 0x16f   : > { %p5666_p13 = pnand %p5664_p12, %p5661_p11 }
 0x171   : > { %5669 = shalt.err (!%p5666_p13)
}
 0x172   : > { %s5670_s25 = scalar_lea.vmem %s701_s8, 16  ;;  %s5677_s10 = scalar_lea.vmem %s701_s8, 32 }
 0x173   : > { %p5671_p0 = scmp.ne.s32.totalorder %s701_s8, %s5670_s25  ;;  %p5678_p7 = scmp.lt.s32.totalorder %s701_s8, %s701_s8 }
 0x174   : > { %p5679_p9 = scmp.lt.s32.totalorder %s5677_s10, %s5670_s25 }
 0x175   : > { %p5673_p2 = pnand %p5671_p0, %p6102_p8 }
 0x176   : > { %p5680_p4 = por %p5679_p9, %p5678_p7 }
 0x177   : > { %p5674_p5 = pneg %p5673_p2 }
 0x179   : > { %p5681_p10 = pnand %p5680_p4, %p5674_p5 }
 0x17b   : > { %5684 = shalt.err (!%p5681_p10)
}
 0x17c   : > { %4963 = dma.hbm_to_vmem [thread:$0]  (!%p6088_p6), %s7049_s14, 16, %s701_s8, [#allocation21]  }
 0x17d   : > { %s5685_s3 = scalar_lea.hbm %s7051_s16, 2048 }
 0x17e   : > { %p5686_p1 = scmp.ne.s32.totalorder %s7051_s16, %s5685_s3  ;;  %p5692_p12 = scmp.lt.u32.totalorder %s5685_s3, %s7051_s16 }
 0x180   : > { %p5688_p3 = pnand %p5686_p1, %p6102_p8 }
 0x182   : > { %p5689_p11 = pneg %p5688_p3 }
 0x184   : > { %p5694_p13 = pnand %p5692_p12, %p5689_p11 }
 0x186   : > { %5697 = shalt.err (!%p5694_p13)
}
 0x187   : > { %s5698_s8 = scalar_lea.vmem %s6388_s5, 2048  ;;  %p5706_p7 = scmp.lt.s32.totalorder %s6388_s5, %s6388_s5 }
 0x188   : > { %p5699_p0 = scmp.ne.s32.totalorder %s6388_s5, %s5698_s8  ;;  %p5707_p9 = scmp.lt.s32.totalorder %s5698_s8, %s5698_s8 }
 0x18a   : > { %p5701_p2 = pnand %p5699_p0, %p6102_p8  ;;  %p5708_p4 = por %p5707_p9, %p5706_p7 }
 0x18c   : > { %p5702_p5 = pneg %p5701_p2 }
 0x18e   : > { %p5709_p10 = pnand %p5708_p4, %p5702_p5 }
 0x190   : > { %5712 = shalt.err (!%p5709_p10)
}
 0x191   : > { %s5925_s28 = smov 256   ;;  %s5926_s24 = smov [#allocation28]  }
 0x192   : > { %4969 = dma.hbm_to_vmem [thread:$0]  (!%p6088_p6), %s7051_s16, 2048, %s6388_s5, [#allocation24], %s5925_s28, %s5925_s28, %s7116_s2  }
 0x193   : > { %s745_s0 = sshll.u32 %s5926_s24, 4  ;;  %s5713_s3 = scalar_lea.hbm %s7053_s18, 8192  ;;  %s746_s0 = int_to_ptr.vmem [resolvable:$true] %s745_s0 }
 0x194   : > { %p5714_p1 = scmp.ne.s32.totalorder %s7053_s18, %s5713_s3  ;;  %p5720_p12 = scmp.lt.u32.totalorder %s5713_s3, %s7053_s18 }
 0x196   : > { %p5716_p3 = pnand %p5714_p1, %p6102_p8 }
 0x198   : > { %p5717_p11 = pneg %p5716_p3 }
 0x19a   : > { %p5722_p13 = pnand %p5720_p12, %p5717_p11 }
 0x19c   : > { %5725 = shalt.err (!%p5722_p13)
}
 0x19d   : > { %s5726_s2 = scalar_lea.vmem %s746_s0, 8192  ;;  %p5734_p7 = scmp.lt.s32.totalorder %s746_s0, %s746_s0 }
 0x19e   : > { %p5727_p0 = scmp.ne.s32.totalorder %s746_s0, %s5726_s2  ;;  %p5735_p9 = scmp.lt.s32.totalorder %s5726_s2, %s5726_s2 }
 0x1a0   : > { %p5729_p2 = pnand %p5727_p0, %p6102_p8  ;;  %p5736_p4 = por %p5735_p9, %p5734_p7 }
 0x1a2   : > { %p5730_p5 = pneg %p5729_p2 }
 0x1a4   : > { %p5737_p10 = pnand %p5736_p4, %p5730_p5 }
 0x1a6   : > { %5740 = shalt.err (!%p5737_p10)
}
 0x1a7   : > { %s5927_s5 = smov 128   ;;  %s7122_s8 = sld [smem:[#allocation42_spill]] }
 0x1a8   : > { %s7123_s28 = sld [smem:[#allocation41_spill]]  ;;  %s7124_s21 = sld [smem:[#allocation43_spill]] }
 0x1a9   : > { %s5928_s25 = smov 8   ;;  %s4335_s1 = sadd.s32 4294967294, %s5903_s30  }
 0x1aa   : > { %4975 = dma.hbm_to_vmem [thread:$0]  (!%p6088_p6), %s7053_s18, 8192, %s746_s0, [#allocation27], %s5927_s5, %s5927_s5, %s5928_s25  }
 0x1ab   : > { %s6452_s27 = sadd.s32 1, %s5903_s30   ;;  %s55_s4 = sadd.s32 1, %s5899_s29 }
 0x1ac   : > { %s52_s3 = ssub.s32 %s5903_s30, %s6452_s27  ;;  %p63_p3 = scmp.eq.s32.totalorder %s5903_s30, 0 }
 0x1ad   : > { %p53_p8 = scmp.eq.s32.totalorder %s52_s3, 0  ;;  %p62_p1 = scmp.ne.s32.totalorder %s5899_s29, %s7122_s8 }
 0x1ae   : > { %p68_p11 = scmp.ne.s32.totalorder %s7122_s8, %s7123_s28  ;;  %p7126_p13 = scmp.eq.s32.totalorder %s7124_s21, 0 }
 0x1af   : > { %s6463_s26 = scalar_select %p53_p8, %s5899_s29, %s55_s4  }
 0x1b0   : > { %p6465_p12 = por %p63_p3, %p62_p1  ;;  %p6471_p6 = por %p7126_p13, %p68_p11 }
 0x1b1   : > { %p538_p0 = scmp.eq.s32.totalorder %s7124_s21, 1  ;;  %p544_p2 = scmp.eq.s32.totalorder %s4335_s1, 1 }
 0x1b2   : > { %s7127_s0 = scalar_select %p6471_p6, 1, 0 }
 0x1b3   : > { %p5002_p5 = scmp.lt.s32.totalorder %s5903_s30, 2  ;;  %s6478_s19 = sand.u32 1, %s5899_s29  }
 0x1b4   : > { %p6480_p7 = por %p538_p0, %p62_p1  ;;  %p6484_p9 = por %p544_p2, %p68_p11 }
 0x1b5   : > { %s4353_s5 = sshll.u32 %s6478_s19, 3  ;;  %s4354_s8 = sshll.u32 %s5903_s30, 7 }
 0x1b6   : > { %s7128_s11 = scalar_select %p6480_p7, 1, 0 }
 0x1b7   : > { %s7129_s2 = scalar_select %p6484_p9, 1, 0 }
 0x1b8   : > { %s7130_s10 = sld [smem:[#allocation45_spill]]  ;;  %s772_s24 = scalar_lea.vmem [#allocation2], %s4353_s5 }
 0x1b9   : > { %s779_s1 = sshll.u32 %s772_s24, 4  ;;  %p6499_p4 = pnand %p5002_p5, %p6465_p12  ;;  %s6495_s1 = int_to_ptr.vmem [resolvable:$true] %s779_s1 }
 0x1ba   : > { %s769_s7 = scalar_lea.sflag [#allocation3], %s6478_s19 }
 0x1bb   : > { %p5743_p8 = pneg %p6499_p4 }
 0x1be   : > { %s6493_s21 = scalar_lea.hbm %s7130_s10, %s4354_s8  ;;  %s5746_s6 = scalar_lea.hbm %s7130_s10, 256 }
 0x1bf   : > { %s5741_s28 = scalar_lea.hbm %s6493_s21, 128  ;;  %p5747_p11 = scmp.lt.u32.totalorder %s6493_s21, %s7130_s10 }
 0x1c0   : > { %p5742_p10 = scmp.ne.s32.totalorder %s6493_s21, %s5741_s28  ;;  %p5748_p12 = scmp.lt.u32.totalorder %s5746_s6, %s5741_s28 }
 0x1c1   : > { %p5750_p0 = scmp.lt.u32.totalorder %s5741_s28, %s6493_s21 }
 0x1c2   : > { %p5744_p1 = pnand %p5743_p8, %p5742_p10  ;;  %p5749_p13 = por %p5748_p12, %p5747_p11 }
 0x1c4   : > { %p5745_p3 = pneg %p5744_p1  ;;  %p5751_p2 = por %p5750_p0, %p5749_p13 }
 0x1c6   : > { %p5752_p5 = pnand %p5751_p2, %p5745_p3 }
 0x1c8   : > { %5755 = shalt.err (!%p5752_p5)
}
 0x1c9   : > { %s5756_s4 = scalar_lea.vmem %s6495_s1, 128  ;;  %s5929_s5 = smov [#allocation2]  }
 0x1ca   : > { %p5757_p10 = scmp.ne.s32.totalorder %s6495_s1, %s5756_s4  ;;  %s5761_s8 = sshll.u32 %s5929_s5, 4  ;;  %s5762_s8 = int_to_ptr.vmem [resolvable:$false] %s5761_s8 }
 0x1cb   : > { %s5763_s25 = scalar_lea.vmem %s5762_s8, 256  ;;  %p5764_p7 = scmp.lt.s32.totalorder %s6495_s1, %s5762_s8 }
 0x1cc   : > { %p5759_p1 = pnand %p5757_p10, %p5743_p8  ;;  %p5765_p11 = scmp.lt.s32.totalorder %s5763_s25, %s5756_s4 }
 0x1ce   : > { %p5760_p9 = pneg %p5759_p1  ;;  %p5766_p12 = por %p5765_p11, %p5764_p7 }
 0x1d0   : > { %p5767_p13 = pnand %p5766_p12, %p5760_p9 }
 0x1d2   : > { %5770 = shalt.err (!%p5767_p13)
}
 0x1d3   : > { %4979 = dma.hbm_to_vmem [thread:$0]  (!%p6499_p4), %s6493_s21, 128, %s6495_s1, %s769_s7  }
 0x1d4   : > { %s4355_s28 = sshll.u32 %s5903_s30, 4  ;;  %s789_s6 = scalar_lea.vmem [#allocation5], %s6478_s19 }
 0x1d5   : > { %s796_s24 = sshll.u32 %s789_s6, 4  ;;  %s7132_s10 = sld [smem:[#allocation46_spill]]  ;;  %s797_s24 = int_to_ptr.vmem [resolvable:$true] %s796_s24 }
 0x1d6   : > { %s7133_s4 = sand.u32 1, %s5903_s30  }
 0x1d7   : > { %s787_s25 = scalar_lea.sflag [#allocation6], %s7133_s4 }
 0x1db   : > { %s6535_s8 = scalar_lea.hbm %s7132_s10, %s4355_s28  ;;  %s5776_s21 = scalar_lea.hbm %s7132_s10, 32 }
 0x1dc   : > { %s5771_s12 = scalar_lea.hbm %s6535_s8, 16  ;;  %p5777_p0 = scmp.lt.u32.totalorder %s6535_s8, %s7132_s10 }
 0x1dd   : > { %p5772_p7 = scmp.ne.s32.totalorder %s6535_s8, %s5771_s12  ;;  %p5778_p2 = scmp.lt.u32.totalorder %s5776_s21, %s5771_s12 }
 0x1de   : > { %p5780_p10 = scmp.lt.u32.totalorder %s5771_s12, %s6535_s8 }
 0x1df   : > { %p5774_p9 = pnand %p5772_p7, %p5743_p8  ;;  %p5779_p5 = por %p5778_p2, %p5777_p0 }
 0x1e1   : > { %p5775_p3 = pneg %p5774_p9  ;;  %p5781_p1 = por %p5780_p10, %p5779_p5 }
 0x1e3   : > { %p5782_p11 = pnand %p5781_p1, %p5775_p3 }
 0x1e5   : > { %5785 = shalt.err (!%p5782_p11)
}
 0x1e6   : > { %s5786_s28 = scalar_lea.vmem %s797_s24, 16  ;;  %s5930_s6 = smov [#allocation5]  }
 0x1e7   : > { %p5787_p12 = scmp.ne.s32.totalorder %s797_s24, %s5786_s28  ;;  %s5791_s5 = sshll.u32 %s5930_s6, 4  ;;  %s5792_s5 = int_to_ptr.vmem [resolvable:$false] %s5791_s5 }
 0x1e8   : > { %s5793_s4 = scalar_lea.vmem %s5792_s5, 32  ;;  %p5794_p9 = scmp.lt.s32.totalorder %s797_s24, %s5792_s5 }
 0x1e9   : > { %p5789_p13 = pnand %p5787_p12, %p5743_p8  ;;  %p5795_p6 = scmp.lt.s32.totalorder %s5793_s4, %s5786_s28 }
 0x1eb   : > { %p5790_p7 = pneg %p5789_p13  ;;  %p5796_p0 = por %p5795_p6, %p5794_p9 }
 0x1ed   : > { %p5797_p2 = pnand %p5796_p0, %p5790_p7 }
 0x1ef   : > { %5800 = shalt.err (!%p5797_p2)
}
 0x1f0   : > { %4982 = dma.hbm_to_vmem [thread:$0]  (!%p6499_p4), %s6535_s8, 16, %s797_s24, %s787_s25  }
 0x1f1   : > { %s7134_s12 = sld [smem:[#allocation44_spill]] }
 0x1f7   : > { %p7135_p3 = scmp.ne.s32.totalorder %s7134_s12, 0 }
 0x1f8   : > { %s7136_s7 = sld [smem:[#allocation42_spill]] (!%p7135_p3)  ;;  %p7137_p6 = scmp.ne.s32.totalorder (!%p7135_p3), %s7127_s0, 0 }
 0x1f9   : > { %805 = sbr.rel (%p7135_p3) target bundleno = 7066 (0x1b9a), region = 108 }
 0x1fe   : > { %s6561_s19 = sand.u32 (!%p7135_p3), 1, %s7136_s7  }
 0x1ff   : > { %s4357_s21 = sshll.u32 (!%p7135_p3), %s6561_s19, 3  ;;  %s808_s9 = scalar_lea.sflag (!%p7135_p3), [#allocation3], %s6561_s19 }
 0x200   : > { %s6565_s1 = scalar_lea.vmem [#allocation2], %s4357_s21 }
 0x201   : > { %5846 = dma.done.wait (%p7137_p6), %s808_s9, 128  }
 0x202   : > { %5848 = vsyncadd (%p7137_p6), %s808_s9, 4294967168  ;;  %s7138_s3 = sld [smem:[#allocation43_spill]]  ;;  %s819_s25 = scalar_lea.vmem [#allocation5], %s6561_s19 }
 0x208   : > { %s816_s24 = sand.u32 1, %s7138_s3  }
 0x209   : > { %s817_s8 = scalar_lea.sflag [#allocation6], %s816_s24 }
 0x20a   : > { %5850 = dma.done.wait (%p7137_p6), %s817_s8, 16  }
 0x20b   : > { %5852 = vsyncadd (%p7137_p6), %s817_s8, 4294967280  ;;  %p7139_p4 = scmp.eq.s32.totalorder %s7138_s3, 0 }
 0x20d   : > { %5854 = dma.done.wait (%p7139_p4), [#allocation6], 64   ;;  %p7140_p8 = pmov %p7139_p4 }
 0x20e   : > { %p7141_p5 = pmov %p7139_p4 }
 0x20f   : > { %5856 = vsyncadd (%p7140_p8), [#allocation6], 4294967232 }
 0x210   : > { %5858 = dma.done.wait (%p7141_p5), [#allocation9], 1056   ;;  %p7142_p10 = pmov %p7139_p4 }
 0x211   : > { %p7143_p1 = pmov %p7139_p4 }
 0x212   : > { %5860 = vsyncadd (%p7142_p10), [#allocation9], 4294966240 }
 0x213   : > { %5862 = dma.done.wait (%p7143_p1), [#allocation12], 64   ;;  %p7144_p11 = pmov %p7143_p1 }
 0x214   : > { %p7145_p12 = pmov %p7143_p1 }
 0x215   : > { %5864 = vsyncadd (%p7144_p11), [#allocation12], 4294967232 }
 0x216   : > { %5866 = dma.done.wait (%p7145_p12), [#allocation15], 1056   ;;  %p7146_p13 = pmov %p7143_p1 }
 0x217   : > { %p7147_p7 = pmov %p7143_p1 }
 0x218   : > { %5868 = vsyncadd (%p7146_p13), [#allocation15], 4294966240 }
 0x219   : > { %5870 = dma.done.wait (%p7147_p7), [#allocation18], 64   ;;  %p7148_p9 = pmov %p7143_p1 }
 0x21a   : > { %p7149_p0 = pmov %p7143_p1 }
 0x21b   : > { %5872 = vsyncadd (%p7148_p9), [#allocation18], 4294967232 }
 0x21c   : > { %5874 = dma.done.wait (%p7149_p0), [#allocation21], 48   ;;  %p7150_p2 = pmov %p7149_p0 }
 0x21d   : > { %p7151_p3 = pmov %p7149_p0 }
 0x21e   : > { %5876 = vsyncadd (%p7150_p2), [#allocation21], 4294967248 }
 0x21f   : > { %5878 = dma.done.wait (%p7151_p3), [#allocation24], 2064   ;;  %p7152_p6 = pmov %p7149_p0 }
 0x220   : > { %p7153_p4 = pmov %p7149_p0 }
 0x221   : > { %5880 = vsyncadd (%p7152_p6), [#allocation24], 4294965232 }
 0x222   : > { %5882 = dma.done.wait (%p7153_p4), [#allocation27], 8256   ;;  %p7154_p8 = pmov %p7149_p0 }
 0x223   : > { %v5931_v0 = vmov 0   ;;  %s7155_s6 = sld [smem:[#allocation47_spill]]  ;;  %vm1009_vm0 = vcmask 523264   ;;  %v6635_v9 = vld [vmem:[%s6565_s1] sm:$0xff]  ;;  %v959_v11 = vlaneseq  ;;  %v956_v14 = vld [vmem:[#allocation7] sm:$0x3] }
 0x224   : > { %5884 = vsyncadd (%p7154_p8), [#allocation27], 4294959040  ;;  %1045 = vmatprep.mubr.bf16.mxu0 %v5931_v0  ;;  %v957_v10 = vpack.c.bf16 %v6635_v9, %v6635_v9  ;;  %v5932_v24 = vmov 0.0   ;;  %vm5933_vm1 = vmmov 0   ;;  %vm1258_vm2 = vcmask 130048   ;;  %s7156_s21 = sld [smem:[#allocation55_spill]] }
 0x225   : > { %v6640_v12 = vshrl.u32 %v959_v11, 7  ;;  %4674 = vmatprep.subr.bf16.mxu1 %v5932_v24  ;;  %4676 = vmatprep.mubr.msk.bf16.mxu1 %vm5933_vm1, %v5932_v24  ;;  %v945_v53 = vld [vmem:[%s819_s25] sm:$0x1]  ;;  %vm1445_vm3 = vcmask 64512   ;;  %vm3214_vm6 = vcmask 516096   ;;  %s7157_s28 = sld [smem:[#allocation59_spill]] }
 0x226   : > { %v946_v54 = vsub.f32 1.0, %v945_v53  ;;  %s7160_s7 = sld [smem:[#allocation60_spill]]  ;;  %s4579_s1 = sshll.u32 %s7138_s3, 4 }
 0x227   : > { %v6643_v13 = vsub.s32 0, %v6640_v12  ;;  %v6646_v15 = vsub.s32 1, %v6640_v12  ;;  %s942_s25 = scalar_lea.vmem [#allocation29], %s6561_s19  ;;  %s7161_s8 = sld [smem:[#allocation61_spill]] }
 0x228   : > { %v947_v55 = vmul.f32 -1e+09, %v946_v54  ;;  %p7162_p10 = scmp.ne.s32.totalorder %s7128_s11, 0  ;;  %s5935_s3 = smov [#allocation29]  }
 0x229   : > { %v5079_v1 = vld [vmem:[%s7155_s6 + $0x4] ss:$8 sps:$4 sm:$0xff]   ;;  %v5081_v2 = vld [vmem:[%s7155_s6] ss:$8 sps:$4 sm:$0xff]   ;;  %v5082_v3 = vld [vmem:[%s7155_s6 + $0x14] ss:$8 sps:$4 sm:$0xff]   ;;  %v962_v16 = vrot.slane %v956_v14, %v6643_v13  ;;  %v966_v17 = vrot.slane %v956_v14, %v6646_v15 }
 0x22a   : > { %1013 = vmatprep.subr.bf16.mxu0 %v5079_v1  ;;  %v5084_v4 = vld [vmem:[%s7155_s6 + $0x10] ss:$8 sps:$4 sm:$0xff]   ;;  %v5085_v5 = vld [vmem:[%s7155_s6 + $0x24] ss:$8 sps:$4 sm:$0xff]   ;;  %v5087_v6 = vld [vmem:[%s7155_s6 + $0x20] ss:$8 sps:$4 sm:$0xff]   ;;  %v6677_v56 = vrot.slane %v947_v55, %v6643_v13 }
 0x22b   : > { %1014 = vmatpush1.bf16.msra.mxu0 %v5081_v2  ;;  %v5088_v7 = vld [vmem:[%s7155_s6 + $0x34] ss:$8 sps:$4 sm:$0xff]   ;;  %v5090_v8 = vld [vmem:[%s7155_s6 + $0x30] ss:$8 sps:$4 sm:$0xff]   ;;  %s7158_s5 = smov %s7157_s28  ;;  %s5805_s12 = sshll.u32 %s5935_s3, 4  ;;  %s5806_s12 = int_to_ptr.vmem [resolvable:$false] %s5805_s12 }
 0x22c   : > { %1015 = vmatprep.subr.bf16.mxu0 %v5082_v3 }
 0x22d   : > { %s6991_s0 = scalar_lea.hbm %s7161_s8, %s4579_s1 }
 0x22f   : > { %1016 = vmatpush1.bf16.msra.mxu0 %v5084_v4 }
 0x230   : > { %1017 = vmatprep.subr.bf16.mxu0 %v5085_v5 }
 0x233   : > { %1018 = vmatpush1.bf16.msra.mxu0 %v5087_v6 }
 0x234   : > { %1019 = vmatprep.subr.bf16.mxu0 %v5088_v7 }
 0x237   : > { %1020 = vmatpush1.bf16.msra.mxu0 %v5090_v8 }
 0x238   : > { %4692 = vmatprep.subr.bf16.mxu0 %v5932_v24 }
 0x23a   : > { %4381 = vmatmul.mubr.msk.bf16.vlgmr.msra.gmra.mrb[0].mxu0 %vm1009_vm0, %v957_v10 }
 0x23b   : > { %4694 = vmatprep.mubr.msk.bf16.mxu0 %vm5933_vm1, %v5932_v24 }
 0x30d   : > { %v1047_v18 = vpop.f32.mrb[0].mxu0 }
 0x30e   : > { %v1049_v19 = vpop.f32.mrb[1].mxu0  ;;  %v1048_v20 = vadd.f32 %v1047_v18, %v962_v16 }
 0x30f   : > { %v6650_v21 = vadd.f32 %v1049_v19, %v966_v17  ;;  %v1051_v22 = vpop.f32.mrb[2].mxu0 }
 0x310   : > { %v1052_v23 = vpop.f32.mrb[3].mxu0  ;;  %1054 = vxpose.xlu0.b32.start.end [1/1] (short) %v1048_v20, 128 }
 0x390   : > { %v1070_v25 = vpop.trf.xlu0 }
 0x391   : > { %1126 = vxpose.xlu0.b32.start [1/2] (short) (narrow) %v1070_v25, 8 }
 0x394   : > { %v1071_v26 = vpop.trf.xlu0 }
 0x395   : > { %1127 = vxpose.xlu0.b32.end [2/2] (short) (narrow) %v1071_v26, 8 }
 0x398   : > { %v1072_v27 = vpop.trf.xlu0 }
 0x399   : > { %1158 = vxpose.xlu1.b32.start [1/2] (short) (narrow) %v1072_v27, 8 }
 0x39c   : > { %v1073_v28 = vpop.trf.xlu0 }
 0x39d   : > { %1159 = vxpose.xlu1.b32.end [2/2] (short) (narrow) %v1073_v28, 8 }
 0x3a0   : > { %v1074_v29 = vpop.trf.xlu0 }
 0x3a1   : > { %1190 = vxpose.xlu1.b32.start [1/2] (short) (narrow) %v1074_v29, 8 }
 0x3a4   : > { %v1075_v30 = vpop.trf.xlu0 }
 0x3a5   : > { %1191 = vxpose.xlu1.b32.end [2/2] (short) (narrow) %v1075_v30, 8 }
 0x3a8   : > { %v1076_v31 = vpop.trf.xlu0 }
 0x3a9   : > { %1222 = vxpose.xlu1.b32.start [1/2] (short) (narrow) %v1076_v31, 8 }
 0x3ac   : > { %v1077_v32 = vpop.trf.xlu0 }
 0x3ad   : > { %1223 = vxpose.xlu1.b32.end [2/2] (short) (narrow) %v1077_v32, 8 }
 0x3b0   : > { %v1078_v33 = vpop.trf.xlu0 }
 0x3b4   : > { %v1079_v34 = vpop.trf.xlu0 }
 0x3b5   : > { %v1118_v35 = vpack.c.bf16 %v1079_v34, %v1078_v33 }
 0x3b7   : > { %4675 = vmatpush3.bf16.msra.mxu1 %v1118_v35 }
 0x3b8   : > { %v1080_v36 = vpop.trf.xlu0  ;;  %4680 = vmatprep.subr.bf16.mxu1 %v5932_v24 }
 0x3bc   : > { %v1081_v37 = vpop.trf.xlu0 }
 0x3bd   : > { %v1119_v38 = vpack.c.bf16 %v1081_v37, %v1080_v36 }
 0x3c0   : > { %v1082_v39 = vpop.trf.xlu0 }
 0x3c4   : > { %v1083_v40 = vpop.trf.xlu0 }
 0x3c5   : > { %v1120_v41 = vpack.c.bf16 %v1083_v40, %v1082_v39 }
 0x3c8   : > { %v1084_v42 = vpop.trf.xlu0 }
 0x3cc   : > { %v1085_v43 = vpop.trf.xlu0 }
 0x3cd   : > { %v1121_v44 = vpack.c.bf16 %v1085_v43, %v1084_v42 }
 0x3cf   : > { %4693 = vmatpush3.bf16.msra.mxu0 %v1121_v44 }
 0x3d0   : > { %4704 = vmatprep.subr.bf16.mxu0 %v5932_v24 }
 0x411   : > { %v1142_v45 = vpop.trf.xlu0 }
 0x412   : > { %v1254_v46 = vpack.c.bf16 %v1142_v45, %v1142_v45 }
 0x414   : > { %4677 = vmatmul.mubr.msk.bf16.vlgmr.msra.gmra.mrb[0].mxu1 %vm1258_vm2, %v1254_v46 }
 0x415   : > { %4681 = vmatpush3.bf16.msra.mxu1 %v1119_v38  ;;  %4682 = vmatprep.mubr.msk.bf16.mxu1 %vm5933_vm1, %v5932_v24 }
 0x416   : > { %4686 = vmatprep.subr.bf16.mxu1 %v5932_v24 }
 0x419   : > { %v1174_v47 = vpop.trf.xlu1 }
 0x41a   : > { %v1255_v48 = vpack.c.bf16 %v1174_v47, %v1174_v47 }
 0x41c   : > { %4683 = vmatmul.mubr.msk.bf16.vlgmr.msra.gmra.mrb[4].mxu1 %vm1258_vm2, %v1255_v48 }
 0x41d   : > { %4687 = vmatpush3.bf16.msra.mxu1 %v1120_v41  ;;  %4688 = vmatprep.mubr.msk.bf16.mxu1 %vm5933_vm1, %v5932_v24 }
 0x41e   : > { %4698 = vmatprep.subr.bf16.mxu1 %v5932_v24 }
 0x421   : > { %v1206_v49 = vpop.trf.xlu1 }
 0x422   : > { %v1256_v50 = vpack.c.bf16 %v1206_v49, %v1206_v49 }
 0x424   : > { %4689 = vmatmul.mubr.msk.bf16.vlgmr.msra.gmra.mrb[8].mxu1 %vm1258_vm2, %v1256_v50 }
 0x425   : > { %4700 = vmatprep.mubr.msk.bf16.mxu1 %vm5933_vm1, %v5932_v24 }
 0x429   : > { %v1238_v51 = vpop.trf.xlu1 }
 0x42a   : > { %v1257_v52 = vpack.c.bf16 %v1238_v51, %v1238_v51 }
 0x42c   : > { %4695 = vmatmul.mubr.msk.bf16.vlgmr.msra.gmra.mrb[4].mxu0 %vm1258_vm2, %v1257_v52 }
 0x42d   : > { %4706 = vmatprep.mubr.msk.bf16.mxu0 %vm5933_vm1, %v5932_v24 }
 0x4e7   : > { %v1296_v57 = vpop.f32.mrb[0].mxu1 }
 0x4e8   : > { %v1431_v58 = vmul.f32 0.25, %v1296_v57  ;;  %v4678_v59 = vpop.f32.mrb[1].mxu1 }
 0x4e9   : > { %v1299_v60 = vpop.f32.mrb[2].mxu1 }
 0x4ea   : > { %v4679_v61 = vpop.f32.mrb[3].mxu1  ;;  %v1441_v62 = vadd.f32 %v6677_v56, %v1431_v58 }
 0x4ec   : > { %v1446_v63 = vsel %vm1445_vm3, %v1441_v62, -inf }
 0x4ed   : > { %1447 = vmax.xlane.f32.xlu1 %v1446_v63 }
 0x4ef   : > { %v1339_v1 = vpop.f32.mrb[4].mxu1 }
 0x4f0   : > { %v1432_v2 = vmul.f32 0.25, %v1339_v1  ;;  %v4684_v3 = vpop.f32.mrb[5].mxu1 }
 0x4f1   : > { %v1342_v4 = vpop.f32.mrb[6].mxu1 }
 0x4f2   : > { %v4685_v5 = vpop.f32.mrb[7].mxu1  ;;  %v1442_v6 = vadd.f32 %v6677_v56, %v1432_v2 }
 0x4f4   : > { %v1449_v7 = vsel %vm1445_vm3, %v1442_v6, -inf }
 0x4f5   : > { %1450 = vmax.xlane.f32.xlu1 %v1449_v7 }
 0x4f7   : > { %v1382_v8 = vpop.f32.mrb[8].mxu1 }
 0x4f8   : > { %v1433_v10 = vmul.f32 0.25, %v1382_v8  ;;  %v4690_v11 = vpop.f32.mrb[9].mxu1 }
 0x4f9   : > { %v1385_v14 = vpop.f32.mrb[10].mxu1 }
 0x4fa   : > { %v4691_v16 = vpop.f32.mrb[11].mxu1  ;;  %v1443_v17 = vadd.f32 %v6677_v56, %v1433_v10 }
 0x4fc   : > { %v1452_v18 = vsel %vm1445_vm3, %v1443_v17, -inf }
 0x4fd   : > { %1453 = vmax.xlane.f32.xlu1 %v1452_v18 }
 0x4ff   : > { %v1425_v19 = vpop.f32.mrb[4].mxu0 }
 0x500   : > { %v1434_v20 = vmul.f32 0.25, %v1425_v19  ;;  %v4696_v22 = vpop.f32.mrb[5].mxu0 }
 0x501   : > { %v1428_v23 = vpop.f32.mrb[6].mxu0  ;;  %v5091_v22 = vld [vmem:[#allocation8] sm:$0xff]  }
 0x502   : > { %v4697_v25 = vpop.f32.mrb[7].mxu0  ;;  %v1444_v26 = vadd.f32 %v6677_v56, %v1434_v20  ;;  %v5092_v23 = vld [vmem:[#allocation8 + $0x8] sm:$0xff]  }
 0x503   : > { %v5093_v25 = vld [vmem:[#allocation8 + $0x10] sm:$0xff]  }
 0x504   : > { %v1455_v27 = vsel %vm1445_vm3, %v1444_v26, -inf }
 0x505   : > { %1456 = vmax.xlane.f32.xlu0 %v1455_v27 }
 0x57a   : > { %v1448_v28 = vpop.xlane.xlu1 %1447 }
 0x57b   : > { %v1458_v29 = vsub.f32 %v1441_v62, %v1448_v28 }
 0x57d   : > { %v1462_v30 = vmul.f32 1.442695, %v1458_v29 }
 0x57f   : > { %5271 = vpow2.f32 %v1462_v30 }
 0x582   : > { %v1451_v31 = vpop.xlane.xlu1 %1450 }
 0x583   : > { %v1459_v32 = vsub.f32 %v1442_v6, %v1451_v31 }
 0x585   : > { %v1464_v33 = vmul.f32 1.442695, %v1459_v32 }
 0x587   : > { %5273 = vpow2.f32 %v1464_v33 }
 0x589   : > { %v5272_v34 = vpop.eup %5271 }
 0x58a   : > { %v1454_v35 = vpop.xlane.xlu1 %1453  ;;  %v1470_v36 = vsel %vm1445_vm3, %v5272_v34, 0.0 }
 0x58b   : > { %v1460_v37 = vsub.f32 %v1443_v17, %v1454_v35  ;;  %1471 = vadd.xlane.f32.xlu1 %v1470_v36 }
 0x58d   : > { %v1466_v38 = vmul.f32 1.442695, %v1460_v37 }
 0x58f   : > { %5275 = vpow2.f32 %v1466_v38 }
 0x591   : > { %v5274_v39 = vpop.eup %5273 }
 0x592   : > { %v1457_v40 = vpop.xlane.xlu0 %1456  ;;  %v1473_v41 = vsel %vm1445_vm3, %v5274_v39, 0.0 }
 0x593   : > { %v1461_v42 = vsub.f32 %v1444_v26, %v1457_v40  ;;  %1474 = vadd.xlane.f32.xlu1 %v1473_v41  ;;  %v5094_v26 = vld [vmem:[#allocation8 + $0x18] sm:$0xff]  }
 0x595   : > { %v1468_v43 = vmul.f32 1.442695, %v1461_v42 }
 0x597   : > { %5277 = vpow2.f32 %v1468_v43 }
 0x599   : > { %v5276_v44 = vpop.eup %5275 }
 0x59a   : > { %v1476_v45 = vsel %vm1445_vm3, %v5276_v44, 0.0 }
 0x59b   : > { %1477 = vadd.xlane.f32.xlu1 %v1476_v45  ;;  %v4390_v45 = vld [vmem:[#allocation10] ss:$0 sm:$0xff] }
 0x5a1   : > { %v5278_v46 = vpop.eup %5277 }
 0x5a2   : > { %v1479_v47 = vsel %vm1445_vm3, %v5278_v46, 0.0 }
 0x5a3   : > { %1480 = vadd.xlane.f32.xlu1 %v1479_v47 }
 0x5d6   : > { %1086 = vxpose.xlu1.b32.start.end [1/1] (short) (narrow) %v6650_v21, 64 }
 0x618   : > { %v1472_v48 = vpop.xlane.xlu1 %1471 }
 0x619   : > { %5279 = vrcp.f32 %v1472_v48 }
 0x620   : > { %v1475_v49 = vpop.xlane.xlu1 %1474 }
 0x621   : > { %5281 = vrcp.f32 %v1475_v49 }
 0x623   : > { %v5280_v50 = vpop.eup %5279 }
 0x624   : > { %v1486_v51 = vmul.f32 %v5280_v50, %v5272_v34 }
 0x626   : > { %v1490_v52 = vpack.c.bf16 %v1486_v51, %v1486_v51 }
 0x628   : > { %v1498_v53 = vsel %vm1445_vm3, %v1490_v52, 0  ;;  %v1478_v21 = vpop.xlane.xlu1 %1477 }
 0x629   : > { %4699 = vmatpush3.bf16.xpose.msra.mxu1 %v1498_v53  ;;  %5283 = vrcp.f32 %v1478_v21  ;;  %v5095_v21 = vld [vmem:[#allocation14] sm:$0xff]  }
 0x62a   : > { %4710 = vmatprep.subr.bf16.mxu1 %v5932_v24 }
 0x62b   : > { %v5282_v54 = vpop.eup %5281 }
 0x62c   : > { %v1487_v55 = vmul.f32 %v5282_v54, %v5274_v39 }
 0x62e   : > { %v1491_v57 = vpack.c.bf16 %v1487_v55, %v1487_v55 }
 0x630   : > { %v1545_v58 = vsel %vm1445_vm3, %v1491_v57, 0  ;;  %v1481_v59 = vpop.xlane.xlu1 %1480 }
 0x631   : > { %4705 = vmatpush3.bf16.xpose.msra.mxu0 %v1545_v58  ;;  %5285 = vrcp.f32 %v1481_v59  ;;  %v5096_v59 = vld [vmem:[#allocation14 + $0x8] sm:$0xff]  }
 0x632   : > { %4716 = vmatprep.subr.bf16.mxu0 %v5932_v24 }
 0x633   : > { %v5284_v60 = vpop.eup %5283 }
 0x634   : > { %v1488_v61 = vmul.f32 %v5284_v60, %v5276_v44  ;;  %v5097_v60 = vld [vmem:[#allocation14 + $0x10] sm:$0xff]  }
 0x636   : > { %v1492_v63 = vpack.c.bf16 %v1488_v61, %v1488_v61 }
 0x638   : > { %v1592_v4 = vsel %vm1445_vm3, %v1492_v63, 0 }
 0x63b   : > { %v5286_v1 = vpop.eup %5285 }
 0x63c   : > { %v1489_v5 = vmul.f32 %v5286_v1, %v5278_v46 }
 0x63e   : > { %v1493_v7 = vpack.c.bf16 %v1489_v5, %v1489_v5 }
 0x640   : > { %v1639_v11 = vsel %vm1445_vm3, %v1493_v7, 0 }
 0x656   : > { %v1102_v62 = vpop.trf.xlu1 }
 0x65a   : > { %v1103_v2 = vpop.trf.xlu1 }
 0x65b   : > { %v1122_v3 = vpack.c.bf16 %v1103_v2, %v1102_v62  ;;  %v4396_v2 = vld [vmem:[#allocation11] ss:$0 sm:$0xff] }
 0x65d   : > { %4701 = vmatmul.mubr.msk.bf16.vlgmr.msra.gmra.mrb[12].mxu1 %vm1445_vm3, %v1122_v3 }
 0x65e   : > { %4711 = vmatpush3.bf16.xpose.msra.mxu1 %v1592_v4  ;;  %v1104_v6 = vpop.trf.xlu1  ;;  %4712 = vmatprep.mubr.msk.bf16.mxu1 %vm5933_vm1, %v5932_v24  ;;  %v4397_v4 = vld [vmem:[#allocation13] ss:$0 sm:$0xff] }
 0x65f   : > { %4778 = vmatprep.subr.bf16.mxu1 %v5932_v24 }
 0x662   : > { %v1105_v8 = vpop.trf.xlu1 }
 0x663   : > { %v1123_v10 = vpack.c.bf16 %v1105_v8, %v1104_v6  ;;  %v5099_v8 = vld [vmem:[%s7156_s21] sm:$0xff]  }
 0x665   : > { %4707 = vmatmul.mubr.msk.bf16.vlgmr.msra.gmra.mrb[8].mxu0 %vm1445_vm3, %v1123_v10  ;;  %v5100_v10 = vld [vmem:[%s7156_s21 + $0x8] sm:$0xff]  }
 0x666   : > { %4717 = vmatpush3.bf16.xpose.msra.mxu0 %v1639_v11  ;;  %v1106_v14 = vpop.trf.xlu1  ;;  %4718 = vmatprep.mubr.msk.bf16.mxu0 %vm5933_vm1, %v5932_v24  ;;  %v5101_v11 = vld [vmem:[%s7156_s21 + $0x10] sm:$0xff]  }
 0x667   : > { %4722 = vmatprep.subr.bf16.mxu0 %v5932_v24 }
 0x66a   : > { %v1107_v16 = vpop.trf.xlu1 }
 0x66b   : > { %v1124_v17 = vpack.c.bf16 %v1107_v16, %v1106_v14  ;;  %v5102_v14 = vld [vmem:[%s7156_s21 + $0x18] sm:$0xff]   ;;  %v5103_v16 = vld [vmem:[%s7156_s21 + $0x20] sm:$0xff]  }
 0x66d   : > { %4713 = vmatmul.mubr.msk.bf16.vlgmr.msra.gmra.mrb[16].mxu1 %vm1445_vm3, %v1124_v17  ;;  %v5104_v17 = vld [vmem:[%s7156_s21 + $0x28] sm:$0xff]  }
 0x66e   : > { %v1108_v18 = vpop.trf.xlu1  ;;  %4780 = vmatprep.mubr.msk.bf16.mxu1 %vm5933_vm1, %v5932_v24 }
 0x672   : > { %v1109_v19 = vpop.trf.xlu1 }
 0x673   : > { %v1125_v20 = vpack.c.bf16 %v1109_v19, %v1108_v18  ;;  %v5105_v18 = vld [vmem:[%s7156_s21 + $0x30] sm:$0xff]   ;;  %v5106_v19 = vld [vmem:[%s7156_s21 + $0x38] sm:$0xff]  }
 0x675   : > { %4719 = vmatmul.mubr.msk.bf16.vlgmr.msra.gmra.mrb[12].mxu0 %vm1445_vm3, %v1125_v20  ;;  %v4398_v20 = vld [vmem:[#allocation16] ss:$0 sm:$0xff] }
 0x676   : > { %4730 = vmatprep.mubr.msk.bf16.mxu0 %vm5933_vm1, %v5932_v24  ;;  %4723 = vmatpush3.bf16.msra.mxu0 %v5091_v22 }
 0x677   : > { %4724 = vmatprep.subr.bf16.mxu0 %v5932_v24 }
 0x67a   : > { %4725 = vmatpush3.bf16.msra.mxu0 %v5092_v23 }
 0x67b   : > { %4726 = vmatprep.subr.bf16.mxu0 %v5932_v24 }
 0x67e   : > { %4727 = vmatpush3.bf16.msra.mxu0 %v5093_v25 }
 0x67f   : > { %4728 = vmatprep.subr.bf16.mxu0 %v5932_v24 }
 0x682   : > { %4729 = vmatpush3.bf16.msra.mxu0 %v5094_v26 }
 0x683   : > { %4734 = vmatprep.subr.bf16.mxu0 %v5932_v24 }
 0x730   : > { %v1534_v27 = vpop.f32.mrb[12].mxu1 }
 0x731   : > { %1682 = vxpose.xlu0.b32.start [1/8] (short) (narrow) %v1534_v27, 8  ;;  %v4702_v28 = vpop.f32.mrb[13].mxu1 }
 0x732   : > { %v1537_v29 = vpop.f32.mrb[14].mxu1 }
 0x733   : > { %v4703_v30 = vpop.f32.mrb[15].mxu1 }
 0x735   : > { %1683 = vxpose.xlu0.b32.cont [2/8] (short) (narrow) %v1537_v29, 8 }
 0x738   : > { %v1581_v31 = vpop.f32.mrb[8].mxu0 }
 0x739   : > { %1684 = vxpose.xlu0.b32.cont [3/8] (short) (narrow) %v1581_v31, 8  ;;  %v4708_v32 = vpop.f32.mrb[9].mxu0 }
 0x73a   : > { %v1584_v33 = vpop.f32.mrb[10].mxu0 }
 0x73b   : > { %v4709_v34 = vpop.f32.mrb[11].mxu0 }
 0x73d   : > { %1685 = vxpose.xlu0.b32.cont [4/8] (short) (narrow) %v1584_v33, 8 }
 0x740   : > { %v1628_v35 = vpop.f32.mrb[16].mxu1 }
 0x741   : > { %1686 = vxpose.xlu0.b32.cont [5/8] (short) (narrow) %v1628_v35, 8  ;;  %v4714_v36 = vpop.f32.mrb[17].mxu1 }
 0x742   : > { %v1631_v37 = vpop.f32.mrb[18].mxu1 }
 0x743   : > { %v4715_v38 = vpop.f32.mrb[19].mxu1 }
 0x745   : > { %1687 = vxpose.xlu0.b32.cont [6/8] (short) (narrow) %v1631_v37, 8 }
 0x748   : > { %v1675_v39 = vpop.f32.mrb[12].mxu0 }
 0x749   : > { %1688 = vxpose.xlu0.b32.cont [7/8] (short) (narrow) %v1675_v39, 8  ;;  %v4720_v40 = vpop.f32.mrb[13].mxu0 }
 0x74a   : > { %v1678_v41 = vpop.f32.mrb[14].mxu0 }
 0x74b   : > { %v4721_v42 = vpop.f32.mrb[15].mxu0 }
 0x74d   : > { %1689 = vxpose.xlu0.b32.end [8/8] (short) (narrow) %v1678_v41, 8 }
 0x7b1   : > { %v1698_v43 = vpop.trf.xlu0 }
 0x7b2   : > { %v1723_v44 = vpack.c.bf16 %v1698_v43, %v1698_v43 }
 0x7b4   : > { %4731 = vmatmul.mubr.msk.bf16.vlgmr.msra.gmra.mrb[16].mxu0 %vm1009_vm0, %v1723_v44 }
 0x7b5   : > { %4742 = vmatprep.mubr.msk.bf16.mxu0 %vm5933_vm1, %v5932_v24  ;;  %4735 = vmatpush3.bf16.msra.mxu0 %v5095_v21 }
 0x7b6   : > { %4736 = vmatprep.subr.bf16.mxu0 %v5932_v24 }
 0x7b9   : > { %4737 = vmatpush3.bf16.msra.mxu0 %v5096_v59 }
 0x7ba   : > { %4738 = vmatprep.subr.bf16.mxu0 %v5932_v24 }
 0x7bd   : > { %4739 = vmatpush3.bf16.msra.mxu0 %v5097_v60 }
 0x7be   : > { %4740 = vmatprep.subr.bf16.mxu0 %v5932_v24 }
 0x887   : > { %v1791_v46 = vpop.f32.mrb[16].mxu0 }
 0x888   : > { %v1792_v47 = vadd.f32 %v4390_v45, %v1791_v46  ;;  %v4732_v48 = vpop.f32.mrb[17].mxu0 }
 0x889   : > { %v1794_v49 = vpop.f32.mrb[18].mxu0  ;;  %v5934_v48 = vmov -1.0  }
 0x88a   : > { %v4733_v50 = vpop.f32.mrb[19].mxu0  ;;  %v1797_v51 = vadd.f32 %v1792_v47, %v6635_v9  ;;  %v5098_v9 = vld [vmem:[#allocation14 + $0x18] sm:$0xff]  }
 0x88b   : > { %4741 = vmatpush3.bf16.msra.mxu0 %v5098_v9 }
 0x88c   : > { %v1800_v52 = vsel %vm1009_vm0, %v1797_v51, 0.0  ;;  %4746 = vmatprep.subr.bf16.mxu0 %v5932_v24 }
 0x88d   : > { %1801 = vadd.xlane.f32.xlu1 %v1800_v52 }
 0x91a   : > { %v1802_v53 = vpop.xlane.xlu1 %1801 }
 0x91b   : > { %v1804_v54 = vmul.f32 0.015625, %v1802_v53 }
 0x91d   : > { %v1805_v55 = vsub.f32 %v1797_v51, %v1804_v54 }
 0x91f   : > { %v1806_v57 = vmul.f32 %v1805_v55, %v1805_v55 }
 0x921   : > { %v1807_v58 = vsel %vm1009_vm0, %v1806_v57, 0.0 }
 0x922   : > { %1808 = vadd.xlane.f32.xlu0 %v1807_v58 }
 0x9af   : > { %v1809_v61 = vpop.xlane.xlu0 %1808 }
 0x9b0   : > { %v1810_v62 = vmul.f32 0.015625, %v1809_v61 }
 0x9b2   : > { %v1811_v63 = vadd.f32 1e-05, %v1810_v62 }
 0x9b4   : > { %5287 = vrsqrt.f32 %v1811_v63 }
 0x9be   : > { %v5288_v1 = vpop.eup %5287 }
 0x9bf   : > { %v1813_v3 = vmul.f32 %v5288_v1, %v1805_v55  ;;  %v4404_v55 = vld [vmem:[#allocation17] ss:$0 sm:$0xff] }
 0x9c1   : > { %v1820_v5 = vmul.f32 %v4396_v2, %v1813_v3 }
 0x9c3   : > { %v6726_v6 = vadd.f32 %v4397_v4, %v1820_v5  ;;  %v5109_v4 = vld [vmem:[%s7155_s6 + $0x44] ss:$8 sps:$4 sm:$0xff]   ;;  %v5107_v5 = vld [vmem:[%s7155_s6 + $0x40] ss:$8 sps:$4 sm:$0xff]  }
 0x9c5   : > { %v1837_v7 = vpack.c.bf16 %v6726_v6, %v6726_v6 }
 0x9c7   : > { %4743 = vmatmul.mubr.msk.bf16.vlgmr.msra.gmra.mrb[20].mxu0 %vm1009_vm0, %v1837_v7  ;;  %v5110_v7 = vld [vmem:[%s7155_s6 + $0x50] ss:$8 sps:$4 sm:$0xff]  }
 0x9c8   : > { %4762 = vmatprep.mubr.msk.bf16.mxu0 %vm5933_vm1, %v5932_v24  ;;  %4747 = vmatpush3.bf16.msra.mxu0 %v5099_v8  ;;  %v5115_v8 = vld [vmem:[%s7155_s6 + $0x64] ss:$8 sps:$4 sm:$0xff]  }
 0x9c9   : > { %4748 = vmatprep.subr.bf16.mxu0 %v5932_v24 }
 0x9cc   : > { %4749 = vmatpush3.bf16.msra.mxu0 %v5100_v10  ;;  %v5113_v10 = vld [vmem:[%s7155_s6 + $0x60] ss:$8 sps:$4 sm:$0xff]  }
 0x9cd   : > { %4750 = vmatprep.subr.bf16.mxu0 %v5932_v24 }
 0x9d0   : > { %4751 = vmatpush3.bf16.msra.mxu0 %v5101_v11  ;;  %v5116_v11 = vld [vmem:[%s7155_s6 + $0x70] ss:$8 sps:$4 sm:$0xff]  }
 0x9d1   : > { %4752 = vmatprep.subr.bf16.mxu0 %v5932_v24 }
 0x9d4   : > { %4753 = vmatpush3.bf16.msra.mxu0 %v5102_v14  ;;  %v5118_v14 = vld [vmem:[%s7155_s6 + $0x74] ss:$8 sps:$4 sm:$0xff]  }
 0x9d5   : > { %4754 = vmatprep.subr.bf16.mxu0 %v5932_v24 }
 0x9d8   : > { %4755 = vmatpush3.bf16.msra.mxu0 %v5103_v16 }
 0x9d9   : > { %4756 = vmatprep.subr.bf16.mxu0 %v5932_v24 }
 0x9dc   : > { %4757 = vmatpush3.bf16.msra.mxu0 %v5104_v17 }
 0x9dd   : > { %4758 = vmatprep.subr.bf16.mxu0 %v5932_v24 }
 0x9e0   : > { %4759 = vmatpush3.bf16.msra.mxu0 %v5105_v18 }
 0x9e1   : > { %4760 = vmatprep.subr.bf16.mxu0 %v5932_v24 }
 0x9e4   : > { %4761 = vmatpush3.bf16.msra.mxu0 %v5106_v19 }
 0x9e5   : > { %2145 = vmatprep.subr.bf16.mxu0 %v5109_v4 }
 0xa9a   : > { %v1905_v22 = vpop.f32.mrb[20].mxu0 }
 0xa9b   : > { %v1906_v23 = vadd.f32 %v4398_v20, %v1905_v22  ;;  %v4744_v25 = vpop.f32.mrb[21].mxu0  ;;  %v4413_v20 = vld [vmem:[#allocation19] ss:$0 sm:$0xff] }
 0xa9c   : > { %v1908_v26 = vpop.f32.mrb[22].mxu0 }
 0xa9d   : > { %v1912_v27 = vmul.f32 0.70710677, %v1906_v23  ;;  %v4745_v28 = vpop.f32.mrb[23].mxu0  ;;  %v1911_v51 = vmul.f32 0.5, %v1906_v23  ;;  %v4414_v23 = vld [vmem:[#allocation20] ss:$0 sm:$0xff] }
 0xa9e   : > { %v6801_v28 = vld [vmem:[#allocation7 + $0x2] sm:$0x3] }
 0xa9f   : > { %v1915_v29 = vand.u32 2147483647, %v1912_v27  ;;  %vm1913_vm4 = vcmp.ge.f32.partialorder %v1912_v27, 0.0 }
 0xaa0   : > { %v1914_v49 = vsel %vm1913_vm4, 1.0, %v5934_v48 }
 0xaa1   : > { %v1916_v30 = vmul.f32 0.3275911, %v1915_v29  ;;  %v1928_v32 = vsub.f32 0.0, %v1915_v29 }
 0xaa3   : > { %v1917_v31 = vadd.f32 1.0, %v1916_v30  ;;  %v1929_v34 = vmul.f32 %v1928_v32, %v1915_v29  ;;  %v2095_v29 = vrot.slane %v6801_v28, %v6643_v13 }
 0xaa5   : > { %5289 = vrcp.f32 %v1917_v31  ;;  %v1930_v37 = vmul.f32 1.442695, %v1929_v34 }
 0xaa7   : > { %5291 = vpow2.f32 %v1930_v37 }
 0xaaf   : > { %v5290_v33 = vpop.eup %5289 }
 0xab0   : > { %v1919_v35 = vmul.f32 1.0614054, %v5290_v33 }
 0xab1   : > { %v5292_v45 = vpop.eup %5291 }
 0xab2   : > { %v1920_v36 = vadd.f32 -1.4531521, %v1919_v35 }
 0xab4   : > { %v1921_v38 = vmul.f32 %v5290_v33, %v1920_v36 }
 0xab6   : > { %v1922_v39 = vadd.f32 1.4214138, %v1921_v38 }
 0xab8   : > { %v1923_v40 = vmul.f32 %v5290_v33, %v1922_v39 }
 0xaba   : > { %v1924_v41 = vadd.f32 -0.28449672, %v1923_v40 }
 0xabc   : > { %v1925_v42 = vmul.f32 %v5290_v33, %v1924_v41 }
 0xabe   : > { %v1926_v43 = vadd.f32 0.2548296, %v1925_v42 }
 0xac0   : > { %v1927_v44 = vmul.f32 %v5290_v33, %v1926_v43 }
 0xac2   : > { %v1932_v46 = vmul.f32 %v5292_v45, %v1927_v44 }
 0xac4   : > { %v1933_v47 = vsub.f32 1.0, %v1932_v46 }
 0xac6   : > { %v1934_v50 = vmul.f32 %v1933_v47, %v1914_v49 }
 0xac8   : > { %v1935_v52 = vadd.f32 1.0, %v1934_v50 }
 0xaca   : > { %v1936_v53 = vmul.f32 %v1935_v52, %v1911_v51 }
 0xacc   : > { %v1954_v54 = vpack.c.bf16 %v1936_v53, %v1936_v53 }
 0xace   : > { %4763 = vmatmul.mubr.bf16.vlgmr.msra.gmra.mrb[24].mxu0 %v1954_v54 }
 0xacf   : > { %2177 = vmatprep.mubr.bf16.mxu0 %v5931_v0  ;;  %2146 = vmatpush1.bf16.msra.mxu0 %v5107_v5 }
 0xba1   : > { %v2043_v57 = vpop.f32.mrb[24].mxu0 }
 0xba2   : > { %v2044_v58 = vadd.f32 %v4404_v55, %v2043_v57  ;;  %v4764_v21 = vpop.f32.mrb[25].mxu0 }
 0xba3   : > { %v2046_v59 = vpop.f32.mrb[26].mxu0 }
 0xba4   : > { %v4765_v60 = vpop.f32.mrb[27].mxu0  ;;  %v2049_v9 = vadd.f32 %v2044_v58, %v6726_v6  ;;  %v5112_v6 = vld [vmem:[%s7155_s6 + $0x54] ss:$8 sps:$4 sm:$0xff]   ;;  %s4107_s6 = sshll.u32 %s942_s25, 4  ;;  %s6993_s6 = int_to_ptr.vmem [resolvable:$true] %s4107_s6 }
 0xba5   : > { %2147 = vmatprep.subr.bf16.mxu0 %v5112_v6  ;;  %s5801_s4 = scalar_lea.vmem %s6993_s6, 16  ;;  %p5808_p12 = scmp.lt.s32.totalorder %s6993_s6, %s5806_s12 }
 0xba6   : > { %v2052_v61 = vsel %vm1009_vm0, %v2049_v9, 0.0  ;;  %2148 = vmatpush1.bf16.msra.mxu0 %v5110_v7  ;;  %p5802_p5 = scmp.ne.s32.totalorder %s6993_s6, %s5801_s4 }
 0xba7   : > { %2053 = vadd.xlane.f32.xlu1 %v2052_v61  ;;  %2149 = vmatprep.subr.bf16.mxu0 %v5115_v8 }
 0xba8   : > { %p5803_p1 = pnand %p5802_p5, %p7162_p10 }
 0xbaa   : > { %2150 = vmatpush1.bf16.msra.mxu0 %v5113_v10  ;;  %p5804_p11 = pneg %p5803_p1 }
 0xbab   : > { %2151 = vmatprep.subr.bf16.mxu0 %v5118_v14 }
 0xbae   : > { %2152 = vmatpush1.bf16.msra.mxu0 %v5116_v11 }
 0xbaf   : > { %4766 = vmatprep.subr.bf16.mxu0 %v5932_v24 }
 0xc34   : > { %v2054_v62 = vpop.xlane.xlu1 %2053 }
 0xc35   : > { %v2055_v63 = vmul.f32 0.015625, %v2054_v62 }
 0xc37   : > { %v2056_v1 = vsub.f32 %v2049_v9, %v2055_v63 }
 0xc39   : > { %v2057_v2 = vmul.f32 %v2056_v1, %v2056_v1 }
 0xc3b   : > { %v2058_v3 = vsel %vm1009_vm0, %v2057_v2, 0.0 }
 0xc3c   : > { %2059 = vadd.xlane.f32.xlu1 %v2058_v3 }
 0xcc9   : > { %v2060_v16 = vpop.xlane.xlu1 %2059 }
 0xcca   : > { %v2061_v17 = vmul.f32 0.015625, %v2060_v16 }
 0xccc   : > { %v2062_v18 = vadd.f32 1e-05, %v2061_v17 }
 0xcce   : > { %5293 = vrsqrt.f32 %v2062_v18 }
 0xcd8   : > { %v5294_v19 = vpop.eup %5293 }
 0xcd9   : > { %v2064_v22 = vmul.f32 %v5294_v19, %v2056_v1 }
 0xcdb   : > { %v2071_v25 = vmul.f32 %v4413_v20, %v2064_v22 }
 0xcdd   : > { %v6794_v26 = vadd.f32 %v4414_v23, %v2071_v25 }
 0xcdf   : > { %v2090_v27 = vpack.c.bf16 %v6794_v26, %v6794_v26 }
 0xce1   : > { %4431 = vmatmul.mubr.msk.bf16.vlgmr.msra.gmra.mrb[28].mxu0 %vm1009_vm0, %v2090_v27 }
 0xce2   : > { %4768 = vmatprep.mubr.msk.bf16.mxu0 %vm5933_vm1, %v5932_v24 }
 0xdb4   : > { %v2179_v30 = vpop.f32.mrb[28].mxu0 }
 0xdb5   : > { %v2180_v31 = vadd.f32 %v2179_v30, %v2095_v29  ;;  %v6805_v32 = vpop.f32.mrb[29].mxu0 }
 0xdb6   : > { %v2183_v33 = vpop.f32.mrb[30].mxu0 }
 0xdb7   : > { %v2184_v34 = vpop.f32.mrb[31].mxu0  ;;  %2186 = vxpose.xlu1.b32.start.end [1/1] (short) %v2180_v31, 128 }
 0xe37   : > { %v2202_v35 = vpop.trf.xlu1 }
 0xe38   : > { %2258 = vxpose.xlu0.b32.start [1/2] (short) (narrow) %v2202_v35, 8 }
 0xe3b   : > { %v2203_v36 = vpop.trf.xlu1 }
 0xe3c   : > { %2259 = vxpose.xlu0.b32.end [2/2] (short) (narrow) %v2203_v36, 8 }
 0xe3f   : > { %v2204_v37 = vpop.trf.xlu1 }
 0xe40   : > { %2290 = vxpose.xlu1.b32.start [1/2] (short) (narrow) %v2204_v37, 8 }
 0xe43   : > { %v2205_v38 = vpop.trf.xlu1 }
 0xe44   : > { %2291 = vxpose.xlu1.b32.end [2/2] (short) (narrow) %v2205_v38, 8 }
 0xe47   : > { %v2206_v39 = vpop.trf.xlu1 }
 0xe48   : > { %2322 = vxpose.xlu0.b32.start [1/2] (short) (narrow) %v2206_v39, 8 }
 0xe4b   : > { %v2207_v40 = vpop.trf.xlu1 }
 0xe4c   : > { %2323 = vxpose.xlu0.b32.end [2/2] (short) (narrow) %v2207_v40, 8 }
 0xe4f   : > { %v2208_v41 = vpop.trf.xlu1 }
 0xe50   : > { %2354 = vxpose.xlu0.b32.start [1/2] (short) (narrow) %v2208_v41, 8 }
 0xe53   : > { %v2209_v42 = vpop.trf.xlu1 }
 0xe54   : > { %2355 = vxpose.xlu0.b32.end [2/2] (short) (narrow) %v2209_v42, 8 }
 0xe57   : > { %v2210_v43 = vpop.trf.xlu1 }
 0xe5b   : > { %v2211_v44 = vpop.trf.xlu1 }
 0xe5c   : > { %v2250_v45 = vpack.c.bf16 %v2211_v44, %v2210_v43 }
 0xe5e   : > { %4767 = vmatpush3.bf16.msra.mxu0 %v2250_v45 }
 0xe5f   : > { %v2212_v46 = vpop.trf.xlu1  ;;  %4772 = vmatprep.subr.bf16.mxu0 %v5932_v24 }
 0xe63   : > { %v2213_v47 = vpop.trf.xlu1 }
 0xe64   : > { %v2251_v49 = vpack.c.bf16 %v2213_v47, %v2212_v46 }
 0xe67   : > { %v2214_v50 = vpop.trf.xlu1 }
 0xe6b   : > { %v2215_v51 = vpop.trf.xlu1 }
 0xe6c   : > { %v2252_v52 = vpack.c.bf16 %v2215_v51, %v2214_v50 }
 0xe6e   : > { %4779 = vmatpush3.bf16.msra.mxu1 %v2252_v52 }
 0xe6f   : > { %4790 = vmatprep.subr.bf16.mxu1 %v5932_v24  ;;  %v2216_v53 = vpop.trf.xlu1 }
 0xe73   : > { %v2217_v57 = vpop.trf.xlu1 }
 0xe74   : > { %v2253_v58 = vpack.c.bf16 %v2217_v57, %v2216_v53 }
 0xeb8   : > { %v2274_v54 = vpop.trf.xlu0 }
 0xeb9   : > { %v2386_v55 = vpack.c.bf16 %v2274_v54, %v2274_v54 }
 0xebb   : > { %4769 = vmatmul.mubr.msk.bf16.vlgmr.msra.gmra.mrb[32].mxu0 %vm1258_vm2, %v2386_v55 }
 0xebc   : > { %4773 = vmatpush3.bf16.msra.mxu0 %v2251_v49  ;;  %4774 = vmatprep.mubr.msk.bf16.mxu0 %vm5933_vm1, %v5932_v24 }
 0xebd   : > { %4784 = vmatprep.subr.bf16.mxu0 %v5932_v24 }
 0xec0   : > { %v2306_v21 = vpop.trf.xlu1 }
 0xec1   : > { %v2387_v59 = vpack.c.bf16 %v2306_v21, %v2306_v21 }
 0xec3   : > { %4775 = vmatmul.mubr.msk.bf16.vlgmr.msra.gmra.mrb[36].mxu0 %vm1258_vm2, %v2387_v59 }
 0xec4   : > { %4785 = vmatpush3.bf16.msra.mxu0 %v2253_v58  ;;  %4786 = vmatprep.mubr.msk.bf16.mxu0 %vm5933_vm1, %v5932_v24  ;;  %v2099_v58 = vrot.slane %v6801_v28, %v6646_v15 }
 0xec5   : > { %4796 = vmatprep.subr.bf16.mxu0 %v5932_v24 }
 0xec6   : > { %v2182_v21 = vadd.f32 %v6805_v32, %v2099_v58 }
 0xec8   : > { %v2338_v60 = vpop.trf.xlu0 }
 0xec9   : > { %v2388_v9 = vpack.c.bf16 %v2338_v60, %v2338_v60 }
 0xecb   : > { %4781 = vmatmul.mubr.msk.bf16.vlgmr.msra.gmra.mrb[20].mxu1 %vm1258_vm2, %v2388_v9 }
 0xecc   : > { %4792 = vmatprep.mubr.msk.bf16.mxu1 %vm5933_vm1, %v5932_v24 }
 0xed0   : > { %v2370_v61 = vpop.trf.xlu0 }
 0xed1   : > { %v2389_v62 = vpack.c.bf16 %v2370_v61, %v2370_v61 }
 0xed3   : > { %4787 = vmatmul.mubr.msk.bf16.vlgmr.msra.gmra.mrb[40].mxu0 %vm1258_vm2, %v2389_v62 }
 0xed4   : > { %4798 = vmatprep.mubr.msk.bf16.mxu0 %vm5933_vm1, %v5932_v24 }
 0xf8e   : > { %v2427_v63 = vpop.f32.mrb[32].mxu0 }
 0xf8f   : > { %v2562_v1 = vmul.f32 0.25, %v2427_v63  ;;  %v4770_v2 = vpop.f32.mrb[33].mxu0 }
 0xf90   : > { %v2430_v3 = vpop.f32.mrb[34].mxu0 }
 0xf91   : > { %v2566_v4 = vadd.f32 %v2562_v1, %v6677_v56  ;;  %v4771_v5 = vpop.f32.mrb[35].mxu0 }
 0xf93   : > { %v2570_v6 = vsel %vm1445_vm3, %v2566_v4, -inf }
 0xf94   : > { %2571 = vmax.xlane.f32.xlu0 %v2570_v6 }
 0xf96   : > { %v2470_v7 = vpop.f32.mrb[36].mxu0 }
 0xf97   : > { %v2563_v8 = vmul.f32 0.25, %v2470_v7  ;;  %v4776_v10 = vpop.f32.mrb[37].mxu0 }
 0xf98   : > { %v2473_v11 = vpop.f32.mrb[38].mxu0 }
 0xf99   : > { %v2567_v14 = vadd.f32 %v2563_v8, %v6677_v56  ;;  %v4777_v16 = vpop.f32.mrb[39].mxu0 }
 0xf9b   : > { %v2573_v17 = vsel %vm1445_vm3, %v2567_v14, -inf }
 0xf9c   : > { %2574 = vmax.xlane.f32.xlu1 %v2573_v17 }
 0xf9e   : > { %v2513_v18 = vpop.f32.mrb[20].mxu1 }
 0xf9f   : > { %v2564_v19 = vmul.f32 0.25, %v2513_v18  ;;  %v4782_v20 = vpop.f32.mrb[21].mxu1 }
 0xfa0   : > { %v2516_v22 = vpop.f32.mrb[22].mxu1 }
 0xfa1   : > { %v4783_v23 = vpop.f32.mrb[23].mxu1  ;;  %v2568_v25 = vadd.f32 %v2564_v19, %v6677_v56 }
 0xfa3   : > { %v2576_v27 = vsel %vm1445_vm3, %v2568_v25, -inf }
 0xfa4   : > { %2577 = vmax.xlane.f32.xlu0 %v2576_v27 }
 0xfa6   : > { %v2556_v29 = vpop.f32.mrb[40].mxu0 }
 0xfa7   : > { %v2565_v30 = vmul.f32 0.25, %v2556_v29  ;;  %v4788_v31 = vpop.f32.mrb[41].mxu0 }
 0xfa8   : > { %v2559_v33 = vpop.f32.mrb[42].mxu0 }
 0xfa9   : > { %v4789_v34 = vpop.f32.mrb[43].mxu0  ;;  %v2569_v35 = vadd.f32 %v2565_v30, %v6677_v56 }
 0xfaa   : > { %v5119_v34 = vld [vmem:[#allocation8 + $0x20] sm:$0xff]  }
 0xfab   : > { %v2579_v36 = vsel %vm1445_vm3, %v2569_v35, -inf }
 0xfac   : > { %2580 = vmax.xlane.f32.xlu0 %v2579_v36  ;;  %v5121_v36 = vld [vmem:[#allocation8 + $0x30] sm:$0xff]  }
0x1021   : > { %v2572_v37 = vpop.xlane.xlu0 %2571 }
0x1022   : > { %v2582_v38 = vsub.f32 %v2566_v4, %v2572_v37  ;;  %v5122_v37 = vld [vmem:[#allocation8 + $0x38] sm:$0xff]  }
0x1024   : > { %v2586_v39 = vmul.f32 1.442695, %v2582_v38 }
0x1026   : > { %5295 = vpow2.f32 %v2586_v39 }
0x1029   : > { %v2575_v40 = vpop.xlane.xlu1 %2574 }
0x102a   : > { %v2583_v41 = vsub.f32 %v2567_v14, %v2575_v40 }
0x102c   : > { %v2588_v42 = vmul.f32 1.442695, %v2583_v41 }
0x102e   : > { %5297 = vpow2.f32 %v2588_v42 }
0x1030   : > { %v5296_v43 = vpop.eup %5295 }
0x1031   : > { %v2578_v44 = vpop.xlane.xlu0 %2577  ;;  %v2594_v45 = vsel %vm1445_vm3, %v5296_v43, 0.0 }
0x1032   : > { %v2584_v46 = vsub.f32 %v2568_v25, %v2578_v44  ;;  %2595 = vadd.xlane.f32.xlu0 %v2594_v45 }
0x1034   : > { %v2590_v47 = vmul.f32 1.442695, %v2584_v46 }
0x1036   : > { %5299 = vpow2.f32 %v2590_v47 }
0x1038   : > { %v5298_v56 = vpop.eup %5297 }
0x1039   : > { %v2581_v49 = vpop.xlane.xlu0 %2580  ;;  %v2597_v50 = vsel %vm1445_vm3, %v5298_v56, 0.0 }
0x103a   : > { %v2585_v51 = vsub.f32 %v2569_v35, %v2581_v49  ;;  %2598 = vadd.xlane.f32.xlu0 %v2597_v50  ;;  %v5120_v35 = vld [vmem:[#allocation8 + $0x28] sm:$0xff]  }
0x103c   : > { %v2592_v52 = vmul.f32 1.442695, %v2585_v51 }
0x103e   : > { %5301 = vpow2.f32 %v2592_v52 }
0x1040   : > { %v5300_v53 = vpop.eup %5299 }
0x1041   : > { %v2600_v54 = vsel %vm1445_vm3, %v5300_v53, 0.0 }
0x1042   : > { %2601 = vadd.xlane.f32.xlu0 %v2600_v54 }
0x1048   : > { %v5302_v55 = vpop.eup %5301 }
0x1049   : > { %v2603_v57 = vsel %vm1445_vm3, %v5302_v55, 0.0 }
0x104a   : > { %2604 = vadd.xlane.f32.xlu0 %v2603_v57  ;;  %v4440_v57 = vld [vmem:[#allocation10 + $0x1] ss:$0 sm:$0xff] }
0x1077   : > { %2218 = vxpose.xlu0.b32.start.end [1/1] (short) (narrow) %v2182_v21, 64 }
0x10bf   : > { %v2596_v59 = vpop.xlane.xlu0 %2595 }
0x10c0   : > { %5303 = vrcp.f32 %v2596_v59 }
0x10c7   : > { %v2599_v60 = vpop.xlane.xlu0 %2598 }
0x10c8   : > { %5305 = vrcp.f32 %v2599_v60 }
0x10ca   : > { %v5304_v9 = vpop.eup %5303 }
0x10cb   : > { %v2610_v61 = vmul.f32 %v5304_v9, %v5296_v43 }
0x10cd   : > { %v2614_v62 = vpack.c.bf16 %v2610_v61, %v2610_v61 }
0x10cf   : > { %v2622_v63 = vsel %vm1445_vm3, %v2614_v62, 0  ;;  %v2602_v32 = vpop.xlane.xlu0 %2601 }
0x10d0   : > { %4791 = vmatpush3.bf16.xpose.msra.mxu1 %v2622_v63  ;;  %5307 = vrcp.f32 %v2602_v32  ;;  %v5123_v32 = vld [vmem:[#allocation14 + $0x20] sm:$0xff]  }
0x10d1   : > { %4802 = vmatprep.subr.bf16.mxu1 %v5932_v24 }
0x10d2   : > { %v5306_v1 = vpop.eup %5305 }
0x10d3   : > { %v2611_v2 = vmul.f32 %v5306_v1, %v5298_v56 }
0x10d5   : > { %v2615_v3 = vpack.c.bf16 %v2611_v2, %v2611_v2 }
0x10d7   : > { %v2669_v28 = vsel %vm1445_vm3, %v2615_v3, 0  ;;  %v2605_v4 = vpop.xlane.xlu0 %2604 }
0x10d8   : > { %4797 = vmatpush3.bf16.xpose.msra.mxu0 %v2669_v28  ;;  %5309 = vrcp.f32 %v2605_v4  ;;  %v5124_v4 = vld [vmem:[#allocation14 + $0x28] sm:$0xff]  }
0x10d9   : > { %4808 = vmatprep.subr.bf16.mxu0 %v5932_v24 }
0x10da   : > { %v5308_v5 = vpop.eup %5307 }
0x10db   : > { %v2612_v6 = vmul.f32 %v5308_v5, %v5300_v53  ;;  %v5125_v5 = vld [vmem:[#allocation14 + $0x30] sm:$0xff]  }
0x10dd   : > { %v2616_v8 = vpack.c.bf16 %v2612_v6, %v2612_v6 }
0x10df   : > { %v2716_v16 = vsel %vm1445_vm3, %v2616_v8, 0 }
0x10e2   : > { %v5310_v10 = vpop.eup %5309 }
0x10e3   : > { %v2613_v17 = vmul.f32 %v5310_v10, %v5302_v55 }
0x10e5   : > { %v2617_v19 = vpack.c.bf16 %v2613_v17, %v2613_v17 }
0x10e7   : > { %v2763_v23 = vsel %vm1445_vm3, %v2617_v19, 0 }
0x10f7   : > { %v2234_v7 = vpop.trf.xlu0 }
0x10fb   : > { %v2235_v11 = vpop.trf.xlu0 }
0x10fc   : > { %v2254_v14 = vpack.c.bf16 %v2235_v11, %v2234_v7  ;;  %v4446_v11 = vld [vmem:[#allocation11 + $0x1] ss:$0 sm:$0xff] }
0x10fe   : > { %4793 = vmatmul.mubr.msk.bf16.vlgmr.msra.gmra.mrb[24].mxu1 %vm1445_vm3, %v2254_v14 }
0x10ff   : > { %4803 = vmatpush3.bf16.xpose.msra.mxu1 %v2716_v16  ;;  %v2236_v18 = vpop.trf.xlu0  ;;  %4804 = vmatprep.mubr.msk.bf16.mxu1 %vm5933_vm1, %v5932_v24  ;;  %v4447_v16 = vld [vmem:[#allocation13 + $0x1] ss:$0 sm:$0xff] }
0x1100   : > { %4814 = vmatprep.subr.bf16.mxu1 %v5932_v24 }
0x1103   : > { %v2237_v20 = vpop.trf.xlu0 }
0x1104   : > { %v2255_v22 = vpack.c.bf16 %v2237_v20, %v2236_v18  ;;  %v5127_v20 = vld [vmem:[%s7156_s21 + $0x40] sm:$0xff]  }
0x1106   : > { %4799 = vmatmul.mubr.msk.bf16.vlgmr.msra.gmra.mrb[44].mxu0 %vm1445_vm3, %v2255_v22  ;;  %v5128_v22 = vld [vmem:[%s7156_s21 + $0x48] sm:$0xff]  }
0x1107   : > { %4809 = vmatpush3.bf16.xpose.msra.mxu0 %v2763_v23  ;;  %v2238_v25 = vpop.trf.xlu0  ;;  %4810 = vmatprep.mubr.msk.bf16.mxu0 %vm5933_vm1, %v5932_v24  ;;  %v5129_v23 = vld [vmem:[%s7156_s21 + $0x50] sm:$0xff]  }
0x1108   : > { %4826 = vmatprep.subr.bf16.mxu0 %v5932_v24 }
0x110b   : > { %v2239_v27 = vpop.trf.xlu0 }
0x110c   : > { %v2256_v29 = vpack.c.bf16 %v2239_v27, %v2238_v25  ;;  %v5130_v25 = vld [vmem:[%s7156_s21 + $0x58] sm:$0xff]   ;;  %v5131_v27 = vld [vmem:[%s7156_s21 + $0x60] sm:$0xff]  }
0x110e   : > { %4805 = vmatmul.mubr.msk.bf16.vlgmr.msra.gmra.mrb[28].mxu1 %vm1445_vm3, %v2256_v29  ;;  %v5132_v29 = vld [vmem:[%s7156_s21 + $0x68] sm:$0xff]  }
0x110f   : > { %v2240_v30 = vpop.trf.xlu0  ;;  %4822 = vmatprep.mubr.msk.bf16.mxu1 %vm5933_vm1, %v5932_v24  ;;  %4815 = vmatpush3.bf16.msra.mxu1 %v5119_v34 }
0x1110   : > { %4816 = vmatprep.subr.bf16.mxu1 %v5932_v24 }
0x1113   : > { %v2241_v31 = vpop.trf.xlu0  ;;  %4817 = vmatpush3.bf16.msra.mxu1 %v5120_v35 }
0x1114   : > { %v2257_v33 = vpack.c.bf16 %v2241_v31, %v2240_v30  ;;  %4818 = vmatprep.subr.bf16.mxu1 %v5932_v24  ;;  %v5133_v30 = vld [vmem:[%s7156_s21 + $0x70] sm:$0xff]   ;;  %v5134_v31 = vld [vmem:[%s7156_s21 + $0x78] sm:$0xff]  }
0x1116   : > { %4811 = vmatmul.mubr.msk.bf16.vlgmr.msra.gmra.mrb[48].mxu0 %vm1445_vm3, %v2257_v33  ;;  %v4448_v33 = vld [vmem:[#allocation16 + $0x1] ss:$0 sm:$0xff] }
0x1117   : > { %4834 = vmatprep.mubr.msk.bf16.mxu0 %vm5933_vm1, %v5932_v24  ;;  %4819 = vmatpush3.bf16.msra.mxu1 %v5121_v36 }
0x1118   : > { %4820 = vmatprep.subr.bf16.mxu1 %v5932_v24  ;;  %4827 = vmatpush3.bf16.msra.mxu0 %v5123_v32 }
0x1119   : > { %4828 = vmatprep.subr.bf16.mxu0 %v5932_v24 }
0x111b   : > { %4821 = vmatpush3.bf16.msra.mxu1 %v5122_v37 }
0x111c   : > { %4838 = vmatprep.subr.bf16.mxu1 %v5932_v24  ;;  %4829 = vmatpush3.bf16.msra.mxu0 %v5124_v4 }
0x111d   : > { %4830 = vmatprep.subr.bf16.mxu0 %v5932_v24 }
0x1120   : > { %4831 = vmatpush3.bf16.msra.mxu0 %v5125_v5 }
0x1121   : > { %4832 = vmatprep.subr.bf16.mxu0 %v5932_v24 }
0x11d1   : > { %v2658_v38 = vpop.f32.mrb[24].mxu1 }
0x11d2   : > { %2806 = vxpose.xlu1.b32.start [1/8] (short) (narrow) %v2658_v38, 8  ;;  %v4794_v39 = vpop.f32.mrb[25].mxu1 }
0x11d3   : > { %v2661_v40 = vpop.f32.mrb[26].mxu1 }
0x11d4   : > { %v4795_v41 = vpop.f32.mrb[27].mxu1 }
0x11d6   : > { %2807 = vxpose.xlu1.b32.cont [2/8] (short) (narrow) %v2661_v40, 8 }
0x11d9   : > { %v2705_v42 = vpop.f32.mrb[44].mxu0 }
0x11da   : > { %2808 = vxpose.xlu1.b32.cont [3/8] (short) (narrow) %v2705_v42, 8  ;;  %v4800_v43 = vpop.f32.mrb[45].mxu0 }
0x11db   : > { %v2708_v44 = vpop.f32.mrb[46].mxu0 }
0x11dc   : > { %v4801_v45 = vpop.f32.mrb[47].mxu0 }
0x11de   : > { %2809 = vxpose.xlu1.b32.cont [4/8] (short) (narrow) %v2708_v44, 8 }
0x11e1   : > { %v2752_v46 = vpop.f32.mrb[28].mxu1 }
0x11e2   : > { %v4806_v47 = vpop.f32.mrb[29].mxu1  ;;  %2810 = vxpose.xlu1.b32.cont [5/8] (short) (narrow) %v2752_v46, 8 }
0x11e3   : > { %v2755_v56 = vpop.f32.mrb[30].mxu1 }
0x11e4   : > { %v4807_v49 = vpop.f32.mrb[31].mxu1 }
0x11e6   : > { %2811 = vxpose.xlu1.b32.cont [6/8] (short) (narrow) %v2755_v56, 8 }
0x11e9   : > { %v2799_v50 = vpop.f32.mrb[48].mxu0 }
0x11ea   : > { %2812 = vxpose.xlu1.b32.cont [7/8] (short) (narrow) %v2799_v50, 8  ;;  %v4812_v51 = vpop.f32.mrb[49].mxu0 }
0x11eb   : > { %v2802_v52 = vpop.f32.mrb[50].mxu0 }
0x11ec   : > { %v4813_v53 = vpop.f32.mrb[51].mxu0 }
0x11ee   : > { %2813 = vxpose.xlu1.b32.end [8/8] (short) (narrow) %v2802_v52, 8 }
0x1252   : > { %v2822_v54 = vpop.trf.xlu1 }
0x1253   : > { %v2849_v55 = vpack.c.bf16 %v2822_v54, %v2822_v54 }
0x1255   : > { %4823 = vmatmul.mubr.msk.bf16.vlgmr.msra.gmra.mrb[32].mxu1 %vm1009_vm0, %v2849_v55 }
0x1256   : > { %4854 = vmatprep.mubr.msk.bf16.mxu1 %vm5933_vm1, %v5932_v24  ;;  %4839 = vmatpush3.bf16.msra.mxu1 %v5127_v20  ;;  %v4480_v20 = vld [vmem:[#allocation20 + $0x1] ss:$0 sm:$0xff] }
0x1257   : > { %4840 = vmatprep.subr.bf16.mxu1 %v5932_v24 }
0x125a   : > { %4841 = vmatpush3.bf16.msra.mxu1 %v5128_v22 }
0x125b   : > { %4842 = vmatprep.subr.bf16.mxu1 %v5932_v24 }
0x125e   : > { %4843 = vmatpush3.bf16.msra.mxu1 %v5129_v23 }
0x125f   : > { %4844 = vmatprep.subr.bf16.mxu1 %v5932_v24 }
0x1262   : > { %4845 = vmatpush3.bf16.msra.mxu1 %v5130_v25 }
0x1263   : > { %4846 = vmatprep.subr.bf16.mxu1 %v5932_v24 }
0x1266   : > { %4847 = vmatpush3.bf16.msra.mxu1 %v5131_v27 }
0x1267   : > { %4848 = vmatprep.subr.bf16.mxu1 %v5932_v24 }
0x126a   : > { %4849 = vmatpush3.bf16.msra.mxu1 %v5132_v29 }
0x126b   : > { %4850 = vmatprep.subr.bf16.mxu1 %v5932_v24 }
0x126e   : > { %4851 = vmatpush3.bf16.msra.mxu1 %v5133_v30 }
0x126f   : > { %4852 = vmatprep.subr.bf16.mxu1 %v5932_v24 }
0x1272   : > { %4853 = vmatpush3.bf16.msra.mxu1 %v5134_v31 }
0x1328   : > { %v2917_v58 = vpop.f32.mrb[32].mxu1 }
0x1329   : > { %v2918_v21 = vadd.f32 %v4440_v57, %v2917_v58  ;;  %v4824_v59 = vpop.f32.mrb[33].mxu1 }
0x132a   : > { %v2920_v60 = vpop.f32.mrb[34].mxu1 }
0x132b   : > { %v4825_v9 = vpop.f32.mrb[35].mxu1  ;;  %v2923_v61 = vadd.f32 %v2918_v21, %v6794_v26  ;;  %v5126_v26 = vld [vmem:[#allocation14 + $0x38] sm:$0xff]  }
0x132c   : > { %4833 = vmatpush3.bf16.msra.mxu0 %v5126_v26 }
0x132d   : > { %v2928_v62 = vsel %vm1009_vm0, %v2923_v61, 0.0 }
0x132e   : > { %2929 = vadd.xlane.f32.xlu0 %v2928_v62 }
0x13bb   : > { %v2930_v63 = vpop.xlane.xlu0 %2929 }
0x13bc   : > { %v2931_v1 = vmul.f32 0.015625, %v2930_v63  ;;  %v4470_v63 = vld [vmem:[#allocation17 + $0x1] ss:$0 sm:$0xff] }
0x13be   : > { %v2932_v2 = vsub.f32 %v2923_v61, %v2931_v1 }
0x13c0   : > { %v2933_v3 = vmul.f32 %v2932_v2, %v2932_v2 }
0x13c2   : > { %v2934_v28 = vsel %vm1009_vm0, %v2933_v3, 0.0 }
0x13c3   : > { %2935 = vadd.xlane.f32.xlu1 %v2934_v28 }
0x1450   : > { %v2936_v6 = vpop.xlane.xlu1 %2935 }
0x1451   : > { %v2937_v7 = vmul.f32 0.015625, %v2936_v6 }
0x1453   : > { %v2938_v8 = vadd.f32 1e-05, %v2937_v7 }
0x1455   : > { %5311 = vrsqrt.f32 %v2938_v8 }
0x145f   : > { %v5312_v10 = vpop.eup %5311 }
0x1460   : > { %v2940_v14 = vmul.f32 %v5312_v10, %v2932_v2 }
0x1462   : > { %v2947_v17 = vmul.f32 %v4446_v11, %v2940_v14 }
0x1464   : > { %v6871_v18 = vadd.f32 %v4447_v16, %v2947_v17  ;;  %v4479_v17 = vld [vmem:[#allocation19 + $0x1] ss:$0 sm:$0xff] }
0x1466   : > { %v2966_v19 = vpack.c.bf16 %v6871_v18, %v6871_v18 }
0x1468   : > { %4835 = vmatmul.mubr.msk.bf16.vlgmr.msra.gmra.mrb[52].mxu0 %vm1009_vm0, %v2966_v19 }
0x1469   : > { %3384 = vmatprep.mubr.bf16.mxu0 %v5931_v0 }
0x153b   : > { %v3034_v34 = vpop.f32.mrb[52].mxu0 }
0x153c   : > { %v3035_v35 = vadd.f32 %v4448_v33, %v3034_v34  ;;  %v4836_v36 = vpop.f32.mrb[53].mxu0  ;;  %v5137_v33 = vld [vmem:[#allocation25 + $0x4] ss:$16 sps:$4 sm:$0xff]   ;;  %v5135_v34 = vld [vmem:[#allocation25] ss:$16 sps:$4 sm:$0xff]  }
0x153d   : > { %v3037_v37 = vpop.f32.mrb[54].mxu0  ;;  %3352 = vmatprep.subr.bf16.mxu0 %v5137_v33  ;;  %v5138_v36 = vld [vmem:[#allocation25 + $0x20] ss:$16 sps:$4 sm:$0xff]  }
0x153e   : > { %v3041_v38 = vmul.f32 0.70710677, %v3035_v35  ;;  %v4837_v39 = vpop.f32.mrb[55].mxu0  ;;  %v3040_v60 = vmul.f32 0.5, %v3035_v35  ;;  %3353 = vmatpush1.bf16.msra.mxu0 %v5135_v34  ;;  %v5140_v35 = vld [vmem:[#allocation25 + $0x24] ss:$16 sps:$4 sm:$0xff]  }
0x153f   : > { %3354 = vmatprep.subr.bf16.mxu0 %v5140_v35  ;;  %v5143_v37 = vld [vmem:[#allocation25 + $0x44] ss:$16 sps:$4 sm:$0xff]   ;;  %v5144_v39 = vld [vmem:[#allocation25 + $0x60] ss:$16 sps:$4 sm:$0xff]   ;;  %v5259_v35 = vld [vmem:[%s7158_s5 + $0x50] sm:$0xff]  }
0x1540   : > { %v3044_v40 = vand.u32 2147483647, %v3041_v38  ;;  %vm3042_vm5 = vcmp.ge.f32.partialorder %v3041_v38, 0.0  ;;  %v5141_v38 = vld [vmem:[#allocation25 + $0x40] ss:$16 sps:$4 sm:$0xff]  }
0x1541   : > { %v3043_v21 = vsel %vm3042_vm5, 1.0, %v5934_v48  ;;  %v5257_v33 = vld [vmem:[%s7158_s5 + $0x48] sm:$0xff]  }
0x1542   : > { %v3045_v41 = vmul.f32 0.3275911, %v3044_v40  ;;  %v3057_v43 = vsub.f32 0.0, %v3044_v40  ;;  %3355 = vmatpush1.bf16.msra.mxu0 %v5138_v36  ;;  %v5258_v34 = vld [vmem:[%s7158_s5 + $0x8] sm:$0xff]   ;;  %v5260_v36 = vld [vmem:[%s7158_s5 + $0x10] sm:$0xff]  }
0x1543   : > { %3356 = vmatprep.subr.bf16.mxu0 %v5143_v37  ;;  %v5261_v37 = vld [vmem:[%s7158_s5 + $0x58] sm:$0xff]  }
0x1544   : > { %v3046_v42 = vadd.f32 1.0, %v3045_v41  ;;  %v3058_v45 = vmul.f32 %v3057_v43, %v3044_v40  ;;  %v5146_v40 = vld [vmem:[#allocation25 + $0x64] ss:$16 sps:$4 sm:$0xff]   ;;  %v5149_v41 = vld [vmem:[#allocation25 + $0xc] ss:$16 sps:$4 sm:$0xff]  }
0x1545   : > { %v5161_v43 = vld [vmem:[#allocation28 + $0x4] ss:$8 sps:$4 sm:$0xff]  }
0x1546   : > { %5313 = vrcp.f32 %v3046_v42  ;;  %v3059_v47 = vmul.f32 1.442695, %v3058_v45  ;;  %3357 = vmatpush1.bf16.msra.mxu0 %v5141_v38  ;;  %v5159_v42 = vld [vmem:[#allocation28] ss:$8 sps:$4 sm:$0xff]   ;;  %3838 = vmatprep.subr.bf16.mxu1 %v5161_v43  ;;  %v5162_v45 = vld [vmem:[#allocation28 + $0x10] ss:$8 sps:$4 sm:$0xff]  }
0x1547   : > { %3358 = vmatprep.subr.bf16.mxu0 %v5146_v40  ;;  %v5262_v38 = vld [vmem:[%s7158_s5 + $0x18] sm:$0xff]   ;;  %v5264_v40 = vld [vmem:[%s7158_s5 + $0x20] sm:$0xff]   ;;  %v6956_v43 = vld [vmem:[#allocation26] sm:$0xf] }
0x1548   : > { %5315 = vpow2.f32 %v3059_v47  ;;  %v5170_v47 = vld [vmem:[#allocation28 + $0x34] ss:$8 sps:$4 sm:$0xff]  }
0x154a   : > { %3359 = vmatpush1.bf16.msra.mxu0 %v5144_v39  ;;  %v5263_v39 = vld [vmem:[%s7158_s5 + $0x60] sm:$0xff]  }
0x154b   : > { %3393 = vmatprep.subr.bf16.mxu0 %v5149_v41  ;;  %v5265_v41 = vld [vmem:[%s7158_s5 + $0x68] sm:$0xff]  }
0x1550   : > { %v5314_v44 = vpop.eup %5313 }
0x1551   : > { %v3048_v24 = vmul.f32 1.0614054, %v5314_v44 }
0x1552   : > { %v5316_v55 = vpop.eup %5315 }
0x1553   : > { %v3049_v46 = vadd.f32 -1.4531521, %v3048_v24  ;;  %v5167_v24 = vld [vmem:[#allocation28 + $0x24] ss:$8 sps:$4 sm:$0xff]  }
0x1555   : > { %v3050_v56 = vmul.f32 %v5314_v44, %v3049_v46  ;;  %v5165_v46 = vld [vmem:[#allocation28 + $0x20] ss:$8 sps:$4 sm:$0xff]  }
0x1557   : > { %v3051_v49 = vadd.f32 1.4214138, %v3050_v56  ;;  %v5168_v56 = vld [vmem:[#allocation28 + $0x30] ss:$8 sps:$4 sm:$0xff]  }
0x1559   : > { %v3052_v50 = vmul.f32 %v5314_v44, %v3051_v49  ;;  %v5173_v49 = vld [vmem:[#allocation28 + $0x44] ss:$8 sps:$4 sm:$0xff]  }
0x155b   : > { %v3053_v51 = vadd.f32 -0.28449672, %v3052_v50  ;;  %v5171_v50 = vld [vmem:[#allocation28 + $0x40] ss:$8 sps:$4 sm:$0xff]  }
0x155d   : > { %v3054_v52 = vmul.f32 %v5314_v44, %v3053_v51  ;;  %v5176_v51 = vld [vmem:[#allocation28 + $0x54] ss:$8 sps:$4 sm:$0xff]  }
0x155f   : > { %v3055_v53 = vadd.f32 0.2548296, %v3054_v52  ;;  %v5174_v52 = vld [vmem:[#allocation28 + $0x50] ss:$8 sps:$4 sm:$0xff]  }
0x1561   : > { %v3056_v54 = vmul.f32 %v5314_v44, %v3055_v53  ;;  %v5164_v44 = vld [vmem:[#allocation28 + $0x14] ss:$8 sps:$4 sm:$0xff]   ;;  %v5179_v53 = vld [vmem:[#allocation28 + $0x64] ss:$8 sps:$4 sm:$0xff]  }
0x1563   : > { %v3061_v57 = vmul.f32 %v5316_v55, %v3056_v54  ;;  %v5177_v54 = vld [vmem:[#allocation28 + $0x60] ss:$8 sps:$4 sm:$0xff]   ;;  %v5182_v55 = vld [vmem:[#allocation28 + $0x74] ss:$8 sps:$4 sm:$0xff]  }
0x1565   : > { %v3062_v58 = vsub.f32 1.0, %v3061_v57  ;;  %v5180_v57 = vld [vmem:[#allocation28 + $0x70] ss:$8 sps:$4 sm:$0xff]  }
0x1567   : > { %v3063_v59 = vmul.f32 %v3062_v58, %v3043_v21  ;;  %v5185_v58 = vld [vmem:[#allocation28 + $0x84] ss:$8 sps:$4 sm:$0xff]   ;;  %v5183_v21 = vld [vmem:[#allocation28 + $0x80] ss:$8 sps:$4 sm:$0xff]  }
0x1569   : > { %v3064_v9 = vadd.f32 1.0, %v3063_v59  ;;  %v5188_v59 = vld [vmem:[#allocation28 + $0x94] ss:$8 sps:$4 sm:$0xff]  }
0x156b   : > { %v3065_v61 = vmul.f32 %v3064_v9, %v3040_v60  ;;  %v5186_v60 = vld [vmem:[#allocation28 + $0x90] ss:$8 sps:$4 sm:$0xff]   ;;  %v5191_v9 = vld [vmem:[#allocation28 + $0xa4] ss:$8 sps:$4 sm:$0xff]  }
0x156d   : > { %v3085_v62 = vpack.c.bf16 %v3065_v61, %v3065_v61  ;;  %v5189_v61 = vld [vmem:[#allocation28 + $0xa0] ss:$8 sps:$4 sm:$0xff]  }
0x156f   : > { %4855 = vmatmul.mubr.bf16.vlgmr.msra.gmra.mrb[36].mxu1 %v3085_v62  ;;  %v5194_v62 = vld [vmem:[#allocation28 + $0xb4] ss:$8 sps:$4 sm:$0xff]  }
0x1570   : > { %3839 = vmatpush1.bf16.msra.mxu1 %v5159_v42  ;;  %v5266_v42 = vld [vmem:[%s7158_s5 + $0x28] sm:$0xff]  }
0x1571   : > { %3840 = vmatprep.subr.bf16.mxu1 %v5164_v44  ;;  %v3332_v44 = vrot.slane %v6956_v43, %v6643_v13 }
0x1574   : > { %3841 = vmatpush1.bf16.msra.mxu1 %v5162_v45  ;;  %v3336_v45 = vrot.slane %v6956_v43, %v6646_v15 }
0x1575   : > { %3842 = vmatprep.subr.bf16.mxu1 %v5167_v24 }
0x1578   : > { %3843 = vmatpush1.bf16.msra.mxu1 %v5165_v46 }
0x1579   : > { %3844 = vmatprep.subr.bf16.mxu1 %v5170_v47 }
0x157c   : > { %3845 = vmatpush1.bf16.msra.mxu1 %v5168_v56 }
0x157d   : > { %3846 = vmatprep.subr.bf16.mxu1 %v5173_v49 }
0x1580   : > { %3847 = vmatpush1.bf16.msra.mxu1 %v5171_v50 }
0x1581   : > { %3848 = vmatprep.subr.bf16.mxu1 %v5176_v51 }
0x1584   : > { %3849 = vmatpush1.bf16.msra.mxu1 %v5174_v52 }
0x1585   : > { %3850 = vmatprep.subr.bf16.mxu1 %v5179_v53 }
0x1588   : > { %3851 = vmatpush1.bf16.msra.mxu1 %v5177_v54  ;;  %v5207_v54 = vld [vmem:[#allocation28 + $0x100] ss:$8 sps:$4 sm:$0xff]  }
0x1589   : > { %3852 = vmatprep.subr.bf16.mxu1 %v5182_v55 }
0x158c   : > { %3853 = vmatpush1.bf16.msra.mxu1 %v5180_v57  ;;  %v5212_v57 = vld [vmem:[#allocation28 + $0x114] ss:$8 sps:$4 sm:$0xff]  }
0x158d   : > { %3854 = vmatprep.subr.bf16.mxu1 %v5185_v58  ;;  %v5210_v58 = vld [vmem:[#allocation28 + $0x110] ss:$8 sps:$4 sm:$0xff]  }
0x1590   : > { %3855 = vmatpush1.bf16.msra.mxu1 %v5183_v21  ;;  %v3343_v21 = vsub.s32 3, %v6640_v12 }
0x1591   : > { %3856 = vmatprep.subr.bf16.mxu1 %v5188_v59  ;;  %v5215_v59 = vld [vmem:[#allocation28 + $0x124] ss:$8 sps:$4 sm:$0xff]  }
0x1594   : > { %3857 = vmatpush1.bf16.msra.mxu1 %v5186_v60  ;;  %v3344_v60 = vrot.slane %v6956_v43, %v3343_v21 }
0x1595   : > { %3858 = vmatprep.subr.bf16.mxu1 %v5191_v9  ;;  %v5213_v9 = vld [vmem:[#allocation28 + $0x120] ss:$8 sps:$4 sm:$0xff]  }
0x1598   : > { %3859 = vmatpush1.bf16.msra.mxu1 %v5189_v61  ;;  %v5218_v61 = vld [vmem:[#allocation28 + $0x134] ss:$8 sps:$4 sm:$0xff]  }
0x1599   : > { %3860 = vmatprep.subr.bf16.mxu1 %v5194_v62 }
0x1642   : > { %v3174_v1 = vpop.f32.mrb[36].mxu1 }
0x1643   : > { %v3175_v2 = vadd.f32 %v4470_v63, %v3174_v1  ;;  %v4856_v3 = vpop.f32.mrb[37].mxu1  ;;  %v5192_v63 = vld [vmem:[#allocation28 + $0xb0] ss:$8 sps:$4 sm:$0xff]   ;;  %v5197_v1 = vld [vmem:[#allocation28 + $0xc4] ss:$8 sps:$4 sm:$0xff]  }
0x1644   : > { %v3177_v28 = vpop.f32.mrb[38].mxu1  ;;  %3861 = vmatpush1.bf16.msra.mxu1 %v5192_v63  ;;  %v5200_v3 = vld [vmem:[#allocation28 + $0xd4] ss:$8 sps:$4 sm:$0xff]  }
0x1645   : > { %v4857_v32 = vpop.f32.mrb[39].mxu1  ;;  %v3180_v4 = vadd.f32 %v3175_v2, %v6871_v18  ;;  %v5195_v2 = vld [vmem:[#allocation28 + $0xc0] ss:$8 sps:$4 sm:$0xff]   ;;  %3862 = vmatprep.subr.bf16.mxu1 %v5197_v1  ;;  %v5198_v28 = vld [vmem:[#allocation28 + $0xd0] ss:$8 sps:$4 sm:$0xff]  }
0x1647   : > { %v3185_v5 = vsel %vm1009_vm0, %v3180_v4, 0.0 }
0x1648   : > { %3186 = vadd.xlane.f32.xlu0 %v3185_v5  ;;  %3863 = vmatpush1.bf16.msra.mxu1 %v5195_v2 }
0x1649   : > { %3864 = vmatprep.subr.bf16.mxu1 %v5200_v3  ;;  %v5216_v3 = vld [vmem:[#allocation28 + $0x130] ss:$8 sps:$4 sm:$0xff]  }
0x164c   : > { %3865 = vmatpush1.bf16.msra.mxu1 %v5198_v28 }
0x16d5   : > { %v3187_v26 = vpop.xlane.xlu0 %3186 }
0x16d6   : > { %v3188_v6 = vmul.f32 0.015625, %v3187_v26 }
0x16d8   : > { %v3189_v48 = vsub.f32 %v3180_v4, %v3188_v6  ;;  %v3212_v6 = vld [vmem:[#allocation22] sm:$0x1] }
0x16da   : > { %v3190_v7 = vmul.f32 %v3189_v48, %v3189_v48 }
0x16dc   : > { %v3191_v8 = vsel %vm1009_vm0, %v3190_v7, 0.0  ;;  %v3213_v7 = vld [vmem:[#allocation23] sm:$0x1] }
0x16dd   : > { %3192 = vadd.xlane.f32.xlu1 %v3191_v8 }
0x176a   : > { %v3193_v10 = vpop.xlane.xlu1 %3192 }
0x176b   : > { %v3194_v11 = vmul.f32 0.015625, %v3193_v10 }
0x176d   : > { %v3195_v14 = vadd.f32 1e-05, %v3194_v11  ;;  %v5147_v11 = vld [vmem:[#allocation25 + $0x8] ss:$16 sps:$4 sm:$0xff]  }
0x176f   : > { %5317 = vrsqrt.f32 %v3195_v14 }
0x1779   : > { %v5318_v16 = vpop.eup %5317 }
0x177a   : > { %v3197_v19 = vmul.f32 %v5318_v16, %v3189_v48  ;;  %v5152_v16 = vld [vmem:[#allocation25 + $0x2c] ss:$16 sps:$4 sm:$0xff]  }
0x177c   : > { %v3204_v22 = vmul.f32 %v4479_v17, %v3197_v19  ;;  %v5150_v17 = vld [vmem:[#allocation25 + $0x28] ss:$16 sps:$4 sm:$0xff]   ;;  %v5155_v19 = vld [vmem:[#allocation25 + $0x4c] ss:$16 sps:$4 sm:$0xff]  }
0x177e   : > { %v3211_v18 = vadd.f32 %v4480_v20, %v3204_v22  ;;  %v5153_v20 = vld [vmem:[#allocation25 + $0x48] ss:$16 sps:$4 sm:$0xff]   ;;  %v5158_v22 = vld [vmem:[#allocation25 + $0x6c] ss:$16 sps:$4 sm:$0xff]  }
0x1780   : > { %v3215_v23 = vsel %vm3214_vm6, %v3211_v18, 0.0 }
0x1781   : > { %3216 = vadd.xlane.f32.xlu0 %v3215_v23  ;;  %v5203_v23 = vld [vmem:[#allocation28 + $0xe4] ss:$8 sps:$4 sm:$0xff]  }
0x1782   : > { %3866 = vmatprep.subr.bf16.mxu1 %v5203_v23  ;;  %v5240_v23 = vld [vmem:[#allocation28 + $0x1b0] ss:$8 sps:$4 sm:$0xff]  }
0x180e   : > { %v3217_v25 = vpop.xlane.xlu0 %3216 }
0x180f   : > { %v3218_v27 = vmul.f32 0.015625, %v3217_v25  ;;  %v5201_v25 = vld [vmem:[#allocation28 + $0xe0] ss:$8 sps:$4 sm:$0xff]  }
0x1810   : > { %3867 = vmatpush1.bf16.msra.mxu1 %v5201_v25  ;;  %v5245_v25 = vld [vmem:[#allocation28 + $0x1c4] ss:$8 sps:$4 sm:$0xff]  }
0x1811   : > { %v6912_v29 = vsub.f32 %v3211_v18, %v3218_v27  ;;  %v5156_v18 = vld [vmem:[#allocation25 + $0x68] ss:$16 sps:$4 sm:$0xff]  }
0x1812   : > { %v5206_v27 = vld [vmem:[#allocation28 + $0xf4] ss:$8 sps:$4 sm:$0xff]  }
0x1813   : > { %v3220_v30 = vmul.f32 %v6912_v29, %v6912_v29  ;;  %3868 = vmatprep.subr.bf16.mxu1 %v5206_v27  ;;  %v5243_v27 = vld [vmem:[#allocation28 + $0x1c0] ss:$8 sps:$4 sm:$0xff]  }
0x1815   : > { %v3221_v31 = vsel %vm3214_vm6, %v3220_v30, 0.0  ;;  %v5255_v30 = vld [vmem:[%s7157_s28 + $0x40] sm:$0xff]   ;;  %s7159_s28 = sld [smem:[#allocation58_spill]] }
0x1816   : > { %3222 = vadd.xlane.f32.xlu1 %v3221_v31  ;;  %v5256_v31 = vld [vmem:[%s7158_s5] sm:$0xff]  }
0x18a3   : > { %v3223_v32 = vpop.xlane.xlu1 %3222 }
0x18a4   : > { %v3224_v4 = vmul.f32 0.015625, %v3223_v32  ;;  %v5221_v32 = vld [vmem:[#allocation28 + $0x144] ss:$8 sps:$4 sm:$0xff]  }
0x18a6   : > { %v3225_v5 = vadd.f32 1e-05, %v3224_v4 }
0x18a8   : > { %5319 = vrsqrt.f32 %v3225_v5 }
0x18b2   : > { %v5320_v26 = vpop.eup %5319 }
0x18b3   : > { %v3227_v48 = vmul.f32 %v5320_v26, %v6912_v29  ;;  %v5204_v29 = vld [vmem:[#allocation28 + $0xf0] ss:$8 sps:$4 sm:$0xff]   ;;  %v5219_v26 = vld [vmem:[#allocation28 + $0x140] ss:$8 sps:$4 sm:$0xff]  }
0x18b4   : > { %3869 = vmatpush1.bf16.msra.mxu1 %v5204_v29  ;;  %v3339_v29 = vsub.s32 2, %v6640_v12  ;;  %v5267_v12 = vld [vmem:[%s7158_s5 + $0x70] sm:$0xff]  }
0x18b5   : > { %v3228_v8 = vmul.f32 %v3227_v48, %v3212_v6  ;;  %v5224_v6 = vld [vmem:[#allocation28 + $0x154] ss:$8 sps:$4 sm:$0xff]   ;;  %v5222_v48 = vld [vmem:[#allocation28 + $0x150] ss:$8 sps:$4 sm:$0xff]  }
0x18b7   : > { %v3229_v10 = vadd.f32 %v3228_v8, %v3213_v7  ;;  %v5227_v7 = vld [vmem:[#allocation28 + $0x164] ss:$8 sps:$4 sm:$0xff]   ;;  %v5225_v8 = vld [vmem:[#allocation28 + $0x160] ss:$8 sps:$4 sm:$0xff]  }
0x18b9   : > { %v3247_v14 = vpack.c.bf16 %v3229_v10, %v3229_v10  ;;  %v5230_v10 = vld [vmem:[#allocation28 + $0x174] ss:$8 sps:$4 sm:$0xff]  }
0x18bb   : > { %4497 = vmatmul.mubr.msk.bf16.vlgmr.msra.gmra.mrb[56].mxu0 %vm1009_vm0, %v3247_v14 }
0x18bc   : > { %3394 = vmatpush1.bf16.msra.mxu0 %v5147_v11  ;;  %3425 = vmatprep.mubr.bf16.mxu0 %v5931_v0  ;;  %v5209_v0 = vld [vmem:[#allocation28 + $0x104] ss:$8 sps:$4 sm:$0xff]   ;;  %v5228_v11 = vld [vmem:[#allocation28 + $0x170] ss:$8 sps:$4 sm:$0xff]  }
0x18bd   : > { %3395 = vmatprep.subr.bf16.mxu0 %v5152_v16  ;;  %3879 = vmatprep.subr.bf16.mxu1 %v5209_v0  ;;  %v5231_v16 = vld [vmem:[#allocation28 + $0x180] ss:$8 sps:$4 sm:$0xff]   ;;  %v5248_v0 = vld [vmem:[#allocation28 + $0x1d4] ss:$8 sps:$4 sm:$0xff]  }
0x18c0   : > { %3396 = vmatpush1.bf16.msra.mxu0 %v5150_v17  ;;  %v5236_v17 = vld [vmem:[#allocation28 + $0x194] ss:$8 sps:$4 sm:$0xff]  }
0x18c1   : > { %3397 = vmatprep.subr.bf16.mxu0 %v5155_v19  ;;  %v5234_v19 = vld [vmem:[#allocation28 + $0x190] ss:$8 sps:$4 sm:$0xff]  }
0x18c4   : > { %3398 = vmatpush1.bf16.msra.mxu0 %v5153_v20  ;;  %v5239_v20 = vld [vmem:[#allocation28 + $0x1a4] ss:$8 sps:$4 sm:$0xff]  }
0x18c5   : > { %3399 = vmatprep.subr.bf16.mxu0 %v5158_v22  ;;  %v5237_v22 = vld [vmem:[#allocation28 + $0x1a0] ss:$8 sps:$4 sm:$0xff]  }
0x18c8   : > { %3400 = vmatpush1.bf16.msra.mxu0 %v5156_v18  ;;  %v5242_v18 = vld [vmem:[#allocation28 + $0x1b4] ss:$8 sps:$4 sm:$0xff]  }
0x18c9   : > { %4652 = vmatprep.subr.bf16.mxu0 %v5255_v30  ;;  %v5246_v30 = vld [vmem:[#allocation28 + $0x1d0] ss:$8 sps:$4 sm:$0xff]  }
0x18cb   : > { %4498 = vmatmul.mubr.msk.bf16.vlgmr.msra.gmra.mrb[60].mxu0 %vm1009_vm0, %v3247_v14  ;;  %v5233_v14 = vld [vmem:[#allocation28 + $0x184] ss:$8 sps:$4 sm:$0xff]  }
0x18cc   : > { %4653 = vmatpush3.bf16.msra.mxu0 %v5256_v31  ;;  %v3340_v31 = vrot.slane %v6956_v43, %v3339_v29  ;;  %v3502_v43 = vld [vmem:[%s7159_s28] sm:$0x3]  ;;  %s4095_s28 = scalar_lea.sflag [#allocation4], %s6561_s19 }
0x18cd   : > { %4654 = vmatprep.subr.bf16.mxu0 %v5257_v33  ;;  %v5251_v33 = vld [vmem:[#allocation28 + $0x1e4] ss:$8 sps:$4 sm:$0xff]  }
0x18d0   : > { %4655 = vmatpush3.bf16.msra.mxu0 %v5258_v34  ;;  %v5249_v34 = vld [vmem:[#allocation28 + $0x1e0] ss:$8 sps:$4 sm:$0xff]  }
0x18d1   : > { %4656 = vmatprep.subr.bf16.mxu0 %v5259_v35 }
0x18d4   : > { %4657 = vmatpush3.bf16.msra.mxu0 %v5260_v36  ;;  %v5254_v36 = vld [vmem:[#allocation28 + $0x1f4] ss:$8 sps:$4 sm:$0xff]  }
0x18d5   : > { %4658 = vmatprep.subr.bf16.mxu0 %v5261_v37  ;;  %v5252_v37 = vld [vmem:[#allocation28 + $0x1f0] ss:$8 sps:$4 sm:$0xff]  }
0x18d8   : > { %4659 = vmatpush3.bf16.msra.mxu0 %v5262_v38 }
0x18d9   : > { %4660 = vmatprep.subr.bf16.mxu0 %v5263_v39 }
0x18dc   : > { %4661 = vmatpush3.bf16.msra.mxu0 %v5264_v40  ;;  %v5268_v40 = vld [vmem:[%s7158_s5 + $0x30] sm:$0xff]  }
0x18dd   : > { %4662 = vmatprep.subr.bf16.mxu0 %v5265_v41  ;;  %v5269_v41 = vld [vmem:[%s7158_s5 + $0x78] sm:$0xff]  }
0x18e0   : > { %4663 = vmatpush3.bf16.msra.mxu0 %v5266_v42  ;;  %v5270_v42 = vld [vmem:[%s7158_s5 + $0x38] sm:$0xff]  }
0x18e1   : > { %4664 = vmatprep.subr.bf16.mxu0 %v5267_v12 }
0x18e4   : > { %4665 = vmatpush3.bf16.msra.mxu0 %v5268_v40 }
0x18e5   : > { %4666 = vmatprep.subr.bf16.mxu0 %v5269_v41 }
0x18e8   : > { %4667 = vmatpush3.bf16.msra.mxu0 %v5270_v42 }
0x198e   : > { %v3386_v24 = vpop.f32.mrb[56].mxu0 }
0x198f   : > { %v3387_v46 = vadd.f32 %v3386_v24, %v3332_v44  ;;  %v3388_v47 = vpop.f32.mrb[57].mxu0  ;;  %v3831_v44 = vrot.slane %v3502_v43, %v6643_v13  ;;  %v3954_v13 = vld [vmem:[%s7160_s7] sm:$0x1]  ;;  %s5807_s7 = scalar_lea.vmem %s5806_s12, 32 }
0x1990   : > { %v3389_v56 = vadd.f32 %v3388_v47, %v3336_v45  ;;  %v3390_v49 = vpop.f32.mrb[58].mxu0  ;;  %v3835_v45 = vrot.slane %v3502_v43, %v6646_v15  ;;  %p5809_p13 = scmp.lt.s32.totalorder %s5807_s7, %s5801_s4 }
0x1991   : > { %v3434_v50 = vmax.f32 %v3387_v46, 0.0  ;;  %v3391_v51 = vpop.f32.mrb[59].mxu0 }
0x1992   : > { %v3435_v52 = vmax.f32 %v3389_v56, 0.0  ;;  %p5810_p7 = por %p5809_p13, %p5808_p12 }
0x1993   : > { %v3503_v55 = vpack.c.bf16 %v3434_v50, %v3434_v50 }
0x1994   : > { %v3504_v53 = vpack.c.bf16 %v3435_v52, %v3435_v52  ;;  %p5811_p9 = pnand %p5810_p7, %p5804_p11 }
0x1996   : > { %3870 = vmatprep.mubr.bf16.mxu1 %v3504_v53 }
0x1997   : > { %3871 = vmatmul.mubr.bf16.vlgmr.msra.gmra.mrb[40].mxu1 %v3503_v55 }
0x1998   : > { %3880 = vmatpush1.bf16.msra.mxu1 %v5207_v54 }
0x1999   : > { %3881 = vmatprep.subr.bf16.mxu1 %v5212_v57 }
0x199c   : > { %3882 = vmatpush1.bf16.msra.mxu1 %v5210_v58 }
0x199d   : > { %3883 = vmatprep.subr.bf16.mxu1 %v5215_v59 }
0x199e   : > { %v3427_v62 = vpop.f32.mrb[60].mxu0 }
0x199f   : > { %v3429_v63 = vpop.f32.mrb[61].mxu0  ;;  %v3428_v35 = vadd.f32 %v3427_v62, %v3340_v31 }
0x19a0   : > { %v3430_v1 = vadd.f32 %v3429_v63, %v3344_v60  ;;  %v3431_v2 = vpop.f32.mrb[62].mxu0  ;;  %3884 = vmatpush1.bf16.msra.mxu1 %v5213_v9 }
0x19a1   : > { %v3432_v28 = vpop.f32.mrb[63].mxu0  ;;  %3885 = vmatprep.subr.bf16.mxu1 %v5218_v61  ;;  %v3436_v38 = vmax.f32 %v3428_v35, 0.0 }
0x19a2   : > { %v3437_v4 = vmax.f32 %v3430_v1, 0.0 }
0x19a3   : > { %v3505_v39 = vpack.c.bf16 %v3436_v38, %v3436_v38 }
0x19a4   : > { %v3506_v5 = vpack.c.bf16 %v3437_v4, %v3437_v4  ;;  %3886 = vmatpush1.bf16.msra.mxu1 %v5216_v3 }
0x19a5   : > { %3887 = vmatprep.subr.bf16.mxu1 %v5221_v32 }
0x19a6   : > { %3911 = vmatprep.mubr.bf16.mxu1 %v3506_v5 }
0x19a8   : > { %3888 = vmatpush1.bf16.msra.mxu1 %v5219_v26 }
0x19a9   : > { %3889 = vmatprep.subr.bf16.mxu1 %v5224_v6 }
0x19ac   : > { %3890 = vmatpush1.bf16.msra.mxu1 %v5222_v48 }
0x19ad   : > { %3891 = vmatprep.subr.bf16.mxu1 %v5227_v7 }
0x19b0   : > { %3892 = vmatpush1.bf16.msra.mxu1 %v5225_v8 }
0x19b1   : > { %3893 = vmatprep.subr.bf16.mxu1 %v5230_v10 }
0x19b4   : > { %3894 = vmatpush1.bf16.msra.mxu1 %v5228_v11 }
0x19b5   : > { %3895 = vmatprep.subr.bf16.mxu1 %v5233_v14 }
0x19b8   : > { %3896 = vmatpush1.bf16.msra.mxu1 %v5231_v16 }
0x19b9   : > { %3897 = vmatprep.subr.bf16.mxu1 %v5236_v17 }
0x19bc   : > { %3898 = vmatpush1.bf16.msra.mxu1 %v5234_v19 }
0x19bd   : > { %3899 = vmatprep.subr.bf16.mxu1 %v5239_v20 }
0x19c0   : > { %3900 = vmatpush1.bf16.msra.mxu1 %v5237_v22 }
0x19c1   : > { %3901 = vmatprep.subr.bf16.mxu1 %v5242_v18 }
0x19c4   : > { %3902 = vmatpush1.bf16.msra.mxu1 %v5240_v23 }
0x19c5   : > { %3903 = vmatprep.subr.bf16.mxu1 %v5245_v25 }
0x19c8   : > { %3904 = vmatpush1.bf16.msra.mxu1 %v5243_v27 }
0x19c9   : > { %3905 = vmatprep.subr.bf16.mxu1 %v5248_v0 }
0x19cc   : > { %3906 = vmatpush1.bf16.msra.mxu1 %v5246_v30 }
0x19cd   : > { %3907 = vmatprep.subr.bf16.mxu1 %v5251_v33 }
0x19d0   : > { %3908 = vmatpush1.bf16.msra.mxu1 %v5249_v34 }
0x19d1   : > { %3909 = vmatprep.subr.bf16.mxu1 %v5254_v36 }
0x19d4   : > { %3910 = vmatpush1.bf16.msra.mxu1 %v5252_v37 }
0x19d7   : > { %3912 = vmatmul.mubr.bf16.vlgmr.msra.gmra.mrb[40].mxu1 %v3505_v39 }
0x1aaa   : > { %v3913_v24 = vpop.f32.mrb[40].mxu1 }
0x1aab   : > { %v4858_v46 = vadd.f32 %v3913_v24, %v3831_v44  ;;  %v3915_v47 = vpop.f32.mrb[41].mxu1 }
0x1aac   : > { %v4859_v56 = vadd.f32 %v3915_v47, %v3835_v45  ;;  %v3917_v49 = vpop.f32.mrb[42].mxu1 }
0x1aad   : > { %v3920_v50 = vmax.f32 %v4858_v46, 0.0  ;;  %v3918_v51 = vpop.f32.mrb[43].mxu1 }
0x1aae   : > { %v3921_v52 = vmax.f32 %v4859_v56, 0.0 }
0x1aaf   : > { %v3955_v54 = vpack.c.bf16 %v3920_v50, %v3920_v50 }
0x1ab0   : > { %v3956_v53 = vpack.c.bf16 %v3921_v52, %v3921_v52 }
0x1ab2   : > { %4085 = vmatprep.mubr.bf16.mxu0 %v3956_v53 }
0x1ab3   : > { %4086 = vmatmul.mubr.bf16.vlgmr.msra.gmra.mrb[64].mxu0 %v3955_v54 }
0x1b86   : > { %v4668_v55 = vpop.f32.mrb[64].mxu0 }
0x1b87   : > { %v4669_v15 = vpop.f32.mrb[65].mxu0 }
0x1b88   : > { %v4670_v57 = vadd.f32 %v4669_v15, %v4668_v55  ;;  %v4671_v58 = vpop.f32.mrb[66].mxu0 }
0x1b89   : > { %v4672_v21 = vpop.f32.mrb[67].mxu0 }
0x1b8a   : > { %v4088_v59 = vadd.f32 %v4670_v57, %v3954_v13 }
0x1b8c   : > { %4093 = vst [vmem:[%s942_s25] sm:$0x1] %v4088_v59 }
0x1b8d   : > { %5814 = shalt.err (!%p5811_p9)
}
0x1b8e   : > { %s5815_s19 = scalar_lea.hbm %s6991_s0, 16  ;;  %s5819_s9 = scalar_lea.hbm %s7161_s8, 32 }
0x1b8f   : > { %p5816_p0 = scmp.ne.s32.totalorder %s6991_s0, %s5815_s19  ;;  %p5820_p6 = scmp.lt.u32.totalorder %s6991_s0, %s7161_s8 }
0x1b90   : > { %p5821_p4 = scmp.lt.u32.totalorder %s5819_s9, %s5815_s19  ;;  %p5823_p5 = scmp.lt.u32.totalorder %s5815_s19, %s6991_s0 }
0x1b91   : > { %p5817_p2 = pnand %p5816_p0, %p7162_p10 }
0x1b92   : > { %p5822_p8 = por %p5821_p4, %p5820_p6 }
0x1b93   : > { %p5818_p3 = pneg %p5817_p2 }
0x1b94   : > { %p5824_p1 = por %p5823_p5, %p5822_p8 }
0x1b96   : > { %p5825_p11 = pnand %p5824_p1, %p5818_p3 }
0x1b98   : > { %5828 = shalt.err (!%p5825_p11)
}
0x1b99   : > { %4928 = dma.vmem_to_hbm [thread:$0]  (%p7162_p10), %s6993_s6, 16, %s6991_s0, %s4095_s28  }
0x1b9a PF: > { %s7163_s4 = sld [smem:[#allocation41_spill]]  ;;  %p7164_p12 = scmp.ne.s32.totalorder %s7129_s2, 0 }
0x1b9b   : > { %p7165_p13 = scmp.ge.s32.totalorder %s5903_s30, 2 }
0x1b9d   : > { %p4984_p7 = pnand %p7165_p13, %p7164_p12 }
0x1ba0   : > { %s4119_s12 = sand.u32 1, %s7163_s4  }
0x1ba1   : > { %s4120_s7 = scalar_lea.sflag [#allocation4], %s4119_s12 }
0x1ba2   : > { %5886 = dma.done.wait (!%p4984_p7), %s4120_s7, 16  }
0x1ba3   : > { %5888 = vsyncadd (!%p4984_p7), %s4120_s7, 4294967280  ;;  %s7166_s3 = sld [smem:[#allocation42_spill]]  ;;  %p45_p9 = scmp.ge.s32.totalorder %s6452_s27, 4  }
0x1ba4   : > { %s7167_s28 = smov %s5899_s29  ;;  %s7168_s29 = smov %s6463_s26 }
0x1ba5   : > { %s7169_s30 = smov %s6452_s27  ;;  %47 = sbr.rel (!%p45_p9) target bundleno = 32 (0x20), region = 238 }
0x1bac   :  { %4124 = vsyncpa [#allocation3], 1 }
0x1bad   :  { %4126 = vsyncpa [#allocation3 + $0x1], 1 }
0x1bae   :  { %4127 = vsyncpa [#allocation6], 1 }
0x1baf   :  { %4129 = vsyncpa [#allocation6 + $0x1], 1 }
0x1bb0   :  { %4130 = vsyncpa [#allocation9], 1 }
0x1bb1   :  { %4131 = vsyncpa [#allocation12], 1 }
0x1bb2   :  { %4132 = vsyncpa [#allocation15], 1 }
0x1bb3   :  { %4133 = vsyncpa [#allocation18], 1 }
0x1bb4   :  { %4134 = vsyncpa [#allocation21], 1 }
0x1bb5   :  { %4135 = vsyncpa [#allocation24], 1 }
0x1bb6   :  { %4136 = vsyncpa [#allocation27], 1 }
0x1bb7   :  { %4137 = vsyncpa [#allocation4], 1 }
0x1bb8   :  { %4139 = vsyncpa [#allocation4 + $0x1], 1 }

</bundles_post_ra>
